<compile_context>
chip_gen: v6e
topology: v6e:2x2x1
jax: 0.10.0
libtpu: 0.0.40
codegen_flags: <defaults>
</compile_context>

<pallas_src>
import functools
import math

import jax
import jax.numpy as jnp
from jax.experimental import pallas as pl
from jax.experimental.pallas import tpu as pltpu


# ---------------------------------------------------------------------------
# small helpers
# ---------------------------------------------------------------------------
def _round_up(x, m):
    return ((x + m - 1) // m) * m


def _pad_to(x, shape):
    return jnp.pad(x, tuple((0, s - d) for d, s in zip(x.shape, shape)))


# ---------------------------------------------------------------------------
# fused kernel: LocalAggregator + GlobalAggregator pyramid + final add
# ---------------------------------------------------------------------------
def _combine_kernel(*refs, hop, sample_num, slope, act_relu):
    """One grid step = one batch tile (TB sessions). Everything stays in VMEM."""
    idx = 0
    ent_refs = refs[idx:idx + hop + 1]
    idx += hop + 1
    adj_ref = refs[idx]
    idx += 1
    nw_refs = refs[idx:idx + hop]
    idx += hop
    sess_ref = refs[idx]
    idx += 1
    a_ref = refs[idx]
    idx += 1
    agg_refs = [refs[idx + 5 * i: idx + 5 * (i + 1)] for i in range(hop)]
    idx += 5 * hop
    o_ref = refs[idx]

    f32, bf16 = jnp.float32, jnp.bfloat16
    K = sample_num

    def leaky(x, s):
        return jnp.where(x >= 0, x, s * x)

    # ---------------- LocalAggregator ----------------
    h_bf = ent_refs[0][...]                       # (TB, S, Dp) bf16
    TB, S, Dp = h_bf.shape
    adj = adj_ref[...]                            # (TB, S, S) int32
    hf = h_bf.astype(f32)
    a = a_ref[...].astype(f32)                    # (4, Dp)

    # Fused relation matmul: one (TB,4S,Dp)x(TB,S,Dp) batched MXU call instead
    # of four tiny ones.  e[b, k*S+i, j] = <h_i * a_k, h_j>.
    hk = (hf[:, None, :, :] * a[None, :, None, :]).reshape(TB, 4 * S, Dp)
    e = jnp.einsum("brd,bsd->brs", hk.astype(bf16), h_bf,
                   preferred_element_type=f32)    # (TB, 4S, S) f32
    e = leaky(e, slope)

    # One-pass relation select (replaces the 4-deep dependent where-chain).
    sel = jnp.zeros((TB, S, S), f32)
    for k in range(4):
        sel = sel + jnp.where(adj == (k + 1), e[:, k * S:(k + 1) * S, :], 0.0)
    att = jnp.where((adj >= 1) & (adj <= 4), sel, f32(-9e15))
    att = att - jnp.max(att, axis=-1, keepdims=True)
    p = jnp.exp(att)
    att = p * pl.reciprocal(jnp.sum(p, axis=-1, keepdims=True), approx=True)
    h_local = jnp.einsum("bij,bjd->bid", att.astype(bf16), h_bf,
                         preferred_element_type=f32)          # (TB, S, Dp) f32

    # ---------------- GlobalAggregator pyramid ----------------
    sess = sess_ref[...]                          # (TB, 1, Dp) bf16, broadcast in-kernel

    def aggregate(sv, nv3, nw, w):
        # sv: (TB, M, Dp), nv3: (TB, M*K, Dp), nw: (TB, M, K) f32
        w1a = w[0][...]                           # (Dp, Dp) bf16
        w1b = w[1][...]                           # (1, Dp)  f32 (weight column of w_1)
        w2 = w[2][...]                            # (1, Dp)  f32
        w3a = w[3][...]                           # (Dp, Dp) bf16
        w3b = w[4][...]                           # (Dp, Dp) bf16
        M = nw.shape[1]

        nv = nv3.astype(f32).reshape(TB, M, K, Dp)            # (TB, M, K, Dp) f32
        prod = sess[:, :, None, :] * nv                       # session * neighbor
        a1 = jnp.dot(prod.reshape(TB * M * K, Dp).astype(bf16), w1a,
                     preferred_element_type=f32).reshape(TB, M, K, Dp)
        a1 = a1 + nw[..., None] * w1b                         # + last row of w_1
        a1 = leaky(a1, 0.2)  # TODO(synk): slope 0.2 is hardcoded in reference GlobalAggregator
        logits = jnp.sum(a1 * w2, axis=-1)                    # (TB, M, K)
        m = jnp.max(logits, axis=-1, keepdims=True)
        pk = jnp.exp(logits - m)
        alpha = pk * pl.reciprocal(jnp.sum(pk, axis=-1, keepdims=True), approx=True)
        neigh = jnp.sum(alpha[..., None] * nv, axis=2)        # (TB, M, Dp) f32

        sv2 = sv.astype(f32).reshape(TB * M, Dp)
        out = (jnp.dot(sv2.astype(bf16), w3a, preferred_element_type=f32) +
               jnp.dot(neigh.reshape(TB * M, Dp).astype(bf16), w3b,
                       preferred_element_type=f32)).reshape(TB, M, Dp)
        return jnp.maximum(out, 0.0) if act_relu else jnp.tanh(out)

    ent = [h_bf] + [ent_refs[i][...] for i in range(1, hop + 1)]
    nws = [r[...] for r in nw_refs]
    for n_hop in range(hop):
        nxt = []
        for lev in range(hop - n_hop):
            nxt.append(aggregate(ent[lev], ent[lev + 1], nws[lev], agg_refs[n_hop]))
        ent = nxt

    # Fused final add; stored lane-dense (Dp is a multiple of 128).
    o_ref[...] = h_local + ent[0]


# ---------------------------------------------------------------------------
# pallas_call wrapper
# ---------------------------------------------------------------------------
def _combine_graph_pallas(entity, adj, nw, sess, local_a, agg_params, *,
                          hop, sample_num, slope, activate, batch_tile=None):
    B, S, Dp = entity[0].shape
    K = sample_num

    # Per-session block bytes (for batch-tile / VMEM sizing).
    per_sess = sum(E.shape[1] * Dp * E.dtype.itemsize for E in entity)
    per_sess += S * S * adj.dtype.itemsize
    per_sess += sum(w.shape[1] * K * w.dtype.itemsize for w in nw)
    per_sess += Dp * sess.dtype.itemsize + S * Dp * 4        # session vec + f32 output
    fixed = 4 * Dp * 2 + hop * (3 * Dp * Dp * 2 + 2 * Dp * 4)  # resident weights

    if batch_tile is None:
        TB = 1
        for t in range(1, min(B, 16) + 1):
            if B % t != 0:
                continue
            if 2 * (t * per_sess + fixed) > (20 << 20):      # conservative (v7x VMEM)
                continue
            if B // t >= 2 or B == 1:                        # keep >=2 steps for 2 TCs
                TB = t
    else:
        TB = batch_tile
    assert B % TB == 0, (B, TB)
    grid = (B // TB,)

    def batch_spec(arr):
        return pl.BlockSpec((TB,) + arr.shape[1:], lambda b: (b, 0, 0))

    def const_spec(arr):
        return pl.BlockSpec(arr.shape, lambda b: (0, 0))

    inputs, in_specs = [], []
    for E in entity:
        inputs.append(E)
        in_specs.append(batch_spec(E))
    inputs.append(adj)
    in_specs.append(batch_spec(adj))
    for w in nw:
        inputs.append(w)
        in_specs.append(batch_spec(w))
    inputs.append(sess)
    in_specs.append(batch_spec(sess))
    inputs.append(local_a)
    in_specs.append(const_spec(local_a))
    for p in agg_params:
        for name in ("w1a", "w1b", "w2", "w3a", "w3b"):
            inputs.append(p[name])
            in_specs.append(const_spec(p[name]))

    cp = dict(dimension_semantics=("parallel",))
    est = 2 * (TB * per_sess + fixed)
    if est > (12 << 20):
        # Explicit scoped-VMEM limit, capped so it stays legal on v7x (64 MiB VMEM).
        cp["vmem_limit_bytes"] = int(min(48 << 20, 2 * est))

    kernel = functools.partial(_combine_kernel, hop=hop, sample_num=K,
                               slope=slope, act_relu=(activate == "relu"))
    return pl.pallas_call(
        kernel,
        out_shape=jax.ShapeDtypeStruct((B, S, Dp), jnp.float32),
        grid=grid,
        in_specs=in_specs,
        out_specs=pl.BlockSpec((TB, S, Dp), lambda b: (b, 0, 0)),
        compiler_params=pltpu.CompilerParams(**cp),
    )(*inputs)


# ---------------------------------------------------------------------------
# parameters
# ---------------------------------------------------------------------------
def init_params(key, num_node, dim, hop, sample_num):
    """Uniform(-1/sqrt(dim), 1/sqrt(dim)) init, mirroring reset_parameters.
    Only the parameters reached by CombineGraph.forward are created."""
    stdv = 1.0 / math.sqrt(dim)
    keys = jax.random.split(key, 3 + hop)

    def u(k, shape):
        return jax.random.uniform(k, shape, jnp.float32, -stdv, stdv)

    params = {
        "embedding": u(keys[0], (num_node, dim)),
        "local_a": u(keys[1], (4, dim)),              # LocalAggregator a_0..a_3 stacked
        "global_agg": [],
    }
    for i in range(hop):
        kk = jax.random.split(keys[2 + i], 3)
        params["global_agg"].append({
            "w1": u(kk[0], (dim + 1, dim)),           # GlobalAggregator.w_1
            "w2": u(kk[1], (dim, 1)),                 # GlobalAggregator.w_2
            "w3": u(kk[2], (2 * dim, dim)),           # GlobalAggregator.w_3
        })
    k_adj, k_num = jax.random.split(keys[2 + hop])
    params["adj_all"] = jax.random.randint(
        k_adj, (num_node, sample_num), 0, num_node, dtype=jnp.int32)
    params["num"] = jax.random.uniform(
        k_num, (num_node, sample_num), jnp.float32, 0.0, 1.0)
    return params


def prepare_params(params, dim):
    """Repack for the TPU kernel: zero-pad the hidden dim to a lane-aligned
    multiple of 128 and cast MXU/HBM-heavy operands to bf16 (f32 accumulation is
    kept in-kernel).  Zero padding keeps the real `dim` columns exact."""
    Dp = _round_up(dim, 128)
    prep = {
        "embedding": _pad_to(params["embedding"],
                             (params["embedding"].shape[0], Dp)).astype(jnp.bfloat16),
        "local_a": _pad_to(params["local_a"], (4, Dp)).astype(jnp.bfloat16),
        "adj_all": params["adj_all"],
        "num": params["num"],
        "global_agg": [],
    }
    for p in params["global_agg"]:
        w1, w2, w3 = p["w1"], p["w2"], p["w3"]
        prep["global_agg"].append({
            "w1a": _pad_to(w1[:dim], (Dp, Dp)).astype(jnp.bfloat16),
            "w1b": _pad_to(w1[dim:dim + 1], (1, Dp)),          # f32 (elementwise only)
            "w2": _pad_to(w2.T, (1, Dp)),                      # f32 (elementwise only)
            "w3a": _pad_to(w3[:dim], (Dp, Dp)).astype(jnp.bfloat16),
            "w3b": _pad_to(w3[dim:], (Dp, Dp)).astype(jnp.bfloat16),
        })
    return prep


# ---------------------------------------------------------------------------
# CombineGraph.forward (eval mode: dropouts are identity)
# ---------------------------------------------------------------------------
def combine_graph_forward(params, inputs, adj, mask_item, item, *,
                          dim, hop, sample_num, alpha_slope=0.2,
                          activate="relu", batch_tile=None):
    B, S = inputs.shape
    emb = params["embedding"]                      # (num_node, Dp) bf16, zero-padded

    # global-graph neighbor sampling (table lookups; plain JAX)
    item_neighbors = [inputs]
    weight_neighbors = []
    support = S
    for _ in range(hop):
        flat = item_neighbors[-1].reshape(-1)
        item_neighbors.append(params["adj_all"][flat].reshape(B, support * sample_num))
        weight_neighbors.append(params["num"][flat].reshape(B, support * sample_num))
        support *= sample_num

    # TODO(synk): fuse these embedding gathers into the kernel (scalar-prefetched ids
    # + manual row DMA) to avoid the HBM round trip of the (B, S*K^hop, D) tensor.
    entity = [emb[ids] for ids in item_neighbors]                 # bf16 gathers
    nw = [weight_neighbors[i].reshape(B, S * sample_num ** i, sample_num)
          for i in range(hop)]

    # session representation (mean of masked item embeddings)
    maskf = mask_item.astype(jnp.float32)
    item_emb = emb[item].astype(jnp.float32) * maskf[..., None]
    # NOTE: an all-padding session (sum(mask)==0) yields NaN here, same as PyTorch.
    sess = jnp.sum(item_emb, axis=1) / jnp.sum(maskf, axis=-1, keepdims=True)
    sess = sess[:, None, :].astype(jnp.bfloat16)                  # (B, 1, Dp)

    out = _combine_graph_pallas(entity, adj, nw, sess, params["local_a"],
                                params["global_agg"], hop=hop, sample_num=sample_num,
                                slope=alpha_slope, activate=activate,
                                batch_tile=batch_tile)
    return out[..., :dim]                                         # drop lane padding


if __name__ == "__main__":
    B, S, D = 2, 8, 32
    hop, K = 2, 4
    num_node = 50

    key = jax.random.PRNGKey(0)
    kp, ki, ka = jax.random.split(key, 3)
    raw = init_params(kp, num_node, D, hop, K)
    prep = prepare_params(raw, D)

    inputs = jax.random.randint(ki, (B, S), 1, num_node, dtype=jnp.int32)
    adj = jax.random.randint(ka, (B, S, S), 0, 5, dtype=jnp.int32)
    lens = jnp.array([S, 5], dtype=jnp.int32)
    mask_item = (jnp.arange(S)[None, :] < lens[:, None]).astype(jnp.int32)
    item = inputs

    fwd = jax.jit(functools.partial(combine_graph_forward, dim=D, hop=hop,
                                    sample_num=K, alpha_slope=0.2, activate="relu"))
    out = fwd(prep, inputs, adj, mask_item, item)
    out = jax.block_until_ready(out)
    assert out.shape == (B, S, D) and out.dtype == jnp.float32
    assert bool(jnp.all(jnp.isfinite(out)))
    print("KERNEL_OK")
</pallas_src>

<mosaic_0001>
module attributes {stable_mosaic.version = 11 : i64} {
  func.func @_combine_kernel(%arg0: i32, %arg1: memref<1x8x128xbf16, #tpu.memory_space<vmem>>, %arg2: memref<1x32x128xbf16, #tpu.memory_space<vmem>>, %arg3: memref<1x128x128xbf16, #tpu.memory_space<vmem>>, %arg4: memref<1x8x8xi32, #tpu.memory_space<vmem>>, %arg5: memref<1x8x4xf32, #tpu.memory_space<vmem>>, %arg6: memref<1x32x4xf32, #tpu.memory_space<vmem>>, %arg7: memref<1x1x128xbf16, #tpu.memory_space<vmem>>, %arg8: memref<4x128xbf16, #tpu.memory_space<vmem>>, %arg9: memref<128x128xbf16, #tpu.memory_space<vmem>>, %arg10: memref<1x128xf32, #tpu.memory_space<vmem>>, %arg11: memref<1x128xf32, #tpu.memory_space<vmem>>, %arg12: memref<128x128xbf16, #tpu.memory_space<vmem>>, %arg13: memref<128x128xbf16, #tpu.memory_space<vmem>>, %arg14: memref<128x128xbf16, #tpu.memory_space<vmem>>, %arg15: memref<1x128xf32, #tpu.memory_space<vmem>>, %arg16: memref<1x128xf32, #tpu.memory_space<vmem>>, %arg17: memref<128x128xbf16, #tpu.memory_space<vmem>>, %arg18: memref<128x128xbf16, #tpu.memory_space<vmem>>, %arg19: memref<1x8x128xf32, #tpu.memory_space<vmem>>) attributes {dimension_semantics = [#tpu.dimension_semantics<parallel>], iteration_bounds = array<i64: 2>, scalar_prefetch = 0 : i64, scratch_operands = 0 : i64, tpu.core_type = #tpu.core_type<tc>, window_params = [{transform_indices = @transform_0, window_bounds = array<i64: 1, 8, 128>}, {transform_indices = @transform_1, window_bounds = array<i64: 1, 32, 128>}, {transform_indices = @transform_2, window_bounds = array<i64: 1, 128, 128>}, {transform_indices = @transform_3, window_bounds = array<i64: 1, 8, 8>}, {transform_indices = @transform_4, window_bounds = array<i64: 1, 8, 4>}, {transform_indices = @transform_5, window_bounds = array<i64: 1, 32, 4>}, {transform_indices = @transform_6, window_bounds = array<i64: 1, 1, 128>}, {pipeline_mode = #tpu.pipeline_mode<synchronous>, transform_indices = @transform_7, window_bounds = array<i64: 4, 128>}, {pipeline_mode = #tpu.pipeline_mode<synchronous>, transform_indices = @transform_8, window_bounds = array<i64: 128, 128>}, {pipeline_mode = #tpu.pipeline_mode<synchronous>, transform_indices = @transform_9, window_bounds = array<i64: 1, 128>}, {pipeline_mode = #tpu.pipeline_mode<synchronous>, transform_indices = @transform_10, window_bounds = array<i64: 1, 128>}, {pipeline_mode = #tpu.pipeline_mode<synchronous>, transform_indices = @transform_11, window_bounds = array<i64: 128, 128>}, {pipeline_mode = #tpu.pipeline_mode<synchronous>, transform_indices = @transform_12, window_bounds = array<i64: 128, 128>}, {pipeline_mode = #tpu.pipeline_mode<synchronous>, transform_indices = @transform_13, window_bounds = array<i64: 128, 128>}, {pipeline_mode = #tpu.pipeline_mode<synchronous>, transform_indices = @transform_14, window_bounds = array<i64: 1, 128>}, {pipeline_mode = #tpu.pipeline_mode<synchronous>, transform_indices = @transform_15, window_bounds = array<i64: 1, 128>}, {pipeline_mode = #tpu.pipeline_mode<synchronous>, transform_indices = @transform_16, window_bounds = array<i64: 128, 128>}, {pipeline_mode = #tpu.pipeline_mode<synchronous>, transform_indices = @transform_17, window_bounds = array<i64: 128, 128>}, {transform_indices = @transform_18, window_bounds = array<i64: 1, 8, 128>}]} {
    %c0 = arith.constant 0 : index
    %c0_0 = arith.constant 0 : index
    %c0_1 = arith.constant 0 : index
    %0 = vector.load %arg1[%c0, %c0_0, %c0_1] : memref<1x8x128xbf16, #tpu.memory_space<vmem>>, vector<1x8x128xbf16>
    %c0_2 = arith.constant 0 : index
    %c0_3 = arith.constant 0 : index
    %c0_4 = arith.constant 0 : index
    %1 = vector.load %arg4[%c0_2, %c0_3, %c0_4] : memref<1x8x8xi32, #tpu.memory_space<vmem>>, vector<1x8x8xi32>
    %2 = arith.extf %0 : vector<1x8x128xbf16> to vector<1x8x128xf32>
    %c0_5 = arith.constant 0 : index
    %c0_6 = arith.constant 0 : index
    %3 = vector.load %arg8[%c0_5, %c0_6] : memref<4x128xbf16, #tpu.memory_space<vmem>>, vector<4x128xbf16>
    %4 = arith.extf %3 : vector<4x128xbf16> to vector<4x128xf32>
    %5 = vector.shape_cast %2 : vector<1x8x128xf32> to vector<1x1x8x128xf32>
    %6 = vector.shape_cast %4 : vector<4x128xf32> to vector<1x4x1x128xf32>
    %7 = vector.broadcast %5 : vector<1x1x8x128xf32> to vector<1x4x8x128xf32>
    %8 = vector.broadcast %6 : vector<1x4x1x128xf32> to vector<1x4x8x128xf32>
    %9 = arith.mulf %7, %8 : vector<1x4x8x128xf32>
    %10 = vector.shape_cast %9 : vector<1x4x8x128xf32> to vector<1x32x128xf32>
    %11 = arith.truncf %10 : vector<1x32x128xf32> to vector<1x32x128xbf16>
    "tpu.trace_start"() <{level = 10 : i32, message = "brd,bsd->brs"}> : () -> ()
    %cst = arith.constant dense<0.000000e+00> : vector<1x32x8xf32>
    %12 = tpu.matmul %11, %0, %cst {dimension_numbers = #tpu.dot_dimension_numbers<[2], [2], [1], [1], [0, 0, 0, 1, 1, 1], [0], [0]>} : vector<1x32x128xbf16>, vector<1x8x128xbf16>, vector<1x32x8xf32> -> vector<1x32x8xf32>
    %cst_7 = arith.constant 0.000000e+00 : f32
    "tpu.trace_stop"() : () -> ()
    %13 = vector.broadcast %cst_7 : f32 to vector<1x32x8xf32>
    %14 = arith.cmpf oge, %12, %13 : vector<1x32x8xf32>
    %cst_8 = arith.constant 2.000000e-01 : f32
    %15 = vector.broadcast %cst_8 : f32 to vector<1x32x8xf32>
    %16 = arith.mulf %15, %12 : vector<1x32x8xf32>
    %17 = arith.select %14, %12, %16 : vector<1x32x8xi1>, vector<1x32x8xf32>
    %cst_9 = arith.constant 0.000000e+00 : f32
    %18 = vector.broadcast %cst_9 : f32 to vector<1x8x8xf32>
    %c1_i32 = arith.constant 1 : i32
    %19 = vector.broadcast %c1_i32 : i32 to vector<1x8x8xi32>
    %20 = arith.cmpi eq, %1, %19 : vector<1x8x8xi32>
    %21 = vector.extract_strided_slice %17 {offsets = [0, 0, 0], sizes = [1, 8, 8], strides = [1, 1, 1]} : vector<1x32x8xf32> to vector<1x8x8xf32>
    %cst_10 = arith.constant 0.000000e+00 : f32
    %22 = vector.broadcast %cst_10 : f32 to vector<1x8x8xf32>
    %23 = arith.select %20, %21, %22 : vector<1x8x8xi1>, vector<1x8x8xf32>
    %24 = arith.addf %18, %23 : vector<1x8x8xf32>
    %c2_i32 = arith.constant 2 : i32
    %25 = vector.broadcast %c2_i32 : i32 to vector<1x8x8xi32>
    %26 = arith.cmpi eq, %1, %25 : vector<1x8x8xi32>
    %27 = vector.extract_strided_slice %17 {offsets = [0, 8, 0], sizes = [1, 8, 8], strides = [1, 1, 1]} : vector<1x32x8xf32> to vector<1x8x8xf32>
    %cst_11 = arith.constant 0.000000e+00 : f32
    %28 = vector.broadcast %cst_11 : f32 to vector<1x8x8xf32>
    %29 = arith.select %26, %27, %28 : vector<1x8x8xi1>, vector<1x8x8xf32>
    %30 = arith.addf %24, %29 : vector<1x8x8xf32>
    %c3_i32 = arith.constant 3 : i32
    %31 = vector.broadcast %c3_i32 : i32 to vector<1x8x8xi32>
    %32 = arith.cmpi eq, %1, %31 : vector<1x8x8xi32>
    %33 = vector.extract_strided_slice %17 {offsets = [0, 16, 0], sizes = [1, 8, 8], strides = [1, 1, 1]} : vector<1x32x8xf32> to vector<1x8x8xf32>
    %cst_12 = arith.constant 0.000000e+00 : f32
    %34 = vector.broadcast %cst_12 : f32 to vector<1x8x8xf32>
    %35 = arith.select %32, %33, %34 : vector<1x8x8xi1>, vector<1x8x8xf32>
    %36 = arith.addf %30, %35 : vector<1x8x8xf32>
    %c4_i32 = arith.constant 4 : i32
    %37 = vector.broadcast %c4_i32 : i32 to vector<1x8x8xi32>
    %38 = arith.cmpi eq, %1, %37 : vector<1x8x8xi32>
    %39 = vector.extract_strided_slice %17 {offsets = [0, 24, 0], sizes = [1, 8, 8], strides = [1, 1, 1]} : vector<1x32x8xf32> to vector<1x8x8xf32>
    %cst_13 = arith.constant 0.000000e+00 : f32
    %40 = vector.broadcast %cst_13 : f32 to vector<1x8x8xf32>
    %41 = arith.select %38, %39, %40 : vector<1x8x8xi1>, vector<1x8x8xf32>
    %42 = arith.addf %36, %41 : vector<1x8x8xf32>
    %c1_i32_14 = arith.constant 1 : i32
    %43 = vector.broadcast %c1_i32_14 : i32 to vector<1x8x8xi32>
    %44 = arith.cmpi sge, %1, %43 : vector<1x8x8xi32>
    %c4_i32_15 = arith.constant 4 : i32
    %45 = vector.broadcast %c4_i32_15 : i32 to vector<1x8x8xi32>
    %46 = arith.cmpi sle, %1, %45 : vector<1x8x8xi32>
    %47 = arith.andi %44, %46 : vector<1x8x8xi1>
    %cst_16 = arith.constant -9.000000e+15 : f32
    %48 = vector.broadcast %cst_16 : f32 to vector<1x8x8xf32>
    %49 = arith.select %47, %42, %48 : vector<1x8x8xi1>, vector<1x8x8xf32>
    %cst_17 = arith.constant dense<0xFF800000> : vector<1x8xf32>
    %50 = vector.multi_reduction <maximumf>, %49, %cst_17 [2] : vector<1x8x8xf32> to vector<1x8xf32>
    %51 = vector.shape_cast %50 : vector<1x8xf32> to vector<1x8x1xf32>
    %52 = vector.broadcast %51 : vector<1x8x1xf32> to vector<1x8x8xf32>
    %53 = arith.subf %49, %52 : vector<1x8x8xf32>
    %54 = math.exp %53 : vector<1x8x8xf32>
    %cst_18 = arith.constant dense<0.000000e+00> : vector<1x8xf32>
    %55 = vector.multi_reduction <add>, %54, %cst_18 [2] : vector<1x8x8xf32> to vector<1x8xf32>
    %56 = vector.shape_cast %55 : vector<1x8xf32> to vector<1x8x1xf32>
    %57 = tpu.reciprocal %56 {approx = true} : vector<1x8x1xf32> -> vector<1x8x1xf32>
    %58 = vector.broadcast %57 : vector<1x8x1xf32> to vector<1x8x8xf32>
    %59 = arith.mulf %54, %58 : vector<1x8x8xf32>
    %60 = arith.truncf %59 : vector<1x8x8xf32> to vector<1x8x8xbf16>
    "tpu.trace_start"() <{level = 10 : i32, message = "bij,bjd->bid"}> : () -> ()
    %cst_19 = arith.constant dense<0.000000e+00> : vector<1x8x128xf32>
    %61 = tpu.matmul %60, %0, %cst_19 {dimension_numbers = #tpu.dot_dimension_numbers<[2], [1], [1], [2], [0, 0, 0, 1, 1, 2], [0], [0]>} : vector<1x8x8xbf16>, vector<1x8x128xbf16>, vector<1x8x128xf32> -> vector<1x8x128xf32>
    "tpu.trace_stop"() : () -> ()
    %c0_20 = arith.constant 0 : index
    %c0_21 = arith.constant 0 : index
    %c0_22 = arith.constant 0 : index
    %62 = vector.load %arg7[%c0_20, %c0_21, %c0_22] : memref<1x1x128xbf16, #tpu.memory_space<vmem>>, vector<1x1x128xbf16>
    %c0_23 = arith.constant 0 : index
    %c0_24 = arith.constant 0 : index
    %c0_25 = arith.constant 0 : index
    %63 = vector.load %arg2[%c0_23, %c0_24, %c0_25] : memref<1x32x128xbf16, #tpu.memory_space<vmem>>, vector<1x32x128xbf16>
    %c0_26 = arith.constant 0 : index
    %c0_27 = arith.constant 0 : index
    %c0_28 = arith.constant 0 : index
    %64 = vector.load %arg3[%c0_26, %c0_27, %c0_28] : memref<1x128x128xbf16, #tpu.memory_space<vmem>>, vector<1x128x128xbf16>
    %c0_29 = arith.constant 0 : index
    %c0_30 = arith.constant 0 : index
    %c0_31 = arith.constant 0 : index
    %65 = vector.load %arg5[%c0_29, %c0_30, %c0_31] : memref<1x8x4xf32, #tpu.memory_space<vmem>>, vector<1x8x4xf32>
    %c0_32 = arith.constant 0 : index
    %c0_33 = arith.constant 0 : index
    %c0_34 = arith.constant 0 : index
    %66 = vector.load %arg6[%c0_32, %c0_33, %c0_34] : memref<1x32x4xf32, #tpu.memory_space<vmem>>, vector<1x32x4xf32>
    %c0_35 = arith.constant 0 : index
    %c0_36 = arith.constant 0 : index
    %67 = vector.load %arg9[%c0_35, %c0_36] : memref<128x128xbf16, #tpu.memory_space<vmem>>, vector<128x128xbf16>
    %c0_37 = arith.constant 0 : index
    %c0_38 = arith.constant 0 : index
    %68 = vector.load %arg10[%c0_37, %c0_38] : memref<1x128xf32, #tpu.memory_space<vmem>>, vector<1x128xf32>
    %c0_39 = arith.constant 0 : index
    %c0_40 = arith.constant 0 : index
    %69 = vector.load %arg11[%c0_39, %c0_40] : memref<1x128xf32, #tpu.memory_space<vmem>>, vector<1x128xf32>
    %c0_41 = arith.constant 0 : index
    %c0_42 = arith.constant 0 : index
    %70 = vector.load %arg12[%c0_41, %c0_42] : memref<128x128xbf16, #tpu.memory_space<vmem>>, vector<128x128xbf16>
    %c0_43 = arith.constant 0 : index
    %c0_44 = arith.constant 0 : index
    %71 = vector.load %arg13[%c0_43, %c0_44] : memref<128x128xbf16, #tpu.memory_space<vmem>>, vector<128x128xbf16>
    %72 = arith.extf %63 : vector<1x32x128xbf16> to vector<1x32x128xf32>
    %73 = vector.shape_cast %72 : vector<1x32x128xf32> to vector<1x8x4x128xf32>
    %74 = vector.shape_cast %62 : vector<1x1x128xbf16> to vector<1x1x1x128xbf16>
    %75 = arith.extf %74 : vector<1x1x1x128xbf16> to vector<1x1x1x128xf32>
    %76 = vector.broadcast %75 : vector<1x1x1x128xf32> to vector<1x8x4x128xf32>
    %77 = arith.mulf %76, %73 : vector<1x8x4x128xf32>
    %78 = vector.shape_cast %77 : vector<1x8x4x128xf32> to vector<32x128xf32>
    %79 = arith.truncf %78 : vector<32x128xf32> to vector<32x128xbf16>
    %cst_45 = arith.constant dense<0.000000e+00> : vector<32x128xf32>
    %80 = tpu.matmul %79, %67, %cst_45 {dimension_numbers = #tpu.dot_dimension_numbers<[1], [0], [0], [1], [0, 0, 1, 1], [], []>} : vector<32x128xbf16>, vector<128x128xbf16>, vector<32x128xf32> -> vector<32x128xf32>
    %81 = vector.shape_cast %80 : vector<32x128xf32> to vector<1x8x4x128xf32>
    %82 = vector.shape_cast %65 : vector<1x8x4xf32> to vector<1x8x4x1xf32>
    %83 = vector.shape_cast %68 : vector<1x128xf32> to vector<1x1x1x128xf32>
    %84 = vector.broadcast %82 : vector<1x8x4x1xf32> to vector<1x8x4x128xf32>
    %85 = vector.broadcast %83 : vector<1x1x1x128xf32> to vector<1x8x4x128xf32>
    %86 = arith.mulf %84, %85 : vector<1x8x4x128xf32>
    %87 = arith.addf %81, %86 : vector<1x8x4x128xf32>
    %cst_46 = arith.constant 0.000000e+00 : f32
    %88 = vector.broadcast %cst_46 : f32 to vector<1x8x4x128xf32>
    %89 = arith.cmpf oge, %87, %88 : vector<1x8x4x128xf32>
    %cst_47 = arith.constant 2.000000e-01 : f32
    %90 = vector.broadcast %cst_47 : f32 to vector<1x8x4x128xf32>
    %91 = arith.mulf %90, %87 : vector<1x8x4x128xf32>
    %92 = arith.select %89, %87, %91 : vector<1x8x4x128xi1>, vector<1x8x4x128xf32>
    %93 = vector.shape_cast %69 : vector<1x128xf32> to vector<1x1x1x128xf32>
    %94 = vector.broadcast %93 : vector<1x1x1x128xf32> to vector<1x8x4x128xf32>
    %95 = arith.mulf %92, %94 : vector<1x8x4x128xf32>
    %cst_48 = arith.constant dense<0.000000e+00> : vector<1x8x4xf32>
    %96 = vector.multi_reduction <add>, %95, %cst_48 [3] : vector<1x8x4x128xf32> to vector<1x8x4xf32>
    %cst_49 = arith.constant dense<0xFF800000> : vector<1x8xf32>
    %97 = vector.multi_reduction <maximumf>, %96, %cst_49 [2] : vector<1x8x4xf32> to vector<1x8xf32>
    %98 = vector.shape_cast %97 : vector<1x8xf32> to vector<1x8x1xf32>
    %99 = vector.broadcast %98 : vector<1x8x1xf32> to vector<1x8x4xf32>
    %100 = arith.subf %96, %99 : vector<1x8x4xf32>
    %101 = math.exp %100 : vector<1x8x4xf32>
    %cst_50 = arith.constant dense<0.000000e+00> : vector<1x8xf32>
    %102 = vector.multi_reduction <add>, %101, %cst_50 [2] : vector<1x8x4xf32> to vector<1x8xf32>
    %103 = vector.shape_cast %102 : vector<1x8xf32> to vector<1x8x1xf32>
    %104 = tpu.reciprocal %103 {approx = true} : vector<1x8x1xf32> -> vector<1x8x1xf32>
    %105 = vector.broadcast %104 : vector<1x8x1xf32> to vector<1x8x4xf32>
    %106 = arith.mulf %101, %105 : vector<1x8x4xf32>
    %107 = vector.shape_cast %106 : vector<1x8x4xf32> to vector<1x8x4x1xf32>
    %108 = vector.broadcast %107 : vector<1x8x4x1xf32> to vector<1x8x4x128xf32>
    %109 = arith.mulf %108, %73 : vector<1x8x4x128xf32>
    %cst_51 = arith.constant dense<0.000000e+00> : vector<1x8x128xf32>
    %110 = vector.multi_reduction <add>, %109, %cst_51 [2] : vector<1x8x4x128xf32> to vector<1x8x128xf32>
    %111 = arith.extf %0 : vector<1x8x128xbf16> to vector<1x8x128xf32>
    %112 = vector.shape_cast %111 : vector<1x8x128xf32> to vector<8x128xf32>
    %113 = arith.truncf %112 : vector<8x128xf32> to vector<8x128xbf16>
    %cst_52 = arith.constant dense<0.000000e+00> : vector<8x128xf32>
    %114 = tpu.matmul %113, %70, %cst_52 {dimension_numbers = #tpu.dot_dimension_numbers<[1], [0], [0], [1], [0, 0, 1, 1], [], []>} : vector<8x128xbf16>, vector<128x128xbf16>, vector<8x128xf32> -> vector<8x128xf32>
    %115 = vector.shape_cast %110 : vector<1x8x128xf32> to vector<8x128xf32>
    %116 = arith.truncf %115 : vector<8x128xf32> to vector<8x128xbf16>
    %cst_53 = arith.constant dense<0.000000e+00> : vector<8x128xf32>
    %117 = tpu.matmul %116, %71, %cst_53 {dimension_numbers = #tpu.dot_dimension_numbers<[1], [0], [0], [1], [0, 0, 1, 1], [], []>} : vector<8x128xbf16>, vector<128x128xbf16>, vector<8x128xf32> -> vector<8x128xf32>
    %118 = arith.addf %114, %117 : vector<8x128xf32>
    %119 = vector.shape_cast %118 : vector<8x128xf32> to vector<1x8x128xf32>
    %cst_54 = arith.constant 0.000000e+00 : f32
    %120 = vector.broadcast %cst_54 : f32 to vector<1x8x128xf32>
    %121 = arith.maximumf %119, %120 : vector<1x8x128xf32>
    %c0_55 = arith.constant 0 : index
    %c0_56 = arith.constant 0 : index
    %122 = vector.load %arg9[%c0_55, %c0_56] : memref<128x128xbf16, #tpu.memory_space<vmem>>, vector<128x128xbf16>
    %c0_57 = arith.constant 0 : index
    %c0_58 = arith.constant 0 : index
    %123 = vector.load %arg10[%c0_57, %c0_58] : memref<1x128xf32, #tpu.memory_space<vmem>>, vector<1x128xf32>
    %c0_59 = arith.constant 0 : index
    %c0_60 = arith.constant 0 : index
    %124 = vector.load %arg11[%c0_59, %c0_60] : memref<1x128xf32, #tpu.memory_space<vmem>>, vector<1x128xf32>
    %c0_61 = arith.constant 0 : index
    %c0_62 = arith.constant 0 : index
    %125 = vector.load %arg12[%c0_61, %c0_62] : memref<128x128xbf16, #tpu.memory_space<vmem>>, vector<128x128xbf16>
    %c0_63 = arith.constant 0 : index
    %c0_64 = arith.constant 0 : index
    %126 = vector.load %arg13[%c0_63, %c0_64] : memref<128x128xbf16, #tpu.memory_space<vmem>>, vector<128x128xbf16>
    %127 = arith.extf %64 : vector<1x128x128xbf16> to vector<1x128x128xf32>
    %128 = vector.shape_cast %127 : vector<1x128x128xf32> to vector<1x32x4x128xf32>
    %129 = vector.shape_cast %62 : vector<1x1x128xbf16> to vector<1x1x1x128xbf16>
    %130 = arith.extf %129 : vector<1x1x1x128xbf16> to vector<1x1x1x128xf32>
    %131 = vector.broadcast %130 : vector<1x1x1x128xf32> to vector<1x32x4x128xf32>
    %132 = arith.mulf %131, %128 : vector<1x32x4x128xf32>
    %133 = vector.shape_cast %132 : vector<1x32x4x128xf32> to vector<128x128xf32>
    %134 = arith.truncf %133 : vector<128x128xf32> to vector<128x128xbf16>
    %cst_65 = arith.constant dense<0.000000e+00> : vector<128x128xf32>
    %135 = tpu.matmul %134, %122, %cst_65 {dimension_numbers = #tpu.dot_dimension_numbers<[1], [0], [0], [1], [0, 0, 1, 1], [], []>} : vector<128x128xbf16>, vector<128x128xbf16>, vector<128x128xf32> -> vector<128x128xf32>
    %136 = vector.shape_cast %135 : vector<128x128xf32> to vector<1x32x4x128xf32>
    %137 = vector.shape_cast %66 : vector<1x32x4xf32> to vector<1x32x4x1xf32>
    %138 = vector.shape_cast %123 : vector<1x128xf32> to vector<1x1x1x128xf32>
    %139 = vector.broadcast %137 : vector<1x32x4x1xf32> to vector<1x32x4x128xf32>
    %140 = vector.broadcast %138 : vector<1x1x1x128xf32> to vector<1x32x4x128xf32>
    %141 = arith.mulf %139, %140 : vector<1x32x4x128xf32>
    %142 = arith.addf %136, %141 : vector<1x32x4x128xf32>
    %cst_66 = arith.constant 0.000000e+00 : f32
    %143 = vector.broadcast %cst_66 : f32 to vector<1x32x4x128xf32>
    %144 = arith.cmpf oge, %142, %143 : vector<1x32x4x128xf32>
    %cst_67 = arith.constant 2.000000e-01 : f32
    %145 = vector.broadcast %cst_67 : f32 to vector<1x32x4x128xf32>
    %146 = arith.mulf %145, %142 : vector<1x32x4x128xf32>
    %147 = arith.select %144, %142, %146 : vector<1x32x4x128xi1>, vector<1x32x4x128xf32>
    %148 = vector.shape_cast %124 : vector<1x128xf32> to vector<1x1x1x128xf32>
    %149 = vector.broadcast %148 : vector<1x1x1x128xf32> to vector<1x32x4x128xf32>
    %150 = arith.mulf %147, %149 : vector<1x32x4x128xf32>
    %cst_68 = arith.constant dense<0.000000e+00> : vector<1x32x4xf32>
    %151 = vector.multi_reduction <add>, %150, %cst_68 [3] : vector<1x32x4x128xf32> to vector<1x32x4xf32>
    %cst_69 = arith.constant dense<0xFF800000> : vector<1x32xf32>
    %152 = vector.multi_reduction <maximumf>, %151, %cst_69 [2] : vector<1x32x4xf32> to vector<1x32xf32>
    %153 = vector.shape_cast %152 : vector<1x32xf32> to vector<1x32x1xf32>
    %154 = vector.broadcast %153 : vector<1x32x1xf32> to vector<1x32x4xf32>
    %155 = arith.subf %151, %154 : vector<1x32x4xf32>
    %156 = math.exp %155 : vector<1x32x4xf32>
    %cst_70 = arith.constant dense<0.000000e+00> : vector<1x32xf32>
    %157 = vector.multi_reduction <add>, %156, %cst_70 [2] : vector<1x32x4xf32> to vector<1x32xf32>
    %158 = vector.shape_cast %157 : vector<1x32xf32> to vector<1x32x1xf32>
    %159 = tpu.reciprocal %158 {approx = true} : vector<1x32x1xf32> -> vector<1x32x1xf32>
    %160 = vector.broadcast %159 : vector<1x32x1xf32> to vector<1x32x4xf32>
    %161 = arith.mulf %156, %160 : vector<1x32x4xf32>
    %162 = vector.shape_cast %161 : vector<1x32x4xf32> to vector<1x32x4x1xf32>
    %163 = vector.broadcast %162 : vector<1x32x4x1xf32> to vector<1x32x4x128xf32>
    %164 = arith.mulf %163, %128 : vector<1x32x4x128xf32>
    %cst_71 = arith.constant dense<0.000000e+00> : vector<1x32x128xf32>
    %165 = vector.multi_reduction <add>, %164, %cst_71 [2] : vector<1x32x4x128xf32> to vector<1x32x128xf32>
    %166 = arith.extf %63 : vector<1x32x128xbf16> to vector<1x32x128xf32>
    %167 = vector.shape_cast %166 : vector<1x32x128xf32> to vector<32x128xf32>
    %168 = arith.truncf %167 : vector<32x128xf32> to vector<32x128xbf16>
    %cst_72 = arith.constant dense<0.000000e+00> : vector<32x128xf32>
    %169 = tpu.matmul %168, %125, %cst_72 {dimension_numbers = #tpu.dot_dimension_numbers<[1], [0], [0], [1], [0, 0, 1, 1], [], []>} : vector<32x128xbf16>, vector<128x128xbf16>, vector<32x128xf32> -> vector<32x128xf32>
    %170 = vector.shape_cast %165 : vector<1x32x128xf32> to vector<32x128xf32>
    %171 = arith.truncf %170 : vector<32x128xf32> to vector<32x128xbf16>
    %cst_73 = arith.constant dense<0.000000e+00> : vector<32x128xf32>
    %172 = tpu.matmul %171, %126, %cst_73 {dimension_numbers = #tpu.dot_dimension_numbers<[1], [0], [0], [1], [0, 0, 1, 1], [], []>} : vector<32x128xbf16>, vector<128x128xbf16>, vector<32x128xf32> -> vector<32x128xf32>
    %173 = arith.addf %169, %172 : vector<32x128xf32>
    %174 = vector.shape_cast %173 : vector<32x128xf32> to vector<1x32x128xf32>
    %cst_74 = arith.constant 0.000000e+00 : f32
    %175 = vector.broadcast %cst_74 : f32 to vector<1x32x128xf32>
    %176 = arith.maximumf %174, %175 : vector<1x32x128xf32>
    %c0_75 = arith.constant 0 : index
    %c0_76 = arith.constant 0 : index
    %177 = vector.load %arg14[%c0_75, %c0_76] : memref<128x128xbf16, #tpu.memory_space<vmem>>, vector<128x128xbf16>
    %c0_77 = arith.constant 0 : index
    %c0_78 = arith.constant 0 : index
    %178 = vector.load %arg15[%c0_77, %c0_78] : memref<1x128xf32, #tpu.memory_space<vmem>>, vector<1x128xf32>
    %c0_79 = arith.constant 0 : index
    %c0_80 = arith.constant 0 : index
    %179 = vector.load %arg16[%c0_79, %c0_80] : memref<1x128xf32, #tpu.memory_space<vmem>>, vector<1x128xf32>
    %c0_81 = arith.constant 0 : index
    %c0_82 = arith.constant 0 : index
    %180 = vector.load %arg17[%c0_81, %c0_82] : memref<128x128xbf16, #tpu.memory_space<vmem>>, vector<128x128xbf16>
    %c0_83 = arith.constant 0 : index
    %c0_84 = arith.constant 0 : index
    %181 = vector.load %arg18[%c0_83, %c0_84] : memref<128x128xbf16, #tpu.memory_space<vmem>>, vector<128x128xbf16>
    %182 = vector.shape_cast %176 : vector<1x32x128xf32> to vector<1x8x4x128xf32>
    %183 = vector.shape_cast %62 : vector<1x1x128xbf16> to vector<1x1x1x128xbf16>
    %184 = arith.extf %183 : vector<1x1x1x128xbf16> to vector<1x1x1x128xf32>
    %185 = vector.broadcast %184 : vector<1x1x1x128xf32> to vector<1x8x4x128xf32>
    %186 = arith.mulf %185, %182 : vector<1x8x4x128xf32>
    %187 = vector.shape_cast %186 : vector<1x8x4x128xf32> to vector<32x128xf32>
    %188 = arith.truncf %187 : vector<32x128xf32> to vector<32x128xbf16>
    %cst_85 = arith.constant dense<0.000000e+00> : vector<32x128xf32>
    %189 = tpu.matmul %188, %177, %cst_85 {dimension_numbers = #tpu.dot_dimension_numbers<[1], [0], [0], [1], [0, 0, 1, 1], [], []>} : vector<32x128xbf16>, vector<128x128xbf16>, vector<32x128xf32> -> vector<32x128xf32>
    %190 = vector.shape_cast %189 : vector<32x128xf32> to vector<1x8x4x128xf32>
    %191 = vector.shape_cast %65 : vector<1x8x4xf32> to vector<1x8x4x1xf32>
    %192 = vector.shape_cast %178 : vector<1x128xf32> to vector<1x1x1x128xf32>
    %193 = vector.broadcast %191 : vector<1x8x4x1xf32> to vector<1x8x4x128xf32>
    %194 = vector.broadcast %192 : vector<1x1x1x128xf32> to vector<1x8x4x128xf32>
    %195 = arith.mulf %193, %194 : vector<1x8x4x128xf32>
    %196 = arith.addf %190, %195 : vector<1x8x4x128xf32>
    %cst_86 = arith.constant 0.000000e+00 : f32
    %197 = vector.broadcast %cst_86 : f32 to vector<1x8x4x128xf32>
    %198 = arith.cmpf oge, %196, %197 : vector<1x8x4x128xf32>
    %cst_87 = arith.constant 2.000000e-01 : f32
    %199 = vector.broadcast %cst_87 : f32 to vector<1x8x4x128xf32>
    %200 = arith.mulf %199, %196 : vector<1x8x4x128xf32>
    %201 = arith.select %198, %196, %200 : vector<1x8x4x128xi1>, vector<1x8x4x128xf32>
    %202 = vector.shape_cast %179 : vector<1x128xf32> to vector<1x1x1x128xf32>
    %203 = vector.broadcast %202 : vector<1x1x1x128xf32> to vector<1x8x4x128xf32>
    %204 = arith.mulf %201, %203 : vector<1x8x4x128xf32>
    %cst_88 = arith.constant dense<0.000000e+00> : vector<1x8x4xf32>
    %205 = vector.multi_reduction <add>, %204, %cst_88 [3] : vector<1x8x4x128xf32> to vector<1x8x4xf32>
    %cst_89 = arith.constant dense<0xFF800000> : vector<1x8xf32>
    %206 = vector.multi_reduction <maximumf>, %205, %cst_89 [2] : vector<1x8x4xf32> to vector<1x8xf32>
    %207 = vector.shape_cast %206 : vector<1x8xf32> to vector<1x8x1xf32>
    %208 = vector.broadcast %207 : vector<1x8x1xf32> to vector<1x8x4xf32>
    %209 = arith.subf %205, %208 : vector<1x8x4xf32>
    %210 = math.exp %209 : vector<1x8x4xf32>
    %cst_90 = arith.constant dense<0.000000e+00> : vector<1x8xf32>
    %211 = vector.multi_reduction <add>, %210, %cst_90 [2] : vector<1x8x4xf32> to vector<1x8xf32>
    %212 = vector.shape_cast %211 : vector<1x8xf32> to vector<1x8x1xf32>
    %213 = tpu.reciprocal %212 {approx = true} : vector<1x8x1xf32> -> vector<1x8x1xf32>
    %214 = vector.broadcast %213 : vector<1x8x1xf32> to vector<1x8x4xf32>
    %215 = arith.mulf %210, %214 : vector<1x8x4xf32>
    %216 = vector.shape_cast %215 : vector<1x8x4xf32> to vector<1x8x4x1xf32>
    %217 = vector.broadcast %216 : vector<1x8x4x1xf32> to vector<1x8x4x128xf32>
    %218 = arith.mulf %217, %182 : vector<1x8x4x128xf32>
    %cst_91 = arith.constant dense<0.000000e+00> : vector<1x8x128xf32>
    %219 = vector.multi_reduction <add>, %218, %cst_91 [2] : vector<1x8x4x128xf32> to vector<1x8x128xf32>
    %220 = vector.shape_cast %121 : vector<1x8x128xf32> to vector<8x128xf32>
    %221 = arith.truncf %220 : vector<8x128xf32> to vector<8x128xbf16>
    %cst_92 = arith.constant dense<0.000000e+00> : vector<8x128xf32>
    %222 = tpu.matmul %221, %180, %cst_92 {dimension_numbers = #tpu.dot_dimension_numbers<[1], [0], [0], [1], [0, 0, 1, 1], [], []>} : vector<8x128xbf16>, vector<128x128xbf16>, vector<8x128xf32> -> vector<8x128xf32>
    %223 = vector.shape_cast %219 : vector<1x8x128xf32> to vector<8x128xf32>
    %224 = arith.truncf %223 : vector<8x128xf32> to vector<8x128xbf16>
    %cst_93 = arith.constant dense<0.000000e+00> : vector<8x128xf32>
    %225 = tpu.matmul %224, %181, %cst_93 {dimension_numbers = #tpu.dot_dimension_numbers<[1], [0], [0], [1], [0, 0, 1, 1], [], []>} : vector<8x128xbf16>, vector<128x128xbf16>, vector<8x128xf32> -> vector<8x128xf32>
    %226 = arith.addf %222, %225 : vector<8x128xf32>
    %227 = vector.shape_cast %226 : vector<8x128xf32> to vector<1x8x128xf32>
    %cst_94 = arith.constant 0.000000e+00 : f32
    %228 = vector.broadcast %cst_94 : f32 to vector<1x8x128xf32>
    %229 = arith.maximumf %227, %228 : vector<1x8x128xf32>
    %230 = arith.addf %61, %229 : vector<1x8x128xf32>
    %c0_95 = arith.constant 0 : index
    %c0_96 = arith.constant 0 : index
    %c0_97 = arith.constant 0 : index
    %231 = vector.load %arg19[%c0_95, %c0_96, %c0_97] : memref<1x8x128xf32, #tpu.memory_space<vmem>>, vector<1x8x128xf32>
    tpu.vector_store %arg19[%c0_95, %c0_96, %c0_97], %230 {strides = array<i32>} : memref<1x8x128xf32, #tpu.memory_space<vmem>>, vector<1x8x128xf32>,
    return
  }
  func.func @transform_0(%arg0: i32) -> (i32, i32, i32) {
    %c0_i32 = arith.constant 0 : i32
    %c0_i32_0 = arith.constant 0 : i32
    %c0_i32_1 = arith.constant 0 : i32
    return %arg0, %c0_i32, %c0_i32_0 : i32, i32, i32
  }
  func.func @transform_1(%arg0: i32) -> (i32, i32, i32) {
    %c0_i32 = arith.constant 0 : i32
    %c0_i32_0 = arith.constant 0 : i32
    %c0_i32_1 = arith.constant 0 : i32
    return %arg0, %c0_i32, %c0_i32_0 : i32, i32, i32
  }
  func.func @transform_2(%arg0: i32) -> (i32, i32, i32) {
    %c0_i32 = arith.constant 0 : i32
    %c0_i32_0 = arith.constant 0 : i32
    %c0_i32_1 = arith.constant 0 : i32
    return %arg0, %c0_i32, %c0_i32_0 : i32, i32, i32
  }
  func.func @transform_3(%arg0: i32) -> (i32, i32, i32) {
    %c0_i32 = arith.constant 0 : i32
    %c0_i32_0 = arith.constant 0 : i32
    %c0_i32_1 = arith.constant 0 : i32
    return %arg0, %c0_i32, %c0_i32_0 : i32, i32, i32
  }
  func.func @transform_4(%arg0: i32) -> (i32, i32, i32) {
    %c0_i32 = arith.constant 0 : i32
    %c0_i32_0 = arith.constant 0 : i32
    %c0_i32_1 = arith.constant 0 : i32
    return %arg0, %c0_i32, %c0_i32_0 : i32, i32, i32
  }
  func.func @transform_5(%arg0: i32) -> (i32, i32, i32) {
    %c0_i32 = arith.constant 0 : i32
    %c0_i32_0 = arith.constant 0 : i32
    %c0_i32_1 = arith.constant 0 : i32
    return %arg0, %c0_i32, %c0_i32_0 : i32, i32, i32
  }
  func.func @transform_6(%arg0: i32) -> (i32, i32, i32) {
    %c0_i32 = arith.constant 0 : i32
    %c0_i32_0 = arith.constant 0 : i32
    %c0_i32_1 = arith.constant 0 : i32
    return %arg0, %c0_i32, %c0_i32_0 : i32, i32, i32
  }
  func.func @transform_7(%arg0: i32) -> (i32, i32) {
    %c0_i32 = arith.constant 0 : i32
    %c0_i32_0 = arith.constant 0 : i32
    %c0_i32_1 = arith.constant 0 : i32
    return %c0_i32, %c0_i32_0 : i32, i32
  }
  func.func @transform_8(%arg0: i32) -> (i32, i32) {
    %c0_i32 = arith.constant 0 : i32
    %c0_i32_0 = arith.constant 0 : i32
    %c0_i32_1 = arith.constant 0 : i32
    return %c0_i32, %c0_i32_0 : i32, i32
  }
  func.func @transform_9(%arg0: i32) -> (i32, i32) {
    %c0_i32 = arith.constant 0 : i32
    %c0_i32_0 = arith.constant 0 : i32
    %c0_i32_1 = arith.constant 0 : i32
    return %c0_i32, %c0_i32_0 : i32, i32
  }
  func.func @transform_10(%arg0: i32) -> (i32, i32) {
    %c0_i32 = arith.constant 0 : i32
    %c0_i32_0 = arith.constant 0 : i32
    %c0_i32_1 = arith.constant 0 : i32
    return %c0_i32, %c0_i32_0 : i32, i32
  }
  func.func @transform_11(%arg0: i32) -> (i32, i32) {
    %c0_i32 = arith.constant 0 : i32
    %c0_i32_0 = arith.constant 0 : i32
    %c0_i32_1 = arith.constant 0 : i32
    return %c0_i32, %c0_i32_0 : i32, i32
  }
  func.func @transform_12(%arg0: i32) -> (i32, i32) {
    %c0_i32 = arith.constant 0 : i32
    %c0_i32_0 = arith.constant 0 : i32
    %c0_i32_1 = arith.constant 0 : i32
    return %c0_i32, %c0_i32_0 : i32, i32
  }
  func.func @transform_13(%arg0: i32) -> (i32, i32) {
    %c0_i32 = arith.constant 0 : i32
    %c0_i32_0 = arith.constant 0 : i32
    %c0_i32_1 = arith.constant 0 : i32
    return %c0_i32, %c0_i32_0 : i32, i32
  }
  func.func @transform_14(%arg0: i32) -> (i32, i32) {
    %c0_i32 = arith.constant 0 : i32
    %c0_i32_0 = arith.constant 0 : i32
    %c0_i32_1 = arith.constant 0 : i32
    return %c0_i32, %c0_i32_0 : i32, i32
  }
  func.func @transform_15(%arg0: i32) -> (i32, i32) {
    %c0_i32 = arith.constant 0 : i32
    %c0_i32_0 = arith.constant 0 : i32
    %c0_i32_1 = arith.constant 0 : i32
    return %c0_i32, %c0_i32_0 : i32, i32
  }
  func.func @transform_16(%arg0: i32) -> (i32, i32) {
    %c0_i32 = arith.constant 0 : i32
    %c0_i32_0 = arith.constant 0 : i32
    %c0_i32_1 = arith.constant 0 : i32
    return %c0_i32, %c0_i32_0 : i32, i32
  }
  func.func @transform_17(%arg0: i32) -> (i32, i32) {
    %c0_i32 = arith.constant 0 : i32
    %c0_i32_0 = arith.constant 0 : i32
    %c0_i32_1 = arith.constant 0 : i32
    return %c0_i32, %c0_i32_0 : i32, i32
  }
  func.func @transform_18(%arg0: i32) -> (i32, i32, i32) {
    %c0_i32 = arith.constant 0 : i32
    %c0_i32_0 = arith.constant 0 : i32
    %c0_i32_1 = arith.constant 0 : i32
    return %arg0, %c0_i32, %c0_i32_0 : i32, i32, i32
  }
}

</mosaic_0001>

<bundles_post_ra>
// kernel: combine_graph_forward.1
= control target key start
LH: loop header
LB: loop body
LE: loop exit
PB: predicated region body
PF: predicated region fallthrough
CT: control target
= control target key end

     0   :  { %s7884_s0 = inlined_call_operand.vmem [shape: bf16[2,8,128], index: 0, kind: input, shape index: {}]   ;;  %s7885_s1 = inlined_call_operand.vmem [shape: bf16[2,32,128], index: 1, kind: input, shape index: {}]   ;;  %s7886_s2 = inlined_call_operand.vmem [shape: bf16[2,128,128], index: 2, kind: input, shape index: {}]   ;;  %s7887_s3 = inlined_call_operand.vmem [shape: s32[2,8,8], index: 3, kind: input, shape index: {}]   ;;  %s7888_s4 = inlined_call_operand.vmem [shape: f32[2,8,4], index: 4, kind: input, shape index: {}]   ;;  %s7889_s5 = inlined_call_operand.vmem [shape: f32[2,32,4], index: 5, kind: input, shape index: {}]   ;;  %s7890_s6 = inlined_call_operand.vmem [shape: bf16[2,1,128], index: 6, kind: input, shape index: {}]   ;;  %s7891_s7 = inlined_call_operand.vmem [shape: bf16[4,128], index: 7, kind: input, shape index: {}]   ;;  %s7892_s8 = inlined_call_operand.vmem [shape: bf16[128,128], index: 8, kind: input, shape index: {}]   ;;  %s7893_s9 = inlined_call_operand.vmem [shape: f32[1,128], index: 9, kind: input, shape index: {}]   ;;  %s7894_s10 = inlined_call_operand.vmem [shape: f32[1,128], index: 10, kind: input, shape index: {}]   ;;  %s7895_s11 = inlined_call_operand.vmem [shape: bf16[128,128], index: 11, kind: input, shape index: {}]   ;;  %s7896_s12 = inlined_call_operand.vmem [shape: bf16[128,128], index: 12, kind: input, shape index: {}]   ;;  %s7897_s13 = inlined_call_operand.vmem [shape: bf16[128,128], index: 13, kind: input, shape index: {}]   ;;  %s7898_s14 = inlined_call_operand.vmem [shape: f32[1,128], index: 14, kind: input, shape index: {}]   ;;  %s7899_s15 = inlined_call_operand.vmem [shape: f32[1,128], index: 15, kind: input, shape index: {}]   ;;  %s7900_s16 = inlined_call_operand.vmem [shape: bf16[128,128], index: 16, kind: input, shape index: {}]   ;;  %s7901_s17 = inlined_call_operand.vmem [shape: bf16[128,128], index: 17, kind: input, shape index: {}]   ;;  %s7902_s18 = inlined_call_operand.hbm [shape: f32[2,8,128], index: 18, kind: output, shape index: {}]  }
   0x1   :  { %7956 = sst [smem:[#allocation55_spill]] %s7884_s0 }
   0x2   :  { %7957 = sst [smem:[#allocation56_spill]] %s7885_s1 }
   0x3   :  { %7958 = sst [smem:[#allocation57_spill]] %s7886_s2 }
   0x4   :  { %23 = vsyncpa [#allocation3], 0 }
   0x5   :  { %25 = vsyncpa [#allocation3 + $0x1], 0  ;;  %s6031_s27 = smov 0   ;;  %s6033_s28 = smov 0  }
   0x6   :  { %s6035_s29 = smov 0   ;;  %s6037_s30 = smov 0  }
   0x7 LB: > { %7959 = sst [smem:[#allocation5_spill]] %s5917_s27  ;;  %s6052_s0 = sadd.s32 4294967295, %s5929_s30   ;;  %s5929_s30 = sphi %s6037_s30, %s8074_s30   ;;  %s5925_s29 = sphi %s6035_s29, %s8076_s29   ;;  %s5921_s28 = sphi %s6033_s28, %s8078_s28   ;;  %s5917_s27 = sphi %s6031_s27, %s8077_s27  }
   0x8   : > { %7960 = sst [smem:[#allocation6_spill]] %s5925_s29  ;;  %s5228_s19 = sadd.s32 4294967294, %s5929_s30  }
   0x9   : > { %7961 = sst [smem:[#allocation7_spill]] %s5929_s30  ;;  %s6056_s1 = sadd.s32 1, %s5929_s30  }
   0xa   : > { %7962 = sst [smem:[#allocation8_spill]] %s6056_s1  ;;  %s451_s20 = sadd.s32 1, %s5925_s29 }
   0xb   : > { %s448_s21 = ssub.s32 %s5929_s30, %s6056_s1  ;;  %p461_p0 = scmp.ne.s32.totalorder %s5925_s29, %s5921_s28 }
   0xc   : > { %p449_p1 = scmp.eq.s32.totalorder %s448_s21, 0  ;;  %p462_p2 = scmp.eq.s32.totalorder %s6052_s0, 1 }
   0xd   : > { %p467_p3 = scmp.ne.s32.totalorder %s5921_s28, %s5917_s27  ;;  %p468_p4 = scmp.eq.s32.totalorder %s5228_s19, 1 }
   0xe   : > { %s6067_s22 = scalar_select %p449_p1, %s5925_s29, %s451_s20  }
   0xf   : > { %p6069_p5 = por %p462_p2, %p461_p0  ;;  %p6073_p6 = por %p468_p4, %p467_p3 }
  0x10   : > { %7963 = sst [smem:[#allocation9_spill]] %s6067_s22  ;;  %p5231_p7 = scmp.ge.s32.totalorder %s5929_s30, 1 }
  0x11   : > { %s7965_s23 = scalar_select %p6073_p6, 1, 0 }
  0x12   : > { %p570_p8 = scmp.lt.s32.totalorder %s5929_s30, 3 }
  0x13   : > { %7966 = sst [smem:[#allocation10_spill]] %s7965_s23 }
  0x14   : > { %p571_p9 = pnand %p5231_p7, %p570_p8 }
  0x16   : > { %574 = sbr.rel (%p571_p9) target bundleno = 3596 (0xe0c), region = 92 }
  0x1b   : > { %v6082_v0 = vld [vmem:[%s7892_s8 + $0x38] sm:$0xff]   ;;  %p649_p10 = scmp.lt.s32.totalorder %s6052_s0, 1  ;;  %v689_v1 = vlaneseq  ;;  %v5691_v2 = vld [vmem:[%s7892_s8 + $0x30] sm:$0xff]   ;;  %v5692_v4 = vld [vmem:[%s7892_s8 + $0x28] sm:$0xff]   ;;  %s7967_s22 = sld [smem:[#allocation56_spill]]  ;;  %vm1174_vm4 = vcmask 1043456  }
  0x1c   : > { %5447 = vmatprep.subr.bf16.mxu1 %v6082_v0  ;;  %v5693_v6 = vld [vmem:[%s7892_s8 + $0x20] sm:$0xff]   ;;  %v5694_v16 = vld [vmem:[%s7892_s8 + $0x18] sm:$0xff]   ;;  %v5695_v30 = vld [vmem:[%s7892_s8 + $0x10] sm:$0xff]   ;;  %vm1241_vm9 = vcmask 1041409   ;;  %vm1243_vm10 = vcmask 1042434   ;;  %vm1245_vm11 = vcmask 1043459  }
  0x1d   : > { %s6090_s20 = scalar_select %p649_p10, %s6052_s0, 1  ;;  %5448 = vmatpush3.bf16.msra.mxu1 %v6082_v0  ;;  %v6094_v3 = vshrl.u32 %v689_v1, 7  ;;  %v5696_v43 = vld [vmem:[%s7892_s8 + $0x8] sm:$0xff]   ;;  %v5697_v50 = vld [vmem:[%s7892_s8] sm:$0xff]   ;;  %vm1247_vm12 = vcmask 1044484   ;;  %vm1249_vm13 = vcmask 1045509  }
  0x1e   : > { %5449 = vmatprep.subr.bf16.mxu1 %v5691_v2  ;;  %v5250_v59 = vld [vmem:[%s7893_s9] ss:$0 sm:$0xff]  ;;  %vm1251_vm14 = vcmask 1046534   ;;  %vm1253_vm15 = vcmask 1047559   ;;  %s5299_s26 = sshll.u32 %s6052_s0, 7 }
  0x1f   : > { %s5302_s25 = sshll.u32 %s6090_s20, 4  ;;  %s678_s27 = scalar_lea.vmem %s7890_s6, %s6090_s20  ;;  %v6110_v5 = vsub.s32 0, %v6094_v3  ;;  %v6123_v9 = vsub.s32 2, %v6094_v3  ;;  %v6126_v10 = vsub.s32 1, %v6094_v3  ;;  %v6151_v23 = vsub.s32 3, %v6094_v3 }
  0x20   : > { %s5238_s30 = sshll.u32 %s6090_s20, 3  ;;  %v826_v7 = vld [vmem:[%s678_s27] sm:$0x1]  ;;  %v6154_v24 = vsub.s32 4, %v6094_v3  ;;  %v6157_v25 = vsub.s32 5, %v6094_v3  ;;  %v6177_v37 = vsub.s32 6, %v6094_v3 }
  0x21   : > { %s6103_s29 = scalar_lea.vmem %s7967_s22, %s5302_s25  ;;  %5450 = vmatpush3.bf16.msra.mxu1 %v5691_v2  ;;  %s670_s1 = scalar_lea.vmem %s7888_s4, %s5238_s30  ;;  %v918_v13 = vunpack.c.l.bf16 %v826_v7  ;;  %v6181_v40 = vsub.s32 7, %v6094_v3 }
  0x22   : > { %5451 = vmatprep.subr.bf16.mxu1 %v5692_v4  ;;  %v827_v8 = vld [vmem:[%s6103_s29] sm:$0xff]   ;;  %v829_v14 = vld [vmem:[%s6103_s29 + $0x8] sm:$0xff]   ;;  %s5233_s19 = sshll.u32 %s6090_s20, 2  ;;  %s7977_s22 = sld [smem:[#allocation55_spill]] }
  0x23   : > { %v6128_v11 = vunpack.c.l.bf16 %v827_v8  ;;  %v6130_v12 = vunpack.c.h.bf16 %v827_v8  ;;  %v847_v15 = vld [vmem:[%s670_s1] sm:$0xff]  ;;  %v6147_v21 = vrot.slane %v918_v13, %v6110_v5  ;;  %v6170_v31 = vunpack.c.l.bf16 %v829_v14  ;;  %s5304_s23 = sshll.u32 %s6090_s20, 5  ;;  %s5303_s24 = sshll.u32 %s6090_s20, 6 }
  0x24   : > { %v1061_v17 = vrot.slane %v847_v15, %v6110_v5  ;;  %v1075_v18 = vrot.slane %v847_v15, %v6123_v9  ;;  %v1068_v22 = vrot.slane %v847_v15, %v6126_v10  ;;  %v6172_v32 = vunpack.c.h.bf16 %v829_v14  ;;  %s675_s21 = scalar_lea.vmem %s7889_s5, %s5304_s23  ;;  %s7978_s27 = sld [smem:[#allocation57_spill]] }
  0x25   : > { %5452 = vmatpush3.bf16.msra.mxu1 %v5692_v4  ;;  %v6140_v19 = vcombine.high %v6128_v11, %v6128_v11  ;;  %v6144_v20 = vcombine.high %v6130_v12, %v6130_v12  ;;  %7968 = vst [vmem:[#allocation11_spill] sm:$0xff] %v6147_v21  ;;  %v923_v26 = vmul.f32 %v6147_v21, %v6128_v11  ;;  %s5935_s20 = smov [#allocation2]  }
  0x26   : > { %5453 = vmatprep.subr.bf16.mxu1 %v5693_v6  ;;  %1063 = vbcast.lane.b32.xlu0 %v1061_v17, 256  ;;  %v925_v28 = vmul.f32 %v6147_v21, %v6130_v12  ;;  %v1082_v35 = vrot.slane %v847_v15, %v6151_v23  ;;  %v1089_v36 = vrot.slane %v847_v15, %v6154_v24 }
  0x27   : > { %v924_v27 = vmul.f32 %v6147_v21, %v6140_v19  ;;  %v926_v29 = vmul.f32 %v6147_v21, %v6144_v20  ;;  %1077 = vbcast.lane.b32.xlu1 %v1075_v18, 256  ;;  %v1096_v39 = vrot.slane %v847_v15, %v6157_v25  ;;  %v6185_v41 = vcombine.high %v6170_v31, %v6170_v31 }
  0x28   : > { %v6189_v42 = vcombine.high %v6172_v32, %v6172_v32  ;;  %v1103_v44 = vrot.slane %v847_v15, %v6177_v37  ;;  %v1110_v45 = vrot.slane %v847_v15, %v6181_v40  ;;  %v927_v46 = vmul.f32 %v6147_v21, %v6170_v31  ;;  %s6317_s25 = scalar_lea.vmem %s7977_s22, %s5233_s19  ;;  %s5873_s22 = sshll.u32 %s5935_s20, 4  ;;  %s5874_s22 = int_to_ptr.vmem [resolvable:$false] %s5873_s22 }
  0x29   : > { %5454 = vmatpush3.bf16.msra.mxu1 %v5693_v6  ;;  %v939_v33 = vcombine.low %v923_v26, %v924_v27  ;;  %v940_v34 = vcombine.low %v925_v28, %v926_v29  ;;  %v928_v47 = vmul.f32 %v6147_v21, %v6185_v41  ;;  %v929_v48 = vmul.f32 %v6147_v21, %v6172_v32  ;;  %s5875_s1 = scalar_lea.vmem %s5874_s22, 256 }
  0x2a   : > { %5455 = vmatprep.subr.bf16.mxu1 %v5694_v16  ;;  %1070 = vbcast.lane.b32.xlu0 %v1068_v22, 256  ;;  %v930_v49 = vmul.f32 %v6147_v21, %v6189_v42  ;;  %s6516_s23 = scalar_lea.vmem %s7978_s27, %s5303_s24  ;;  %s6761_s24 = scalar_lea.vmem %s7887_s3, %s5238_s30 }
  0x2b   : > { %v947_v38 = vpack.c.bf16 %v940_v34, %v939_v33  ;;  %1084 = vbcast.lane.b32.xlu1 %v1082_v35, 256  ;;  %v941_v51 = vcombine.low %v927_v46, %v928_v47 }
  0x2c   : > { %v942_v52 = vcombine.low %v929_v48, %v930_v49 }
  0x2d   : > { %5456 = vmatpush3.bf16.msra.mxu1 %v5694_v16  ;;  %5463 = vmatprep.mubr.bf16.mxu1 %v947_v38 }
  0x2e   : > { %5457 = vmatprep.subr.bf16.mxu1 %v5695_v30  ;;  %1091 = vbcast.lane.b32.xlu0 %v1089_v36, 256  ;;  %v948_v53 = vpack.c.bf16 %v942_v52, %v941_v51 }
  0x2f   : > { %1098 = vbcast.lane.b32.xlu1 %v1096_v39, 256 }
  0x31   : > { %5458 = vmatpush3.bf16.msra.mxu1 %v5695_v30 }
  0x32   : > { %5459 = vmatprep.subr.bf16.mxu1 %v5696_v43  ;;  %1105 = vbcast.lane.b32.xlu0 %v1103_v44, 256  ;;  %v5251_v44 = vld [vmem:[%s7894_s10] ss:$0 sm:$0xff] }
  0x33   : > { %1112 = vbcast.lane.b32.xlu1 %v1110_v45, 256 }
  0x35   : > { %5460 = vmatpush3.bf16.msra.mxu1 %v5696_v43 }
  0x36   : > { %5461 = vmatprep.subr.bf16.mxu1 %v5697_v50 }
  0x39   : > { %5462 = vmatpush3.bf16.msra.mxu1 %v5697_v50 }
  0x3c   : > { %5464 = vmatmul.mubr.bf16.vlgmr.msra.gmra.mxu1 %v948_v53 }
  0x98   : > { %v6207_v54 = vpop.permute.xlu0 %1063 }
  0x99   : > { %7969 = vst [vmem:[#allocation12_spill] sm:$0xff] %v6207_v54  ;;  %v6209_v55 = vpop.permute.xlu1 %1077  ;;  %v1120_v62 = vmul.f32 %v5250_v59, %v6207_v54 }
  0x9a   : > { %7970 = vst [vmem:[#allocation13_spill] sm:$0xff] %v6209_v55  ;;  %v1122_v22 = vmul.f32 %v5250_v59, %v6209_v55 }
  0x9c   : > { %v6211_v56 = vpop.permute.xlu0 %1070 }
  0x9d   : > { %7971 = vst [vmem:[#allocation14_spill] sm:$0xff] %v6211_v56  ;;  %v6213_v57 = vpop.permute.xlu1 %1084  ;;  %v1121_v6 = vmul.f32 %v5250_v59, %v6211_v56 }
  0x9e   : > { %7972 = vst [vmem:[#allocation15_spill] sm:$0xff] %v6213_v57  ;;  %v1123_v26 = vmul.f32 %v5250_v59, %v6213_v57 }
  0xa0   : > { %v6215_v58 = vpop.permute.xlu0 %1091 }
  0xa1   : > { %7973 = vst [vmem:[#allocation16_spill] sm:$0xff] %v6215_v58  ;;  %v6220_v60 = vpop.permute.xlu1 %1098  ;;  %v1124_v61 = vmul.f32 %v5250_v59, %v6215_v58 }
  0xa2   : > { %7974 = vst [vmem:[#allocation17_spill] sm:$0xff] %v6220_v60  ;;  %v1125_v63 = vmul.f32 %v5250_v59, %v6220_v60 }
  0xa4   : > { %v6225_v2 = vpop.permute.xlu0 %1105 }
  0xa5   : > { %7975 = vst [vmem:[#allocation18_spill] sm:$0xff] %v6225_v2  ;;  %v1126_v13 = vmul.f32 %v5250_v59, %v6225_v2  ;;  %v6229_v15 = vpop.permute.xlu1 %1112 }
  0xa6   : > { %7976 = vst [vmem:[#allocation19_spill] sm:$0xff] %v6229_v15  ;;  %v1127_v33 = vmul.f32 %v5250_v59, %v6229_v15 }
  0xfc   : > { %v5465_v4 = vpop.f32.mrf.mxu1 }
  0xfd   : > { %v1052_v7 = vcombine.high %v5465_v4, %v5465_v4  ;;  %v1132_v8 = vadd.f32 %v5465_v4, %v1124_v61 }
  0xfe   : > { %v1031_v14 = vpop.f32.mrf.mxu1 }
  0xff   : > { %v1133_v16 = vadd.f32 %v1125_v63, %v1052_v7  ;;  %v1050_v17 = vcombine.high %v1031_v14, %v1031_v14  ;;  %v1128_v18 = vadd.f32 %v1120_v62, %v1031_v14  ;;  %v1148_v28 = vmul.f32 0.2, %v1132_v8 }
 0x100   : > { %v5466_v27 = vpop.f32.mrf.mxu1  ;;  %vm1140_vm2 = vcmp.ge.f32.partialorder %v1132_v8, 0.0 }
 0x101   : > { %v1129_v29 = vadd.f32 %v1121_v6, %v1050_v17  ;;  %v1144_v30 = vmul.f32 0.2, %v1128_v18  ;;  %v1134_v34 = vadd.f32 %v5466_v27, %v1126_v13  ;;  %vm1136_vm0 = vcmp.ge.f32.partialorder %v1128_v18, 0.0 }
 0x102   : > { %v1034_v35 = vpop.f32.mrf.mxu1  ;;  %vm1141_vm1 = vcmp.ge.f32.partialorder %v1133_v16, 0.0  ;;  %v1149_v36 = vmul.f32 0.2, %v1133_v16  ;;  %v1053_v38 = vcombine.high %v5466_v27, %v5466_v27  ;;  %v1156_v53 = vsel %vm1140_vm2, %v1132_v8, %v1148_v28 }
 0x103   : > { %v1051_v39 = vcombine.high %v1034_v35, %v1034_v35  ;;  %v1130_v43 = vadd.f32 %v1122_v22, %v1034_v35  ;;  %v1152_v45 = vsel %vm1136_vm0, %v1128_v18, %v1144_v30  ;;  %vm1137_vm3 = vcmp.ge.f32.partialorder %v1129_v29, 0.0 }
 0x104   : > { %v1145_v46 = vmul.f32 0.2, %v1129_v29  ;;  %v1157_v47 = vsel %vm1141_vm1, %v1133_v16, %v1149_v36  ;;  %v1166_v50 = vmul.f32 %v5251_v44, %v1152_v45  ;;  %v1150_v51 = vmul.f32 0.2, %v1134_v34 }
 0x105   : > { %v1131_v48 = vadd.f32 %v1123_v26, %v1051_v39  ;;  %v1146_v49 = vmul.f32 0.2, %v1130_v43  ;;  %vm1138_vm5 = vcmp.ge.f32.partialorder %v1130_v43, 0.0  ;;  %v1171_v62 = vmul.f32 %v5251_v44, %v1157_v47 }
 0x106   : > { %v1153_v52 = vsel %vm1137_vm3, %v1129_v29, %v1145_v46  ;;  %v1175_v59 = vsel %vm1174_vm4, %v1166_v50, 0.0  ;;  %vm1142_vm6 = vcmp.ge.f32.partialorder %v1134_v34, 0.0  ;;  %v1135_v63 = vadd.f32 %v1127_v33, %v1053_v38 }
 0x107   : > { %v1167_v61 = vmul.f32 %v5251_v44, %v1153_v52  ;;  %1176 = vadd.xlane.f32.xlu0 %v1175_v59  ;;  %v1154_v4 = vsel %vm1138_vm5, %v1130_v43, %v1146_v49  ;;  %v1170_v7 = vmul.f32 %v5251_v44, %v1156_v53  ;;  %vm1139_vm7 = vcmp.ge.f32.partialorder %v1131_v48, 0.0 }
 0x108   : > { %v1147_v13 = vmul.f32 0.2, %v1131_v48  ;;  %v1158_v14 = vsel %vm1142_vm6, %v1134_v34, %v1150_v51  ;;  %v1190_v16 = vsel %vm1174_vm4, %v1171_v62, 0.0  ;;  %v1168_v17 = vmul.f32 %v5251_v44, %v1154_v4 }
 0x109   : > { %v1178_v6 = vsel %vm1174_vm4, %v1167_v61, 0.0  ;;  %v1151_v18 = vmul.f32 0.2, %v1135_v63  ;;  %v1187_v22 = vsel %vm1174_vm4, %v1170_v7, 0.0  ;;  %v1172_v26 = vmul.f32 %v5251_v44, %v1158_v14 }
 0x10a   : > { %1179 = vadd.xlane.f32.xlu1 %v1178_v6  ;;  %v1155_v8 = vsel %vm1139_vm7, %v1131_v48, %v1147_v13  ;;  %vm1143_vm8 = vcmp.ge.f32.partialorder %v1135_v63, 0.0  ;;  %v1181_v27 = vsel %vm1174_vm4, %v1168_v17, 0.0  ;;  %v1208_v39 = vand.u32 127, %v689_v1 }
 0x10b   : > { %1191 = vadd.xlane.f32.xlu0 %v1190_v16  ;;  %v1169_v28 = vmul.f32 %v5251_v44, %v1155_v8  ;;  %v1159_v29 = vsel %vm1143_vm8, %v1135_v63, %v1151_v18  ;;  %v1193_v30 = vsel %vm1174_vm4, %v1172_v26, 0.0  ;;  %vm7920_vm0 = vcmask 31744  }
 0x10c   : > { %v1173_v34 = vmul.f32 %v5251_v44, %v1159_v29  ;;  %v6247_v45 = vsub.s32 %v1208_v39, %v6094_v3  ;;  %v5931_v8 = vmov 0   ;;  %vm7918_vm1 = vmmov 0  }
 0x10d   : > { %v1184_v33 = vsel %vm1174_vm4, %v1169_v28, 0.0  ;;  %5689 = vset.pattern.permute.xlu1 %v5931_v8  ;;  %5688 = vset.pattern.permute.xlu0 %v5931_v8 }
 0x10e   : > { %1188 = vadd.xlane.f32.xlu1 %v1187_v22  ;;  %v1196_v35 = vsel %vm1174_vm4, %v1173_v34, 0.0 }
 0x10f   : > { %1182 = vadd.xlane.f32.xlu0 %v1181_v27 }
 0x112   : > { %1194 = vadd.xlane.f32.xlu1 %v1193_v30 }
 0x113   : > { %1185 = vadd.xlane.f32.xlu0 %v1184_v33 }
 0x117   : > { %1197 = vadd.xlane.f32.xlu0 %v1196_v35 }
 0x190   : > { %v1177_v36 = vpop.xlane.xlu0 %1176 }
 0x191   : > { %v1212_v44 = vrot.slane %v1177_v36, %v6247_v45 }
 0x193   : > { %v1180_v38 = vpop.xlane.xlu1 %1179 }
 0x194   : > { %v1192_v43 = vpop.xlane.xlu0 %1191  ;;  %v1216_v48 = vrot.slane %v1180_v38, %v6247_v45 }
 0x195   : > { %v1232_v61 = vrot.slane %v1192_v43, %v6247_v45 }
 0x196   : > { %v1242_v51 = vsel %vm1241_vm9, %v1216_v48, %v1212_v44 }
 0x197   : > { %v1189_v46 = vpop.xlane.xlu1 %1188 }
 0x198   : > { %v1183_v47 = vpop.xlane.xlu0 %1182  ;;  %v1228_v53 = vrot.slane %v1189_v46, %v6247_v45 }
 0x199   : > { %v1220_v49 = vrot.slane %v1183_v47, %v6247_v45 }
 0x19b   : > { %v1195_v52 = vpop.xlane.xlu1 %1194  ;;  %v1244_v59 = vsel %vm1243_vm10, %v1220_v49, %v1242_v51 }
 0x19c   : > { %v1186_v50 = vpop.xlane.xlu0 %1185  ;;  %v1236_v63 = vrot.slane %v1195_v52, %v6247_v45 }
 0x19d   : > { %v1224_v1 = vrot.slane %v1186_v50, %v6247_v45 }
 0x19f   : > { %v1246_v62 = vsel %vm1245_vm11, %v1224_v1, %v1244_v59 }
 0x1a0   : > { %v1198_v4 = vpop.xlane.xlu0 %1197  ;;  %v1248_v6 = vsel %vm1247_vm12, %v1228_v53, %v1246_v62 }
 0x1a1   : > { %v1240_v7 = vrot.slane %v1198_v4, %v6247_v45  ;;  %v1250_v13 = vsel %vm1249_vm13, %v1232_v61, %v1248_v6 }
 0x1a2   : > { %v1252_v14 = vsel %vm1251_vm14, %v1236_v63, %v1250_v13 }
 0x1a3   : > { %v1254_v16 = vsel %vm1253_vm15, %v1240_v7, %v1252_v14 }
 0x1a4   : > { %v1257_v17 = vsel %vm7920_vm0, %v1254_v16, -inf }
 0x1a5   : > { %1258 = vmax.xlane.f32.xlu1 %v1257_v17 }
 0x22e   : > { %v1259_v18 = vpop.xlane.xlu1 %1258 }
 0x22f   : > { %v1264_v22 = vrot.slane %v1259_v18, %v6110_v5  ;;  %v1268_v26 = vrot.slane %v1259_v18, %v6126_v10  ;;  %v1272_v27 = vrot.slane %v1259_v18, %v6123_v9  ;;  %v1276_v30 = vrot.slane %v1259_v18, %v6151_v23 }
 0x230   : > { %v1280_v39 = vrot.slane %v1259_v18, %v6154_v24  ;;  %v1284_v44 = vrot.slane %v1259_v18, %v6157_v25  ;;  %v1288_v53 = vrot.slane %v1259_v18, %v6177_v37 }
 0x231   : > { %v1301_v28 = vsub.f32 %v1177_v36, %v1264_v22  ;;  %v1302_v29 = vsub.f32 %v1180_v38, %v1268_v26  ;;  %v1303_v33 = vsub.f32 %v1183_v47, %v1272_v27  ;;  %v1304_v48 = vsub.f32 %v1186_v50, %v1276_v30 }
 0x232   : > { %v1305_v51 = vsub.f32 %v1189_v46, %v1280_v39  ;;  %v1306_v36 = vsub.f32 %v1192_v43, %v1284_v44  ;;  %v1292_v47 = vrot.slane %v1259_v18, %v6181_v40  ;;  %v1307_v61 = vsub.f32 %v1195_v52, %v1288_v53 }
 0x233   : > { %v1309_v34 = vmul.f32 1.442695, %v1301_v28  ;;  %v1311_v35 = vmul.f32 1.442695, %v1302_v29  ;;  %v1313_v49 = vmul.f32 1.442695, %v1303_v33 }
 0x234   : > { %v1315_v1 = vmul.f32 1.442695, %v1304_v48  ;;  %v1317_v38 = vmul.f32 1.442695, %v1305_v51  ;;  %v1319_v62 = vmul.f32 1.442695, %v1306_v36  ;;  %v1308_v46 = vsub.f32 %v1198_v4, %v1292_v47 }
 0x235   : > { %5743 = vpow2.f32 %v1309_v34  ;;  %v1321_v63 = vmul.f32 1.442695, %v1307_v61 }
 0x236   : > { %5745 = vpow2.f32 %v1311_v35  ;;  %v1323_v43 = vmul.f32 1.442695, %v1308_v46 }
 0x237   : > { %5747 = vpow2.f32 %v1313_v49 }
 0x238   : > { %5749 = vpow2.f32 %v1315_v1 }
 0x239   : > { %5751 = vpow2.f32 %v1317_v38 }
 0x23a   : > { %5753 = vpow2.f32 %v1319_v62  ;;  %v6320_v62 = vld [vmem:[%s6317_s25] sm:$0xf] }
 0x23b   : > { %5755 = vpow2.f32 %v1321_v63  ;;  %5441 = vmatprep.subr.bf16.mxu0 %v6320_v62  ;;  %v5932_v63 = vmov 1966171168  }
 0x23c   : > { %5757 = vpow2.f32 %v1323_v43  ;;  %5442 = vmatpush3.bf16.xpose.msra.mxu0 %v6320_v62  ;;  %v687_v43 = vunpack.c.l.s4 %v5932_v63 }
 0x242   : > { %v6272_v59 = vpop.eup %5743 }
 0x243   : > { %v6275_v50 = vpop.eup %5745  ;;  %1334 = vperm.xlu0 %5688, %v6272_v59  }
 0x244   : > { %1337 = vperm.xlu1 %5689, %v6275_v50   ;;  %v6279_v6 = vpop.eup %5747 }
 0x245   : > { %v6282_v7 = vpop.eup %5749 }
 0x246   : > { %v6285_v52 = vpop.eup %5751 }
 0x247   : > { %v6288_v13 = vpop.eup %5753 }
 0x248   : > { %1340 = vperm.xlu1 %5689, %v6279_v6   ;;  %v6291_v4 = vpop.eup %5755 }
 0x249   : > { %v6294_v14 = vpop.eup %5757 }
 0x24c   : > { %1343 = vperm.xlu1 %5689, %v6282_v7  }
 0x250   : > { %1346 = vperm.xlu1 %5689, %v6285_v52  }
 0x254   : > { %1349 = vperm.xlu1 %5689, %v6288_v13  }
 0x258   : > { %1352 = vperm.xlu1 %5689, %v6291_v4  }
 0x25c   : > { %1355 = vperm.xlu1 %5689, %v6294_v14  }
 0x2be   : > { %v1335_v22 = vpop.permute.xlu0 %1334 }
 0x2bf   : > { %v1338_v16 = vpop.permute.xlu1 %1337  ;;  %v1360_v28 = vrot.slane %v1335_v22, %v6247_v45 }
 0x2c0   : > { %v1364_v27 = vrot.slane %v1338_v16, %v6247_v45  ;;  %v688_v16 = vunpack.c.0.s8 %v687_v43 }
 0x2c2   : > { %v1389_v35 = vsel %vm1241_vm9, %v1364_v27, %v1360_v28 }
 0x2c3   : > { %v1341_v17 = vpop.permute.xlu1 %1340 }
 0x2c4   : > { %v1368_v29 = vrot.slane %v1341_v17, %v6247_v45  ;;  %v683_v17 = vld [vmem:[%s7891_s7] sm:$0x3] }
 0x2c6   : > { %v1390_v48 = vsel %vm1243_vm10, %v1368_v29, %v1389_v35  ;;  %v682_v35 = vunpack.c.l.bf16 %v6320_v62 }
 0x2c7   : > { %v1344_v8 = vpop.permute.xlu1 %1343 }
 0x2c8   : > { %v1372_v30 = vrot.slane %v1344_v8, %v6247_v45  ;;  %v684_v8 = vunpack.c.l.bf16 %v683_v17 }
 0x2ca   : > { %v1391_v44 = vsel %vm1245_vm11, %v1372_v30, %v1390_v48 }
 0x2cb   : > { %v1347_v18 = vpop.permute.xlu1 %1346 }
 0x2cc   : > { %v1376_v33 = vrot.slane %v1347_v18, %v6247_v45  ;;  %v691_v18 = vsub.s32 %v688_v16, %v6094_v3 }
 0x2ce   : > { %v1392_v51 = vsel %vm1247_vm12, %v1376_v33, %v1391_v44  ;;  %v692_v27 = vrot.slane %v684_v8, %v691_v18 }
 0x2cf   : > { %v1350_v26 = vpop.permute.xlu1 %1349 }
 0x2d0   : > { %v1380_v39 = vrot.slane %v1350_v26, %v6247_v45  ;;  %v693_v30 = vcombine.high %v692_v27, %v692_v27  ;;  %v700_v33 = vrot.slane %v692_v27, %v691_v18 }
 0x2d2   : > { %v1393_v36 = vsel %vm1249_vm13, %v1380_v39, %v1392_v51  ;;  %v707_v48 = vrot.slane %v693_v30, %v691_v18  ;;  %v713_v3 = vrot.slane %v700_v33, %v6110_v5  ;;  %v6379_v30 = vld [vmem:[%s7895_s11 + $0x28] sm:$0xff]  }
 0x2d3   : > { %v1353_v34 = vpop.permute.xlu1 %1352 }
 0x2d4   : > { %v1384_v49 = vrot.slane %v1353_v34, %v6247_v45  ;;  %v709_v44 = vcombine.high %v707_v48, %v707_v48  ;;  %v717_v51 = vrot.slane %v707_v48, %v6110_v5  ;;  %v6412_v48 = vld [vmem:[%s7895_s11 + $0x10] sm:$0xff]  }
 0x2d6   : > { %v1394_v38 = vsel %vm1251_vm14, %v1384_v49, %v1393_v36  ;;  %v708_v49 = vcombine.high %v700_v33, %v700_v33  ;;  %v6390_v33 = vld [vmem:[%s7895_s11 + $0x20] sm:$0xff]  }
 0x2d7   : > { %v1356_v1 = vpop.permute.xlu1 %1355 }
 0x2d8   : > { %v1388_v53 = vrot.slane %v1356_v1, %v6247_v45  ;;  %v721_v1 = vrot.slane %v708_v49, %v6110_v5  ;;  %v5710_v49 = vld [vmem:[%s7896_s12 + $0x8] sm:$0xff]  }
 0x2da   : > { %v1395_v47 = vsel %vm1253_vm15, %v1388_v53, %v1394_v38  ;;  %v731_v38 = vmul.f32 %v717_v51, %v682_v35  ;;  %v6437_v51 = vld [vmem:[%s7895_s11] sm:$0xff]  }
 0x2db   : > { %v1397_v61 = vsel %vm7920_vm0, %v1395_v47, 0.0  ;;  %v725_v47 = vrot.slane %v709_v44, %v6110_v5  ;;  %v5712_v44 = vld [vmem:[%s7896_s12] sm:$0xff]  }
 0x2dc   : > { %1398 = vadd.xlane.f32.xlu1 %v1397_v61  ;;  %v732_v61 = vmul.f32 %v721_v1, %v682_v35  ;;  %v6452_v1 = vld [vmem:[%s675_s21 + $0x10] sm:$0xff] }
 0x365   : > { %v1399_v46 = vpop.xlane.xlu1 %1398 }
 0x366   : > { %5759 = vrcp.f32 %v1399_v46  ;;  %v733_v46 = vmul.f32 %v725_v47, %v682_v35  ;;  %v2193_v47 = vrot.slane %v6452_v1, %v6110_v5 }
 0x368   : > { %v735_v16 = vpack.c.bf16 %v733_v46, %v732_v61  ;;  %v6462_v61 = vld [vmem:[%s675_s21 + $0x18] sm:$0xff] }
 0x369   : > { %v2249_v46 = vrot.slane %v6462_v61, %v6110_v5 }
 0x373   : > { %v5760_v22 = vpop.eup %5759 }
 0x374   : > { %v1405_v26 = vrot.slane %v5760_v22, %v6110_v5  ;;  %v1409_v29 = vrot.slane %v5760_v22, %v6126_v10  ;;  %v1413_v34 = vrot.slane %v5760_v22, %v6123_v9  ;;  %v1417_v53 = vrot.slane %v5760_v22, %v6151_v23 }
 0x375   : > { %v1421_v43 = vrot.slane %v5760_v22, %v6154_v24  ;;  %v1425_v8 = vrot.slane %v5760_v22, %v6157_v25  ;;  %v1429_v18 = vrot.slane %v5760_v22, %v6177_v37  ;;  %v1433_v27 = vrot.slane %v5760_v22, %v6181_v40  ;;  %v5702_v22 = vld [vmem:[%s7896_s12 + $0x28] sm:$0xff]  }
 0x376   : > { %v1442_v28 = vmul.f32 %v6272_v59, %v1405_v26  ;;  %v1443_v39 = vmul.f32 %v6275_v50, %v1409_v29  ;;  %v730_v59 = vmul.f32 %v713_v3, %v682_v35  ;;  %v1444_v36 = vmul.f32 %v6279_v6, %v1413_v34  ;;  %v5698_v26 = vld [vmem:[%s7896_s12 + $0x38] sm:$0xff]   ;;  %v6367_v29 = vld [vmem:[%s7895_s11 + $0x30] sm:$0xff]   ;;  %v6422_v3 = vld [vmem:[%s7895_s11 + $0x8] sm:$0xff]  }
 0x377   : > { %v1445_v63 = vmul.f32 %v6282_v7, %v1417_v53  ;;  %v1446_v17 = vmul.f32 %v6285_v52, %v1421_v43  ;;  %v1447_v6 = vmul.f32 %v6288_v13, %v1425_v8  ;;  %v7909_v7 = vmov 0.0   ;;  %v6354_v52 = vld [vmem:[%s7895_s11 + $0x38] sm:$0xff]  }
 0x378   : > { %1452 = vperm.xlu0 %5688, %v1442_v28   ;;  %v734_v50 = vpack.c.bf16 %v731_v38, %v730_v59  ;;  %5467 = vmatprep.subr.bf16.mxu0 %v7909_v7  ;;  %v1448_v13 = vmul.f32 %v6291_v4, %v1429_v18  ;;  %v5700_v28 = vld [vmem:[%s7896_s12 + $0x30] sm:$0xff]   ;;  %v1449_v4 = vmul.f32 %v6294_v14, %v1433_v27  ;;  %v5704_v14 = vld [vmem:[%s7896_s12 + $0x20] sm:$0xff]   ;;  %v5706_v34 = vld [vmem:[%s7896_s12 + $0x18] sm:$0xff]  }
 0x379   : > { %5487 = vmatprep.subr.bf16.mxu1 %v7909_v7  ;;  %v6401_v35 = vld [vmem:[%s7895_s11 + $0x18] sm:$0xff]   ;;  %5503 = vmatprep.mubr.msk.bf16.mxu1 %vm7918_vm1, %v7909_v7  ;;  %v5252_v59 = vcombine.low %v6320_v62, %v6320_v62  ;;  %v6450_v62 = vld [vmem:[%s675_s21 + $0x8] sm:$0xff]  ;;  %v2214_v27 = vrot.slane %v6452_v1, %v6151_v23 }
 0x37a   : > { %5443 = vmatprep.mubr.bf16.mxu0 %v734_v50  ;;  %5488 = vmatpush3.bf16.msra.mxu1 %v6354_v52  ;;  %v2137_v38 = vrot.slane %v6450_v62, %v6110_v5  ;;  %v2144_v50 = vrot.slane %v6450_v62, %v6126_v10 }
 0x37b   : > { %5444 = vmatmul.mubr.bf16.vlgmr.msra.gmra.mxu0 %v735_v16  ;;  %5489 = vmatprep.subr.bf16.mxu1 %v7909_v7  ;;  %v2151_v16 = vrot.slane %v6450_v62, %v6123_v9 }
 0x37c   : > { %1457 = vperm.xlu0 %5688, %v1443_v39   ;;  %5468 = vmatpush3.bf16.msra.mxu0 %v5698_v26  ;;  %v5708_v39 = vld [vmem:[%s7896_s12 + $0x10] sm:$0xff]  }
 0x37d   : > { %5469 = vmatprep.subr.bf16.mxu0 %v7909_v7  ;;  %5483 = vmatprep.mubr.msk.bf16.mxu0 %vm7918_vm1, %v7909_v7 }
 0x37e   : > { %5490 = vmatpush3.bf16.msra.mxu1 %v6367_v29 }
 0x37f   : > { %5491 = vmatprep.subr.bf16.mxu1 %v7909_v7 }
 0x380   : > { %1462 = vperm.xlu0 %5688, %v1444_v36   ;;  %5470 = vmatpush3.bf16.msra.mxu0 %v5700_v28 }
 0x381   : > { %5471 = vmatprep.subr.bf16.mxu0 %v7909_v7 }
 0x382   : > { %5492 = vmatpush3.bf16.msra.mxu1 %v6379_v30 }
 0x383   : > { %5493 = vmatprep.subr.bf16.mxu1 %v7909_v7 }
 0x384   : > { %1467 = vperm.xlu0 %5688, %v1445_v63   ;;  %5472 = vmatpush3.bf16.msra.mxu0 %v5702_v22 }
 0x385   : > { %5473 = vmatprep.subr.bf16.mxu0 %v7909_v7 }
 0x386   : > { %5494 = vmatpush3.bf16.msra.mxu1 %v6390_v33 }
 0x387   : > { %5495 = vmatprep.subr.bf16.mxu1 %v7909_v7 }
 0x388   : > { %1472 = vperm.xlu0 %5688, %v1446_v17   ;;  %5474 = vmatpush3.bf16.msra.mxu0 %v5704_v14  ;;  %v2207_v17 = vrot.slane %v6452_v1, %v6123_v9 }
 0x389   : > { %5475 = vmatprep.subr.bf16.mxu0 %v7909_v7 }
 0x38a   : > { %5496 = vmatpush3.bf16.msra.mxu1 %v6401_v35 }
 0x38b   : > { %5497 = vmatprep.subr.bf16.mxu1 %v7909_v7 }
 0x38c   : > { %1477 = vperm.xlu0 %5688, %v1447_v6   ;;  %5476 = vmatpush3.bf16.msra.mxu0 %v5706_v34  ;;  %v2200_v6 = vrot.slane %v6452_v1, %v6126_v10 }
 0x38d   : > { %5477 = vmatprep.subr.bf16.mxu0 %v7909_v7 }
 0x38e   : > { %5498 = vmatpush3.bf16.msra.mxu1 %v6412_v48 }
 0x38f   : > { %5499 = vmatprep.subr.bf16.mxu1 %v7909_v7 }
 0x390   : > { %1482 = vperm.xlu0 %5688, %v1448_v13   ;;  %5478 = vmatpush3.bf16.msra.mxu0 %v5708_v39  ;;  %v2256_v13 = vrot.slane %v6462_v61, %v6126_v10 }
 0x391   : > { %5479 = vmatprep.subr.bf16.mxu0 %v7909_v7 }
 0x392   : > { %5500 = vmatpush3.bf16.msra.mxu1 %v6422_v3 }
 0x393   : > { %5501 = vmatprep.subr.bf16.mxu1 %v7909_v7 }
 0x394   : > { %1487 = vperm.xlu0 %5688, %v1449_v4   ;;  %5480 = vmatpush3.bf16.msra.mxu0 %v5710_v49 }
 0x395   : > { %5481 = vmatprep.subr.bf16.mxu0 %v7909_v7 }
 0x396   : > { %5502 = vmatpush3.bf16.msra.mxu1 %v6437_v51 }
 0x397   : > { %5539 = vmatprep.subr.bf16.mxu1 %v5698_v26 }
 0x398   : > { %5482 = vmatpush3.bf16.msra.mxu0 %v5712_v44 }
 0x399   : > { %5507 = vmatprep.subr.bf16.mxu0 %v6082_v0  ;;  %5504 = vmatmul.mubr.bf16.vlgmr.msra.gmra.mxu1 %v5252_v59  ;;  %v6448_v0 = vld [vmem:[%s675_s21] sm:$0xff] }
 0x39a   : > { %5540 = vmatpush3.bf16.msra.mxu1 %v5698_v26  ;;  %v2081_v53 = vrot.slane %v6448_v0, %v6110_v5  ;;  %v2088_v36 = vrot.slane %v6448_v0, %v6126_v10  ;;  %v2095_v63 = vrot.slane %v6448_v0, %v6123_v9  ;;  %v2102_v43 = vrot.slane %v6448_v0, %v6151_v23 }
 0x39b   : > { %5541 = vmatprep.subr.bf16.mxu1 %v5700_v28  ;;  %v2109_v18 = vrot.slane %v6448_v0, %v6154_v24 }
 0x39c   : > { %2083 = vbcast.lane.b32.xlu0 %v2081_v53, 256  ;;  %2090 = vbcast.lane.b32.xlu1 %v2088_v36, 256 }
 0x39e   : > { %5542 = vmatpush3.bf16.msra.mxu1 %v5700_v28 }
 0x39f   : > { %5543 = vmatprep.subr.bf16.mxu1 %v5702_v22 }
 0x3a0   : > { %2139 = vbcast.lane.b32.xlu0 %v2137_v38, 256  ;;  %2195 = vbcast.lane.b32.xlu1 %v2193_v47, 256  ;;  %v2263_v38 = vrot.slane %v6462_v61, %v6123_v9  ;;  %v2221_v47 = vrot.slane %v6452_v1, %v6154_v24 }
 0x3a2   : > { %5544 = vmatpush3.bf16.msra.mxu1 %v5702_v22 }
 0x3a3   : > { %5545 = vmatprep.subr.bf16.mxu1 %v5704_v14 }
 0x3a4   : > { %2146 = vbcast.lane.b32.xlu0 %v2144_v50, 256  ;;  %2251 = vbcast.lane.b32.xlu1 %v2249_v46, 256 }
 0x3a6   : > { %5546 = vmatpush3.bf16.msra.mxu1 %v5704_v14 }
 0x3a7   : > { %5547 = vmatprep.subr.bf16.mxu1 %v5706_v34 }
 0x3a8   : > { %2097 = vbcast.lane.b32.xlu0 %v2095_v63, 256  ;;  %2104 = vbcast.lane.b32.xlu1 %v2102_v43, 256 }
 0x3aa   : > { %5548 = vmatpush3.bf16.msra.mxu1 %v5706_v34  ;;  %v2158_v34 = vrot.slane %v6450_v62, %v6151_v23 }
 0x3ab   : > { %5549 = vmatprep.subr.bf16.mxu1 %v5708_v39 }
 0x3ac   : > { %2153 = vbcast.lane.b32.xlu0 %v2151_v16, 256  ;;  %2209 = vbcast.lane.b32.xlu1 %v2207_v17, 256 }
 0x3ae   : > { %5550 = vmatpush3.bf16.msra.mxu1 %v5708_v39  ;;  %v2116_v39 = vrot.slane %v6448_v0, %v6157_v25 }
 0x3af   : > { %5551 = vmatprep.subr.bf16.mxu1 %v5710_v49 }
 0x3b0   : > { %2202 = vbcast.lane.b32.xlu0 %v2200_v6, 256  ;;  %2111 = vbcast.lane.b32.xlu1 %v2109_v18, 256  ;;  %v2123_v6 = vrot.slane %v6448_v0, %v6177_v37 }
 0x3b2   : > { %5552 = vmatpush3.bf16.msra.mxu1 %v5710_v49 }
 0x3b3   : > { %5553 = vmatprep.subr.bf16.mxu1 %v5712_v44 }
 0x3b4   : > { %2258 = vbcast.lane.b32.xlu0 %v2256_v13, 256  ;;  %2216 = vbcast.lane.b32.xlu1 %v2214_v27, 256 }
 0x3b6   : > { %5554 = vmatpush3.bf16.msra.mxu1 %v5712_v44 }
 0x3b8   : > { %2160 = vbcast.lane.b32.xlu0 %v2158_v34, 256  ;;  %2118 = vbcast.lane.b32.xlu1 %v2116_v39, 256  ;;  %v2228_v39 = vrot.slane %v6452_v1, %v6157_v25 }
 0x3bc   : > { %2265 = vbcast.lane.b32.xlu0 %v2263_v38, 256  ;;  %2223 = vbcast.lane.b32.xlu1 %v2221_v47, 256 }
 0x3c0   : > { %2125 = vbcast.lane.b32.xlu1 %v2123_v6, 256 }
 0x3c4   : > { %2230 = vbcast.lane.b32.xlu1 %v2228_v39, 256  ;;  %v2179_v39 = vrot.slane %v6450_v62, %v6177_v37 }
 0x3f3   : > { %v1453_v8 = vpop.permute.xlu0 %1452 }
 0x3f4   : > { %v1490_v28 = vmul.f32 %v1453_v8, %v6128_v11  ;;  %v2165_v8 = vrot.slane %v6450_v62, %v6154_v24 }
 0x3f6   : > { %v1498_v49 = vsel %vm1174_vm4, %v1490_v28, 0.0  ;;  %v2270_v28 = vrot.slane %v6462_v61, %v6151_v23  ;;  %2167 = vbcast.lane.b32.xlu0 %v2165_v8, 256 }
 0x3f7   : > { %v1458_v26 = vpop.permute.xlu0 %1457  ;;  %v1499_v53 = vrot.slane %v1498_v49, 4 }
 0x3f8   : > { %v1491_v4 = vmul.f32 %v1458_v26, %v6140_v19 }
 0x3f9   : > { %v1500_v43 = vadd.f32 %v1499_v53, %v1498_v49  ;;  %v2172_v53 = vrot.slane %v6450_v62, %v6157_v25 }
 0x3fa   : > { %v1505_v22 = vsel %vm1174_vm4, %v1491_v4, 0.0  ;;  %2272 = vbcast.lane.b32.xlu0 %v2270_v28, 256 }
 0x3fb   : > { %v1463_v14 = vpop.permute.xlu0 %1462  ;;  %v1506_v59 = vrot.slane %v1505_v22, 4  ;;  %v1501_v4 = vrot.slane %v1500_v43, 2 }
 0x3fc   : > { %v1492_v44 = vmul.f32 %v1463_v14, %v6130_v12 }
 0x3fd   : > { %v1507_v46 = vadd.f32 %v1506_v59, %v1505_v22 }
 0x3fe   : > { %v1512_v11 = vsel %vm1174_vm4, %v1492_v44, 0.0  ;;  %2174 = vbcast.lane.b32.xlu0 %v2172_v53, 256  ;;  %v2242_v53 = vrot.slane %v6452_v1, %v6181_v40 }
 0x3ff   : > { %v1513_v19 = vrot.slane %v1512_v11, 4  ;;  %v1468_v36 = vpop.permute.xlu0 %1467  ;;  %v1508_v26 = vrot.slane %v1507_v46, 2 }
 0x400   : > { %v1493_v50 = vmul.f32 %v1468_v36, %v6144_v20 }
 0x401   : > { %v1514_v63 = vadd.f32 %v1513_v19, %v1512_v11  ;;  %v1509_v49 = vadd.f32 %v1508_v26, %v1507_v46  ;;  %v1502_v19 = vadd.f32 %v1501_v4, %v1500_v43  ;;  %v2277_v43 = vrot.slane %v6462_v61, %v6154_v24 }
 0x402   : > { %v1519_v12 = vsel %vm1174_vm4, %v1493_v50, 0.0 }
 0x403   : > { %v1520_v16 = vrot.slane %v1519_v12, 4  ;;  %v1473_v17 = vpop.permute.xlu0 %1472  ;;  %v1515_v13 = vrot.slane %v1514_v63, 2  ;;  %2279 = vbcast.lane.b32.xlu0 %v2277_v43, 256 }
 0x404   : > { %v1494_v18 = vmul.f32 %v1473_v17, %v6170_v31 }
 0x405   : > { %v1521_v20 = vadd.f32 %v1520_v16, %v1519_v12  ;;  %v1516_v59 = vadd.f32 %v1515_v13, %v1514_v63  ;;  %v1510_v63 = vrot.slane %v1509_v49, 1  ;;  %v5306_v16 = vld [vmem:[%s6516_s23] sm:$0xff]  }
 0x406   : > { %v1526_v27 = vsel %vm1174_vm4, %v1494_v18, 0.0  ;;  %v1503_v18 = vrot.slane %v1502_v19, 1  ;;  %v6530_v4 = vunpack.c.l.bf16 %v5306_v16 }
 0x407   : > { %v1522_v22 = vrot.slane %v1521_v20, 2  ;;  %v1527_v14 = vrot.slane %v1526_v27, 4  ;;  %v1478_v34 = vpop.permute.xlu0 %1477  ;;  %v1517_v17 = vrot.slane %v1516_v59, 1  ;;  %2181 = vbcast.lane.b32.xlu0 %v2179_v39, 256  ;;  %v2186_v39 = vrot.slane %v6450_v62, %v6181_v40 }
 0x408   : > { %v1495_v31 = vmul.f32 %v1478_v34, %v6185_v41  ;;  %v2130_v41 = vrot.slane %v6448_v0, %v6181_v40  ;;  %v2235_v0 = vrot.slane %v6452_v1, %v6177_v37  ;;  %7979 = vst [vmem:[#allocation20_spill] sm:$0xff] %v6530_v4  ;;  %v6532_v34 = vunpack.c.h.bf16 %v5306_v16 }
 0x409   : > { %v1528_v44 = vadd.f32 %v1527_v14, %v1526_v27  ;;  %v1523_v36 = vadd.f32 %v1522_v22, %v1521_v20  ;;  %v1511_v22 = vadd.f32 %v1510_v63, %v1509_v49  ;;  %v2291_v62 = vrot.slane %v6462_v61, %v6177_v37 }
 0x40a   : > { %v1533_v11 = vsel %vm1174_vm4, %v1495_v31, 0.0  ;;  %2132 = vbcast.lane.b32.xlu1 %v2130_v41, 256  ;;  %7980 = vst [vmem:[#allocation21_spill] sm:$0xff] %v6532_v34  ;;  %v1518_v31 = vadd.f32 %v1517_v17, %v1516_v59  ;;  %v6541_v59 = vcombine.high %v6530_v4, %v6530_v4  ;;  %v6545_v1 = vcombine.high %v6532_v34, %v6532_v34 }
 0x40b   : > { %v1529_v38 = vrot.slane %v1528_v44, 2  ;;  %v1483_v47 = vpop.permute.xlu0 %1482  ;;  %v1534_v50 = vrot.slane %v1533_v11, 4  ;;  %v1524_v26 = vrot.slane %v1523_v36, 1 }
 0x40c   : > { %v1496_v46 = vmul.f32 %v1483_v47, %v6172_v32  ;;  %7981 = vst [vmem:[#allocation22_spill] sm:$0xff] %v6541_v59  ;;  %v1557_v17 = vpack.c.bf16 %v1518_v31, %v1518_v31  ;;  %7982 = vst [vmem:[#allocation23_spill] sm:$0xff] %v6545_v1 }
 0x40d   : > { %v1530_v12 = vadd.f32 %v1529_v38, %v1528_v44  ;;  %v1535_v8 = vadd.f32 %v1534_v50, %v1533_v11  ;;  %v1504_v38 = vadd.f32 %v1503_v18, %v1502_v19  ;;  %v1525_v47 = vadd.f32 %v1524_v26, %v1523_v36 }
 0x40e   : > { %v1540_v6 = vsel %vm1174_vm4, %v1496_v46, 0.0  ;;  %2237 = vbcast.lane.b32.xlu1 %v2235_v0, 256  ;;  %v1556_v46 = vpack.c.bf16 %v1511_v22, %v1511_v22  ;;  %v2284_v19 = vrot.slane %v6462_v61, %v6157_v25  ;;  %v1829_v26 = vmul.f32 %v6530_v4, %v6147_v21 }
 0x40f   : > { %v1541_v20 = vrot.slane %v1540_v6, 4  ;;  %v1488_v13 = vpop.permute.xlu0 %1487  ;;  %v1531_v32 = vrot.slane %v1530_v12, 1  ;;  %v1536_v27 = vrot.slane %v1535_v8, 2  ;;  %v1555_v36 = vpack.c.bf16 %v1504_v38, %v1504_v38 }
 0x410   : > { %v1497_v28 = vmul.f32 %v1488_v13, %v6189_v42  ;;  %v1572_v13 = vunpack.c.l.b16 %v1556_v46  ;;  %v1830_v22 = vmul.f32 %v6541_v59, %v6147_v21  ;;  %2286 = vbcast.lane.b32.xlu0 %v2284_v19, 256 }
 0x411   : > { %v1542_v14 = vadd.f32 %v1541_v20, %v1540_v6  ;;  %v1537_v44 = vadd.f32 %v1536_v27, %v1535_v8  ;;  %v1532_v49 = vadd.f32 %v1531_v32, %v1530_v12  ;;  %v1558_v6 = vpack.c.bf16 %v1525_v47, %v1525_v47 }
 0x412   : > { %v1547_v11 = vsel %vm1174_vm4, %v1497_v28, 0.0  ;;  %2244 = vbcast.lane.b32.xlu1 %v2242_v53, 256  ;;  %v1831_v20 = vmul.f32 %v6532_v34, %v6147_v21  ;;  %v1573_v28 = vunpack.c.l.b16 %v1557_v17  ;;  %v1571_v31 = vunpack.c.l.b16 %v1555_v36 }
 0x413   : > { %v1543_v41 = vrot.slane %v1542_v14, 2  ;;  %v1548_v42 = vrot.slane %v1547_v11, 4  ;;  %v1538_v50 = vrot.slane %v1537_v44, 1  ;;  %v1559_v18 = vpack.c.bf16 %v1532_v49, %v1532_v49 }
 0x414   : > { %v1579_v47 = vsel %vm1241_vm9, %v1572_v13, %v1571_v31  ;;  %v1893_v46 = vcombine.low %v1829_v26, %v1830_v22  ;;  %2188 = vbcast.lane.b32.xlu0 %v2186_v39, 256  ;;  %v2298_v26 = vrot.slane %v6462_v61, %v6181_v40  ;;  %v5856_v13 = vld [vmem:[%s7892_s8 + $0x30] sm:$0xff]   ;;  %v5337_v61 = vld [vmem:[%s6516_s23 + $0x8] sm:$0xff]   ;;  %v5859_v31 = vld [vmem:[%s7892_s8 + $0x18] sm:$0xff]  }
 0x415   : > { %v1544_v63 = vadd.f32 %v1543_v41, %v1542_v14  ;;  %v1549_v16 = vadd.f32 %v1548_v42, %v1547_v11  ;;  %v1539_v8 = vadd.f32 %v1538_v50, %v1537_v44  ;;  %v1832_v14 = vmul.f32 %v6545_v1, %v6147_v21  ;;  %v5338_v22 = vld [vmem:[%s6516_s23 + $0x10] sm:$0xff]  }
 0x416   : > { %v1574_v44 = vunpack.c.l.b16 %v1558_v6  ;;  %v1575_v38 = vunpack.c.l.b16 %v1559_v18  ;;  %v1580_v49 = vsel %vm1243_vm10, %v1573_v28, %v1579_v47  ;;  %v6585_v28 = vunpack.c.h.bf16 %v5337_v61 }
 0x417   : > { %v1545_v12 = vrot.slane %v1544_v63, 1  ;;  %v1550_v43 = vrot.slane %v1549_v16, 2  ;;  %v1560_v0 = vpack.c.bf16 %v1539_v8, %v1539_v8  ;;  %v1894_v17 = vcombine.low %v1831_v20, %v1832_v14  ;;  %v5855_v20 = vld [vmem:[%s7892_s8 + $0x38] sm:$0xff]  }
 0x418   : > { %2293 = vbcast.lane.b32.xlu0 %v2291_v62, 256  ;;  %7984 = vst [vmem:[#allocation25_spill] sm:$0xff] %v6585_v28  ;;  %v6588_v14 = vunpack.c.l.bf16 %v5338_v22  ;;  %v6590_v39 = vunpack.c.h.bf16 %v5338_v22 }
 0x419   : > { %v1546_v32 = vadd.f32 %v1545_v12, %v1544_v63  ;;  %v1551_v27 = vadd.f32 %v1550_v43, %v1549_v16  ;;  %v1576_v41 = vunpack.c.l.b16 %v1560_v0  ;;  %v1581_v63 = vsel %vm1245_vm11, %v1574_v44, %v1580_v49  ;;  %v5857_v0 = vld [vmem:[%s7892_s8 + $0x28] sm:$0xff]  }
 0x41a   : > { %v1582_v8 = vsel %vm1247_vm12, %v1575_v38, %v1581_v63  ;;  %v1925_v43 = vpack.c.bf16 %v1894_v17, %v1893_v46  ;;  %7985 = vst [vmem:[#allocation26_spill] sm:$0xff] %v6588_v14  ;;  %7986 = vst [vmem:[#allocation27_spill] sm:$0xff] %v6590_v39  ;;  %v6606_v38 = vcombine.high %v6588_v14, %v6588_v14 }
 0x41b   : > { %v1561_v11 = vpack.c.bf16 %v1546_v32, %v1546_v32  ;;  %v1552_v53 = vrot.slane %v1551_v27, 1  ;;  %v1583_v36 = vsel %vm1249_vm13, %v1576_v41, %v1582_v8  ;;  %v5858_v32 = vld [vmem:[%s7892_s8 + $0x20] sm:$0xff]   ;;  %v6610_v47 = vcombine.high %v6590_v39, %v6590_v39 }
 0x41c   : > { %2300 = vbcast.lane.b32.xlu0 %v2298_v26, 256  ;;  %7989 = vst [vmem:[#allocation30_spill] sm:$0xff] %v6606_v38  ;;  %v5340_v41 = vld [vmem:[%s6516_s23 + $0x20] sm:$0xff]   ;;  %v1835_v46 = vmul.f32 %v6585_v28, %v6147_v21 }
 0x41d   : > { %v1553_v42 = vadd.f32 %v1552_v53, %v1551_v27  ;;  %v1577_v50 = vunpack.c.l.b16 %v1561_v11  ;;  %v6583_v27 = vunpack.c.l.bf16 %v5337_v61  ;;  %v6601_v11 = vcombine.high %v6585_v28, %v6585_v28  ;;  %v5339_v53 = vld [vmem:[%s6516_s23 + $0x18] sm:$0xff]   ;;  %7990 = vst [vmem:[#allocation31_spill] sm:$0xff] %v6610_v47 }
 0x41e   : > { %v6626_v17 = vunpack.c.h.bf16 %v5339_v53  ;;  %v6628_v62 = vunpack.c.l.bf16 %v5340_v41  ;;  %v6630_v8 = vunpack.c.h.bf16 %v5340_v41 }
 0x41f   : > { %v1562_v16 = vpack.c.bf16 %v1553_v42, %v1553_v42  ;;  %v1584_v6 = vsel %vm1251_vm14, %v1577_v50, %v1583_v36  ;;  %7983 = vst [vmem:[#allocation24_spill] sm:$0xff] %v6583_v27  ;;  %v6597_v44 = vcombine.high %v6583_v27, %v6583_v27  ;;  %7988 = vst [vmem:[#allocation29_spill] sm:$0xff] %v6601_v11  ;;  %v5860_v42 = vld [vmem:[%s7892_s8 + $0x10] sm:$0xff]  }
 0x420   : > { %v1833_v49 = vmul.f32 %v6583_v27, %v6147_v21  ;;  %v1836_v63 = vmul.f32 %v6601_v11, %v6147_v21  ;;  %7992 = vst [vmem:[#allocation33_spill] sm:$0xff] %v6626_v17  ;;  %7993 = vst [vmem:[#allocation34_spill] sm:$0xff] %v6628_v62  ;;  %v1838_v36 = vmul.f32 %v6606_v38, %v6147_v21 }
 0x421   : > { %v1578_v19 = vunpack.c.l.b16 %v1562_v16  ;;  %7987 = vst [vmem:[#allocation28_spill] sm:$0xff] %v6597_v44  ;;  %v1834_v50 = vmul.f32 %v6597_v44, %v6147_v21  ;;  %v6624_v16 = vunpack.c.l.bf16 %v5339_v53  ;;  %7994 = vst [vmem:[#allocation35_spill] sm:$0xff] %v6630_v8  ;;  %v6657_v61 = vcombine.high %v6630_v8, %v6630_v8  ;;  %v5862_v53 = vld [vmem:[%s7892_s8] sm:$0xff]  }
 0x422   : > { %v1896_v26 = vcombine.low %v1835_v46, %v1836_v63 }
 0x423   : > { %v1585_v12 = vsel %vm1253_vm15, %v1578_v19, %v1584_v6  ;;  %7991 = vst [vmem:[#allocation32_spill] sm:$0xff] %v6624_v16  ;;  %v1837_v19 = vmul.f32 %v6588_v14, %v6147_v21  ;;  %v1839_v6 = vmul.f32 %v6590_v39, %v6147_v21  ;;  %7998 = vst [vmem:[#allocation39_spill] sm:$0xff] %v6657_v61 }
 0x424   : > { %v1586_v18 = vpack.c.b16 %v1585_v12, %v1585_v12  ;;  %v1840_v12 = vmul.f32 %v6610_v47, %v6147_v21 }
 0x425   : > { %v1897_v22 = vcombine.low %v1837_v19, %v1838_v36 }
 0x426   : > { %5484 = vmatmul.mubr.bf16.vlgmr.msra.gmra.mxu0 %v1586_v18  ;;  %v1895_v18 = vcombine.low %v1833_v49, %v1834_v50  ;;  %v1843_v49 = vmul.f32 %v6626_v17, %v6147_v21  ;;  %v5342_v50 = vld [vmem:[%s6516_s23 + $0x30] sm:$0xff]  }
 0x427   : > { %5508 = vmatpush3.bf16.msra.mxu0 %v5855_v20  ;;  %5523 = vmatprep.mubr.bf16.mxu0 %v1925_v43  ;;  %v5861_v43 = vld [vmem:[%s7892_s8 + $0x8] sm:$0xff]   ;;  %v6645_v20 = vcombine.high %v6624_v16, %v6624_v16  ;;  %v6684_v7 = vunpack.c.l.bf16 %v5342_v50  ;;  %v6686_v15 = vunpack.c.h.bf16 %v5342_v50  ;;  %v5343_v50 = vld [vmem:[%s6516_s23 + $0x38] sm:$0xff]  }
 0x428   : > { %5509 = vmatprep.subr.bf16.mxu0 %v5856_v13  ;;  %v1926_v41 = vpack.c.bf16 %v1896_v26, %v1895_v18  ;;  %v1848_v18 = vmul.f32 %v6657_v61, %v6147_v21 }
 0x429   : > { %7995 = vst [vmem:[#allocation36_spill] sm:$0xff] %v6645_v20  ;;  %v1842_v46 = vmul.f32 %v6645_v20, %v6147_v21  ;;  %8001 = vst [vmem:[#allocation42_spill] sm:$0xff] %v6684_v7 }
 0x42a   : > { %8002 = vst [vmem:[#allocation43_spill] sm:$0xff] %v6686_v15 }
 0x42b   : > { %5510 = vmatpush3.bf16.msra.mxu0 %v5856_v13  ;;  %v6649_v13 = vcombine.high %v6626_v17, %v6626_v17 }
 0x42c   : > { %5511 = vmatprep.subr.bf16.mxu0 %v5857_v0 }
 0x42d   : > { %7996 = vst [vmem:[#allocation37_spill] sm:$0xff] %v6649_v13  ;;  %v1844_v63 = vmul.f32 %v6649_v13, %v6147_v21 }
 0x42f   : > { %5512 = vmatpush3.bf16.msra.mxu0 %v5857_v0  ;;  %v6653_v0 = vcombine.high %v6628_v62, %v6628_v62  ;;  %v1900_v2 = vcombine.low %v1843_v49, %v1844_v63 }
 0x430   : > { %5513 = vmatprep.subr.bf16.mxu0 %v5858_v32 }
 0x431   : > { %7997 = vst [vmem:[#allocation38_spill] sm:$0xff] %v6653_v0 }
 0x433   : > { %5514 = vmatpush3.bf16.msra.mxu0 %v5858_v32  ;;  %v5341_v32 = vld [vmem:[%s6516_s23 + $0x28] sm:$0xff]  }
 0x434   : > { %5515 = vmatprep.subr.bf16.mxu0 %v5859_v31  ;;  %v6672_v19 = vunpack.c.l.bf16 %v5341_v32  ;;  %v6674_v36 = vunpack.c.h.bf16 %v5341_v32 }
 0x436   : > { %7999 = vst [vmem:[#allocation40_spill] sm:$0xff] %v6672_v19  ;;  %8000 = vst [vmem:[#allocation41_spill] sm:$0xff] %v6674_v36  ;;  %v6691_v32 = vcombine.high %v6672_v19, %v6672_v19  ;;  %v6695_v57 = vcombine.high %v6674_v36, %v6674_v36  ;;  %v1851_v49 = vmul.f32 %v6674_v36, %v6147_v21 }
 0x437   : > { %5516 = vmatpush3.bf16.msra.mxu0 %v5859_v31  ;;  %v1898_v31 = vcombine.low %v1839_v6, %v1840_v12  ;;  %v1845_v6 = vmul.f32 %v6628_v62, %v6147_v21  ;;  %v1846_v12 = vmul.f32 %v6653_v0, %v6147_v21 }
 0x438   : > { %5517 = vmatprep.subr.bf16.mxu0 %v5860_v42  ;;  %8003 = vst [vmem:[#allocation44_spill] sm:$0xff] %v6691_v32  ;;  %8004 = vst [vmem:[#allocation45_spill] sm:$0xff] %v6695_v57 }
 0x439   : > { %v1927_v26 = vpack.c.bf16 %v1898_v31, %v1897_v22  ;;  %v1901_v56 = vcombine.low %v1845_v6, %v1846_v12  ;;  %v6699_v22 = vcombine.high %v6684_v7, %v6684_v7  ;;  %v6703_v31 = vcombine.high %v6686_v15, %v6686_v15 }
 0x43a   : > { %v6716_v12 = vunpack.c.l.bf16 %v5343_v50 }
 0x43b   : > { %5518 = vmatpush3.bf16.msra.mxu0 %v5860_v42  ;;  %v1841_v42 = vmul.f32 %v6624_v16, %v6147_v21  ;;  %8005 = vst [vmem:[#allocation46_spill] sm:$0xff] %v6699_v22  ;;  %8006 = vst [vmem:[#allocation47_spill] sm:$0xff] %v6703_v31  ;;  %v1856_v54 = vmul.f32 %v6703_v31, %v6147_v21 }
 0x43c   : > { %5519 = vmatprep.subr.bf16.mxu0 %v5861_v43  ;;  %8007 = vst [vmem:[#allocation48_spill] sm:$0xff] %v6716_v12 }
 0x43d   : > { %v1899_v55 = vcombine.low %v1841_v42, %v1842_v46  ;;  %v1850_v42 = vmul.f32 %v6691_v32, %v6147_v21  ;;  %v1852_v46 = vmul.f32 %v6695_v57, %v6147_v21 }
 0x43f   : > { %5520 = vmatpush3.bf16.msra.mxu0 %v5861_v43  ;;  %v1847_v43 = vmul.f32 %v6630_v8, %v6147_v21  ;;  %v1928_v63 = vpack.c.bf16 %v1900_v2, %v1899_v55  ;;  %v6732_v2 = vcombine.high %v6716_v12, %v6716_v12 }
 0x440   : > { %5521 = vmatprep.subr.bf16.mxu0 %v5862_v53 }
 0x441   : > { %8009 = vst [vmem:[#allocation50_spill] sm:$0xff] %v6732_v2 }
 0x443   : > { %5522 = vmatpush3.bf16.msra.mxu0 %v5862_v53  ;;  %v1902_v53 = vcombine.low %v1847_v43, %v1848_v18  ;;  %v6718_v43 = vunpack.c.h.bf16 %v5343_v50  ;;  %v1854_v18 = vmul.f32 %v6699_v22, %v6147_v21 }
 0x444   : > { %5559 = vmatprep.subr.bf16.mxu0 %v6354_v52 }
 0x445   : > { %v1929_v6 = vpack.c.bf16 %v1902_v53, %v1901_v56  ;;  %8008 = vst [vmem:[#allocation49_spill] sm:$0xff] %v6718_v43  ;;  %v1904_v56 = vcombine.low %v1851_v49, %v1852_v46  ;;  %v6736_v53 = vcombine.high %v6718_v43, %v6718_v43  ;;  %v1859_v49 = vmul.f32 %v6718_v43, %v6147_v21 }
 0x446   : > { %5524 = vmatmul.mubr.bf16.vlgmr.msra.gmra.mxu0 %v1926_v41  ;;  %v1849_v41 = vmul.f32 %v6672_v19, %v6147_v21 }
 0x447   : > { %5527 = vmatprep.mubr.bf16.mxu0 %v1927_v26  ;;  %5560 = vmatpush3.bf16.msra.mxu0 %v6354_v52  ;;  %v1853_v52 = vmul.f32 %v6684_v7, %v6147_v21  ;;  %v1855_v26 = vmul.f32 %v6686_v15, %v6147_v21  ;;  %8010 = vst [vmem:[#allocation51_spill] sm:$0xff] %v6736_v53 }
 0x448   : > { %5561 = vmatprep.subr.bf16.mxu0 %v6367_v29  ;;  %v1903_v55 = vcombine.low %v1849_v41, %v1850_v42  ;;  %v1857_v41 = vmul.f32 %v6716_v12, %v6147_v21  ;;  %v1858_v42 = vmul.f32 %v6732_v2, %v6147_v21  ;;  %v1860_v46 = vmul.f32 %v6736_v53, %v6147_v21  ;;  %v2091_v53 = vpop.permute.xlu1 %2090 }
 0x449   : > { %v1905_v50 = vcombine.low %v1853_v52, %v1854_v18  ;;  %v1906_v60 = vcombine.low %v1855_v26, %v1856_v54 }
 0x44a   : > { %v1907_v54 = vcombine.low %v1857_v41, %v1858_v42 }
 0x44b   : > { %5562 = vmatpush3.bf16.msra.mxu0 %v6367_v29  ;;  %v1930_v29 = vpack.c.bf16 %v1904_v56, %v1903_v55 }
 0x44c   : > { %5563 = vmatprep.subr.bf16.mxu0 %v6379_v30  ;;  %v2196_v57 = vpop.permute.xlu1 %2195 }
 0x44e   : > { %5528 = vmatmul.mubr.bf16.gmra.mxu0 %v1928_v63  ;;  %v1931_v63 = vpack.c.bf16 %v1906_v60, %v1905_v50 }
 0x44f   : > { %5531 = vmatprep.mubr.bf16.mxu0 %v1929_v6  ;;  %5564 = vmatpush3.bf16.msra.mxu0 %v6379_v30  ;;  %v1908_v30 = vcombine.low %v1859_v49, %v1860_v46  ;;  %v5445_v6 = vpop.f32.mrf.mxu0 }
 0x450   : > { %5565 = vmatprep.subr.bf16.mxu0 %v6390_v33  ;;  %vm787_vm7 = vcmp.ge.f32.partialorder %v5445_v6, 0.0 }
 0x451   : > { %v1932_v52 = vpack.c.bf16 %v1908_v30, %v1907_v54  ;;  %v770_v18 = vpop.f32.mrf.mxu0 }
 0x452   : > { %v789_v26 = vmul.f32 0.2, %v770_v18  ;;  %vm785_vm2 = vcmp.ge.f32.partialorder %v770_v18, 0.0 }
 0x453   : > { %5566 = vmatpush3.bf16.msra.mxu0 %v6390_v33  ;;  %v5446_v60 = vpop.f32.mrf.mxu0 }
 0x454   : > { %5567 = vmatprep.subr.bf16.mxu0 %v6401_v35  ;;  %v793_v56 = vsel %vm785_vm2, %v770_v18, %v789_v26  ;;  %vm788_vm8 = vcmp.ge.f32.partialorder %v5446_v60, 0.0  ;;  %v2084_v26 = vpop.permute.xlu0 %2083 }
 0x455   : > { %v773_v33 = vpop.f32.mrf.mxu0 }
 0x456   : > { %5532 = vmatmul.mubr.bf16.gmra.mxu0 %v1930_v29  ;;  %v790_v55 = vmul.f32 0.2, %v773_v33  ;;  %vm786_vm3 = vcmp.ge.f32.partialorder %v773_v33, 0.0  ;;  %v792_v29 = vmul.f32 0.2, %v5446_v60 }
 0x457   : > { %5535 = vmatprep.mubr.bf16.mxu0 %v1931_v63  ;;  %5568 = vmatpush3.bf16.msra.mxu0 %v6401_v35  ;;  %v8011_v35 = vmov 0.0  }
 0x458   : > { %5569 = vmatprep.subr.bf16.mxu0 %v6412_v48  ;;  %v794_v50 = vsel %vm786_vm3, %v773_v33, %v790_v55  ;;  %v796_v63 = vsel %vm788_vm8, %v5446_v60, %v792_v29  ;;  %v2140_v55 = vpop.permute.xlu0 %2139 }
 0x459   : > { %v6766_v49 = vpop.f32.mrf.mxu1 }
 0x45a   : > { %8012 = vst [vmem:[#allocation52_spill] sm:$0xff] %v6766_v49 }
 0x45b   : > { %5570 = vmatpush3.bf16.msra.mxu0 %v6412_v48  ;;  %v681_v48 = vld [vmem:[%s6761_s24] sm:$0xff]  ;;  %v5505_v46 = vpop.f32.mrf.mxu1 }
 0x45c   : > { %5571 = vmatprep.subr.bf16.mxu0 %v6422_v3  ;;  %vm797_vm5 = vcmp.eq.s32.totalorder %v681_v48, 1  ;;  %vm800_vm6 = vcmp.eq.s32.totalorder %v681_v48, 2  ;;  %vm803_vm1 = vcmp.eq.s32.totalorder %v681_v48, 3  ;;  %vm806_vm0 = vcmp.eq.s32.totalorder %v681_v48, 4 }
 0x45d   : > { %v798_v41 = vsel %vm797_vm5, %v793_v56, 0.0  ;;  %v801_v42 = vsel %vm800_vm6, %v794_v50, 0.0  ;;  %v807_v58 = vsel %vm806_vm0, %v796_v63, 0.0  ;;  %v2147_v56 = vpop.permute.xlu0 %2146 }
 0x45e   : > { %5536 = vmatmul.mubr.bf16.gmra.mxu0 %v1932_v52  ;;  %v802_v54 = vadd.f32 %v801_v42, %v798_v41  ;;  %v1761_v52 = vpop.f32.mrf.mxu1 }
 0x45f   : > { %5572 = vmatpush3.bf16.msra.mxu0 %v6422_v3  ;;  %v791_v3 = vmul.f32 0.2, %v5445_v6 }
 0x460   : > { %5573 = vmatprep.subr.bf16.mxu0 %v6437_v51  ;;  %v5506_v21 = vpop.f32.mrf.mxu1 }
 0x461   : > { %v2098_v50 = vpop.permute.xlu0 %2097 }
 0x463   : > { %5574 = vmatpush3.bf16.msra.mxu0 %v6437_v51  ;;  %v795_v51 = vsel %vm787_vm7, %v5445_v6, %v791_v3  ;;  %v2252_v6 = vpop.permute.xlu1 %2251 }
 0x464   : > { %5599 = vmatprep.subr.bf16.mxu0 %v8011_v35  ;;  %v804_v30 = vsel %vm803_vm1, %v795_v51, 0.0 }
 0x465   : > { %v805_v18 = vadd.f32 %v804_v30, %v802_v54  ;;  %v2154_v49 = vpop.permute.xlu0 %2153 }
 0x467   : > { %v6768_v33 = vadd.f32 %v807_v58, %v805_v18  ;;  %v6772_v60 = vpop.permute.xlu1 %2104 }
 0x469   : > { %8013 = vst [vmem:[#allocation53_spill] sm:$0xff] %v6768_v33  ;;  %v6770_v3 = vpop.permute.xlu0 %2202 }
 0x46b   : > { %v6778_v21 = vpop.permute.xlu1 %2209 }
 0x46d   : > { %v6774_v48 = vpop.permute.xlu0 %2258 }
 0x46f   : > { %v2112_v46 = vpop.permute.xlu1 %2111 }
 0x471   : > { %v6780_v42 = vpop.permute.xlu0 %2160 }
 0x473   : > { %v6784_v54 = vpop.permute.xlu1 %2216 }
 0x475   : > { %v6782_v63 = vpop.permute.xlu0 %2265 }
 0x477   : > { %v2119_v52 = vpop.permute.xlu1 %2118 }
 0x479   : > { %v2168_v30 = vpop.permute.xlu0 %2167 }
 0x47b   : > { %v6788_v33 = vpop.permute.xlu1 %2223 }
 0x47d   : > { %v6786_v18 = vpop.permute.xlu0 %2272 }
 0x481   : > { %v2175_v43 = vpop.permute.xlu0 %2174 }
 0x485   : > { %v6800_v15 = vpop.permute.xlu0 %2279 }
 0x4e6   : > { %v6776_v29 = vpop.f32.mrf.mxu0 }
 0x4e7   : > { %8014 = vst [vmem:[#allocation54_spill] sm:$0xff] %v6776_v29  ;;  %v2126_v29 = vpop.permute.xlu1 %2125 }
 0x4e8   : > { %v5485_v58 = vpop.f32.mrf.mxu0 }
 0x4e9   : > { %v6793_v58 = vld [vmem:[%s7893_s9] ss:$0 sm:$0xff] }
 0x4ea   : > { %v1673_v41 = vpop.f32.mrf.mxu0  ;;  %v2302_v2 = vmul.f32 %v6793_v58, %v2084_v26  ;;  %v2303_v32 = vmul.f32 %v6793_v58, %v2091_v53  ;;  %v2308_v31 = vmul.f32 %v6793_v58, %v2126_v29  ;;  %v2310_v26 = vmul.f32 %v6793_v58, %v2140_v55 }
 0x4eb   : > { %v2306_v41 = vmul.f32 %v6793_v58, %v2112_v46  ;;  %v6802_v62 = vpop.permute.xlu1 %2230  ;;  %v6809_v29 = vmul.f32 %v6793_v58, %v2196_v57 }
 0x4ec   : > { %v5486_v51 = vpop.f32.mrf.mxu0 }
 0x4ed   : > { %v2307_v51 = vmul.f32 %v6793_v58, %v2119_v52 }
 0x4ef   : > { %v2133_v38 = vpop.permute.xlu1 %2132 }
 0x506   : > { %v5525_v36 = vpop.f32.mrf.mxu0 }
 0x507   : > { %v2048_v7 = vcombine.high %v5525_v36, %v5525_v36  ;;  %v2338_v12 = vadd.f32 %v5525_v36, %v2306_v41  ;;  %v2314_v36 = vmul.f32 %v6793_v58, %v2168_v30 }
 0x508   : > { %v1967_v19 = vpop.f32.mrf.mxu0 }
 0x509   : > { %v2339_v61 = vadd.f32 %v2307_v51, %v2048_v7  ;;  %v2402_v22 = vmul.f32 0.2, %v2338_v12  ;;  %v2046_v8 = vcombine.high %v1967_v19, %v1967_v19  ;;  %v2334_v0 = vadd.f32 %v2302_v2, %v1967_v19 }
 0x50a   : > { %v6804_v46 = vpop.f32.mrf.mxu0  ;;  %vm2370_vm0 = vcmp.ge.f32.partialorder %v2338_v12, 0.0  ;;  %v2311_v19 = vmul.f32 %v6793_v58, %v2147_v56  ;;  %v6815_v2 = vmul.f32 %v6793_v58, %v2252_v6  ;;  %v6826_v56 = vmul.f32 %v6793_v58, %v2154_v49 }
 0x50b   : > { %v2335_v52 = vadd.f32 %v2303_v32, %v2046_v8  ;;  %v2398_v53 = vmul.f32 0.2, %v2334_v0  ;;  %v2434_v7 = vsel %vm2370_vm0, %v2338_v12, %v2402_v22  ;;  %vm2366_vm1 = vcmp.ge.f32.partialorder %v2334_v0, 0.0  ;;  %v6821_v8 = vld [vmem:[%s7894_s10] ss:$0 sm:$0xff] }
 0x50c   : > { %v6811_v41 = vpop.f32.mrf.mxu0  ;;  %v2403_v51 = vmul.f32 0.2, %v2339_v61  ;;  %v2340_v13 = vadd.f32 %v6804_v46, %v2308_v31  ;;  %vm2371_vm2 = vcmp.ge.f32.partialorder %v2339_v61, 0.0  ;;  %v2466_v57 = vmul.f32 %v6821_v8, %v2434_v7  ;;  %v2182_v31 = vpop.permute.xlu0 %2181 }
 0x50d   : > { %v2430_v32 = vsel %vm2366_vm1, %v2334_v0, %v2398_v53  ;;  %vm2367_vm3 = vcmp.ge.f32.partialorder %v2335_v52, 0.0  ;;  %v2399_v22 = vmul.f32 0.2, %v2335_v52  ;;  %v2304_v12 = vmul.f32 %v6793_v58, %v2098_v50 }
 0x50e   : > { %v5529_v55 = vpop.f32.mrf.mxu0  ;;  %v2315_v6 = vmul.f32 %v6793_v58, %v2175_v43  ;;  %v2506_v17 = vsel %vm1174_vm4, %v2466_v57, 0.0  ;;  %v2462_v20 = vmul.f32 %v6821_v8, %v2430_v32  ;;  %v2435_v0 = vsel %vm2371_vm2, %v2339_v61, %v2403_v51 }
 0x50f   : > { %v2346_v30 = vadd.f32 %v5529_v55, %v2314_v36  ;;  %v2431_v11 = vsel %vm2367_vm3, %v2335_v52, %v2399_v22  ;;  %v2336_v53 = vadd.f32 %v2304_v12, %v6811_v41  ;;  %v2052_v7 = vcombine.high %v5529_v55, %v5529_v55  ;;  %2507 = vadd.xlane.f32.xlu1 %v2506_v17 }
 0x510   : > { %v1983_v14 = vpop.f32.mrf.mxu0  ;;  %v6835_v43 = vmul.f32 %v6793_v58, %v6770_v3  ;;  %v2404_v36 = vmul.f32 0.2, %v2340_v13  ;;  %v2463_v57 = vmul.f32 %v6821_v8, %v2431_v11  ;;  %v2309_v52 = vmul.f32 %v6793_v58, %v2133_v38  ;;  %v6850_v12 = vpop.permute.xlu0 %2286 }
 0x511   : > { %v2410_v50 = vmul.f32 0.2, %v2346_v30  ;;  %v2342_v49 = vadd.f32 %v2310_v26, %v1983_v14  ;;  %vm2378_vm5 = vcmp.ge.f32.partialorder %v2346_v30, 0.0  ;;  %v2049_v61 = vcombine.high %v6804_v46, %v6804_v46 }
 0x512   : > { %v6837_v16 = vpop.f32.mrf.mxu0  ;;  %v2494_v51 = vsel %vm1174_vm4, %v2462_v20, 0.0  ;;  %v2467_v17 = vmul.f32 %v6821_v8, %v2435_v0  ;;  %v2497_v55 = vsel %vm1174_vm4, %v2463_v57, 0.0  ;;  %vm2372_vm6 = vcmp.ge.f32.partialorder %v2340_v13, 0.0 }
 0x513   : > { %v2406_v26 = vmul.f32 0.2, %v2342_v49  ;;  %v2442_v32 = vsel %vm2378_vm5, %v2346_v30, %v2410_v50  ;;  %v2305_v11 = vmul.f32 %v6793_v58, %v6772_v60  ;;  %v2400_v22 = vmul.f32 0.2, %v2336_v53  ;;  %2495 = vadd.xlane.f32.xlu1 %v2494_v51  ;;  %2498 = vadd.xlane.f32.xlu0 %v2497_v55 }
 0x514   : > { %v6846_v3 = vpop.f32.mrf.mxu0  ;;  %v2347_v38 = vadd.f32 %v2315_v6, %v2052_v7  ;;  %v2050_v28 = vcombine.high %v1983_v14, %v1983_v14  ;;  %v2474_v20 = vmul.f32 %v6821_v8, %v2442_v32  ;;  %v2436_v46 = vsel %vm2372_vm6, %v2340_v13, %v2404_v36  ;;  %v2189_v51 = vpop.permute.xlu0 %2188 }
 0x515   : > { %vm2374_vm7 = vcmp.ge.f32.partialorder %v2342_v49, 0.0  ;;  %vm2368_vm8 = vcmp.ge.f32.partialorder %v2336_v53, 0.0  ;;  %v6855_v0 = vmul.f32 %v6793_v58, %v6778_v21  ;;  %v6859_v30 = vmul.f32 %v6793_v58, %v6780_v42 }
 0x516   : > { %v2316_v60 = vmul.f32 %v6793_v58, %v2182_v31  ;;  %v2341_v50 = vadd.f32 %v2309_v52, %v2049_v61  ;;  %v6862_v6 = vpop.f32.mrf.mxu0  ;;  %v2509_v14 = vsel %vm1174_vm4, %v2467_v17, 0.0  ;;  %v2530_v7 = vsel %vm1174_vm4, %v2474_v20, 0.0 }
 0x517   : > { %v2468_v13 = vmul.f32 %v6821_v8, %v2436_v46  ;;  %v2438_v36 = vsel %vm2374_vm7, %v2342_v49, %v2406_v26  ;;  %v2047_v21 = vcombine.high %v6811_v41, %v6811_v41  ;;  %v2343_v57 = vadd.f32 %v2311_v19, %v2050_v28  ;;  %2510 = vadd.xlane.f32.xlu1 %v2509_v14 }
 0x518   : > { %2531 = vadd.xlane.f32.xlu0 %v2530_v7  ;;  %v2432_v42 = vsel %vm2368_vm8, %v2336_v53, %v2400_v22  ;;  %v6871_v31 = vmul.f32 %v6793_v58, %v6784_v54  ;;  %v2322_v52 = vmul.f32 %v6793_v58, %v6788_v33  ;;  %v2470_v61 = vmul.f32 %v6821_v8, %v2438_v36  ;;  %v1999_v53 = vpop.f32.mrf.mxu0 }
 0x519   : > { %vm2379_vm0 = vcmp.ge.f32.partialorder %v2347_v38, 0.0  ;;  %v6878_v49 = vmul.f32 %v6793_v58, %v6800_v15  ;;  %v2348_v28 = vadd.f32 %v6837_v16, %v2316_v60  ;;  %v2512_v41 = vsel %vm1174_vm4, %v2468_v13, 0.0 }
 0x51a   : > { %v2411_v19 = vmul.f32 0.2, %v2347_v38  ;;  %v2518_v54 = vsel %vm1174_vm4, %v2470_v61, 0.0  ;;  %v2464_v17 = vmul.f32 %v6821_v8, %v2432_v42  ;;  %vm2373_vm1 = vcmp.ge.f32.partialorder %v2341_v50, 0.0 }
 0x51b   : > { %v2405_v33 = vmul.f32 0.2, %v2341_v50  ;;  %v2337_v26 = vadd.f32 %v2305_v11, %v2047_v21  ;;  %v2344_v55 = vadd.f32 %v6826_v56, %v6846_v3  ;;  %2513 = vadd.xlane.f32.xlu1 %v2512_v41  ;;  %vm2375_vm2 = vcmp.ge.f32.partialorder %v2343_v57, 0.0  ;;  %v6893_v56 = vpop.f32.mrf.mxu0 }
 0x51c   : > { %2519 = vadd.xlane.f32.xlu0 %v2518_v54  ;;  %v2443_v15 = vsel %vm2379_vm0, %v2347_v38, %v2411_v19  ;;  %v2317_v32 = vmul.f32 %v6793_v58, %v2189_v51  ;;  %v2407_v46 = vmul.f32 0.2, %v2343_v57  ;;  %v2053_v60 = vcombine.high %v6837_v16, %v6837_v16 }
 0x51d   : > { %v2475_v22 = vmul.f32 %v6821_v8, %v2443_v15  ;;  %v2437_v20 = vsel %vm2373_vm1, %v2341_v50, %v2405_v33  ;;  %v2412_v14 = vmul.f32 0.2, %v2348_v28  ;;  %v2051_v11 = vcombine.high %v6846_v3, %v6846_v3  ;;  %v2002_v54 = vpop.f32.mrf.mxu0 }
 0x51e   : > { %v2354_v7 = vadd.f32 %v6862_v6, %v2322_v52  ;;  %v2500_v38 = vsel %vm1174_vm4, %v2464_v17, 0.0  ;;  %v2469_v36 = vmul.f32 %v6821_v8, %v2437_v20  ;;  %v2439_v21 = vsel %vm2375_vm2, %v2343_v57, %v2407_v46 }
 0x51f   : > { %v2533_v13 = vsel %vm1174_vm4, %v2475_v22, 0.0  ;;  %v2408_v50 = vmul.f32 0.2, %v2344_v55  ;;  %v2056_v42 = vcombine.high %v6862_v6, %v6862_v6  ;;  %v2350_v16 = vadd.f32 %v6809_v29, %v1999_v53  ;;  %2501 = vadd.xlane.f32.xlu1 %v2500_v38 }
 0x520   : > { %2534 = vadd.xlane.f32.xlu0 %v2533_v13  ;;  %vm2369_vm3 = vcmp.ge.f32.partialorder %v2337_v26, 0.0  ;;  %v2054_v3 = vcombine.high %v1999_v53, %v1999_v53  ;;  %v2471_v52 = vmul.f32 %v6821_v8, %v2439_v21  ;;  %v2401_v61 = vmul.f32 0.2, %v2337_v26  ;;  %v2238_v13 = vpop.permute.xlu1 %2237 }
 0x521   : > { %vm2380_vm5 = vcmp.ge.f32.partialorder %v2348_v28, 0.0  ;;  %v2323_v51 = vmul.f32 %v6793_v58, %v6802_v62  ;;  %v2349_v41 = vadd.f32 %v2317_v32, %v2053_v60  ;;  %v2418_v19 = vmul.f32 0.2, %v2354_v7  ;;  %v5537_v60 = vpop.f32.mrf.mxu0 }
 0x522   : > { %v2444_v57 = vsel %vm2380_vm5, %v2348_v28, %v2412_v14  ;;  %v2515_v17 = vsel %vm1174_vm4, %v2469_v36, 0.0  ;;  %v2521_v6 = vsel %vm1174_vm4, %v2471_v52, 0.0  ;;  %v2433_v29 = vsel %vm2369_vm3, %v2337_v26, %v2401_v61 }
 0x523   : > { %v2476_v33 = vmul.f32 %v6821_v8, %v2444_v57  ;;  %v2345_v53 = vadd.f32 %v6859_v30, %v2051_v11  ;;  %v2414_v15 = vmul.f32 0.2, %v2350_v16  ;;  %2516 = vadd.xlane.f32.xlu1 %v2515_v17  ;;  %v2465_v22 = vmul.f32 %v6821_v8, %v2433_v29 }
 0x524   : > { %2522 = vadd.xlane.f32.xlu0 %v2521_v6  ;;  %vm2376_vm6 = vcmp.ge.f32.partialorder %v2344_v55, 0.0  ;;  %v2355_v62 = vadd.f32 %v2323_v51, %v2056_v42  ;;  %v2351_v32 = vadd.f32 %v6835_v43, %v2054_v3  ;;  %vm2386_vm7 = vcmp.ge.f32.partialorder %v2354_v7, 0.0 }
 0x525   : > { %v2440_v28 = vsel %vm2376_vm6, %v2344_v55, %v2408_v50  ;;  %v2055_v20 = vcombine.high %v2002_v54, %v2002_v54  ;;  %v2503_v46 = vsel %vm1174_vm4, %v2465_v22, 0.0  ;;  %v2536_v26 = vsel %vm1174_vm4, %v2476_v33, 0.0 }
 0x526   : > { %vm2381_vm8 = vcmp.ge.f32.partialorder %v2349_v41, 0.0  ;;  %v2472_v30 = vmul.f32 %v6821_v8, %v2440_v28  ;;  %v2450_v14 = vsel %vm2386_vm7, %v2354_v7, %v2418_v19  ;;  %v2413_v11 = vmul.f32 0.2, %v2349_v41 }
 0x527   : > { %vm2382_vm0 = vcmp.ge.f32.partialorder %v2350_v16, 0.0  ;;  %v2352_v38 = vadd.f32 %v6855_v0, %v2002_v54  ;;  %2504 = vadd.xlane.f32.xlu1 %v2503_v46  ;;  %v2482_v43 = vmul.f32 %v6821_v8, %v2450_v14  ;;  %v2331_v36 = vmul.f32 %v6793_v58, %v6850_v12  ;;  %v2015_v0 = vpop.f32.mrf.mxu0 }
 0x528   : > { %2537 = vadd.xlane.f32.xlu0 %v2536_v26  ;;  %v2446_v55 = vsel %vm2382_vm0, %v2350_v16, %v2414_v15  ;;  %v2060_v21 = vcombine.high %v5537_v60, %v5537_v60  ;;  %v2445_v50 = vsel %vm2381_vm8, %v2349_v41, %v2413_v11  ;;  %vm2377_vm1 = vcmp.ge.f32.partialorder %v2345_v53, 0.0  ;;  %v2245_v15 = vpop.permute.xlu1 %2244 }
 0x529   : > { %v2362_v42 = vadd.f32 %v5537_v60, %v6878_v49  ;;  %v2524_v7 = vsel %vm1174_vm4, %v2472_v30, 0.0  ;;  %v2478_v3 = vmul.f32 %v6821_v8, %v2446_v55  ;;  %v2409_v52 = vmul.f32 0.2, %v2345_v53  ;;  %v2294_v60 = vpop.permute.xlu0 %2293 }
 0x52a   : > { %v2554_v61 = vsel %vm1174_vm4, %v2482_v43, 0.0  ;;  %v2477_v51 = vmul.f32 %v6821_v8, %v2445_v50  ;;  %vm2387_vm2 = vcmp.ge.f32.partialorder %v2355_v62, 0.0  ;;  %v2419_v16 = vmul.f32 0.2, %v2355_v62  ;;  %v6936_v43 = vpop.f32.mrf.mxu0 }
 0x52b   : > { %v2353_v19 = vadd.f32 %v6871_v31, %v2055_v20  ;;  %v2416_v12 = vmul.f32 0.2, %v2352_v38  ;;  %2555 = vadd.xlane.f32.xlu1 %v2554_v61  ;;  %v2441_v41 = vsel %vm2377_vm1, %v2345_v53, %v2409_v52  ;;  %v2415_v57 = vmul.f32 0.2, %v2351_v32 }
 0x52c   : > { %2525 = vadd.xlane.f32.xlu0 %v2524_v7  ;;  %v2327_v49 = vmul.f32 %v6793_v58, %v6774_v48  ;;  %v2451_v54 = vsel %vm2387_vm2, %v2355_v62, %v2419_v16  ;;  %vm2383_vm3 = vcmp.ge.f32.partialorder %v2351_v32, 0.0  ;;  %vm2384_vm5 = vcmp.ge.f32.partialorder %v2352_v38, 0.0 }
 0x52d   : > { %v2363_v17 = vadd.f32 %v2331_v36, %v2060_v21  ;;  %v2426_v6 = vmul.f32 0.2, %v2362_v42  ;;  %v2058_v29 = vcombine.high %v2015_v0, %v2015_v0  ;;  %v2324_v33 = vmul.f32 %v6793_v58, %v2238_v13 }
 0x52e   : > { %v2539_v22 = vsel %vm1174_vm4, %v2477_v51, 0.0  ;;  %v2542_v31 = vsel %vm1174_vm4, %v2478_v3, 0.0  ;;  %v2473_v28 = vmul.f32 %v6821_v8, %v2441_v41  ;;  %v2483_v53 = vmul.f32 %v6821_v8, %v2451_v54  ;;  %v2301_v54 = vpop.permute.xlu0 %2300 }
 0x52f   : > { %v2358_v20 = vadd.f32 %v6815_v2, %v2015_v0  ;;  %2543 = vadd.xlane.f32.xlu1 %v2542_v31  ;;  %v2447_v48 = vsel %vm2383_vm3, %v2351_v32, %v2415_v57  ;;  %v2448_v62 = vsel %vm2384_vm5, %v2352_v38, %v2416_v12  ;;  %v2417_v46 = vmul.f32 0.2, %v2353_v19  ;;  %v2018_v0 = vpop.f32.mrf.mxu0 }
 0x530   : > { %2540 = vadd.xlane.f32.xlu0 %v2539_v22  ;;  %v2325_v26 = vmul.f32 %v6793_v58, %v2245_v15  ;;  %vm2385_vm6 = vcmp.ge.f32.partialorder %v2353_v19, 0.0  ;;  %vm2394_vm7 = vcmp.ge.f32.partialorder %v2362_v42, 0.0  ;;  %v2057_v30 = vcombine.high %v6893_v56, %v6893_v56 }
 0x531   : > { %v2359_v14 = vadd.f32 %v2327_v49, %v2058_v29  ;;  %v2356_v11 = vadd.f32 %v6893_v56, %v2324_v33  ;;  %v2332_v13 = vmul.f32 %v6793_v58, %v2294_v60  ;;  %v2527_v2 = vsel %vm1174_vm4, %v2473_v28, 0.0 }
 0x532   : > { %v2557_v32 = vsel %vm1174_vm4, %v2483_v53, 0.0  ;;  %v2479_v38 = vmul.f32 %v6821_v8, %v2447_v48  ;;  %v2480_v55 = vmul.f32 %v6821_v8, %v2448_v62  ;;  %v2422_v36 = vmul.f32 0.2, %v2358_v20 }
 0x533   : > { %2558 = vadd.xlane.f32.xlu1 %v2557_v32  ;;  %v2449_v21 = vsel %vm2385_vm6, %v2353_v19, %v2417_v46  ;;  %v2458_v50 = vsel %vm2394_vm7, %v2362_v42, %v2426_v6  ;;  %v2427_v7 = vmul.f32 0.2, %v2363_v17  ;;  %vm2395_vm8 = vcmp.ge.f32.partialorder %v2363_v17, 0.0 }
 0x534   : > { %2528 = vadd.xlane.f32.xlu0 %v2527_v2  ;;  %vm2390_vm0 = vcmp.ge.f32.partialorder %v2358_v20, 0.0  ;;  %v2328_v56 = vmul.f32 %v6793_v58, %v6782_v63  ;;  %v2357_v3 = vadd.f32 %v2325_v26, %v2057_v30  ;;  %v2364_v52 = vadd.f32 %v6936_v43, %v2332_v13 }
 0x535   : > { %v2545_v61 = vsel %vm1174_vm4, %v2479_v38, 0.0  ;;  %v2548_v51 = vsel %vm1174_vm4, %v2480_v55, 0.0  ;;  %v2481_v16 = vmul.f32 %v6821_v8, %v2449_v21  ;;  %v2490_v12 = vmul.f32 %v6821_v8, %v2458_v50 }
 0x536   : > { %v2459_v42 = vsel %vm2395_vm8, %v2363_v17, %v2427_v7  ;;  %v2454_v19 = vsel %vm2390_vm0, %v2358_v20, %v2422_v36  ;;  %v2420_v41 = vmul.f32 0.2, %v2356_v11  ;;  %v2423_v57 = vmul.f32 0.2, %v2359_v14 }
 0x537   : > { %2549 = vadd.xlane.f32.xlu1 %v2548_v51  ;;  %vm2388_vm1 = vcmp.ge.f32.partialorder %v2356_v11, 0.0  ;;  %vm2391_vm2 = vcmp.ge.f32.partialorder %v2359_v14, 0.0  ;;  %v2059_v63 = vcombine.high %v2018_v0, %v2018_v0  ;;  %v2360_v49 = vadd.f32 %v2328_v56, %v2018_v0 }
 0x538   : > { %2546 = vadd.xlane.f32.xlu0 %v2545_v61  ;;  %v2551_v6 = vsel %vm1174_vm4, %v2481_v16, 0.0  ;;  %v2578_v29 = vsel %vm1174_vm4, %v2490_v12, 0.0  ;;  %v2491_v33 = vmul.f32 %v6821_v8, %v2459_v42  ;;  %v2486_v15 = vmul.f32 %v6821_v8, %v2454_v19 }
 0x539   : > { %v2428_v22 = vmul.f32 0.2, %v2364_v52  ;;  %v2452_v17 = vsel %vm2388_vm1, %v2356_v11, %v2420_v41  ;;  %v2455_v31 = vsel %vm2391_vm2, %v2359_v14, %v2423_v57  ;;  %v2421_v28 = vmul.f32 0.2, %v2357_v3 }
 0x53a   : > { %vm2389_vm3 = vcmp.ge.f32.partialorder %v2357_v3, 0.0  ;;  %vm2396_vm5 = vcmp.ge.f32.partialorder %v2364_v52, 0.0  ;;  %v2329_v53 = vmul.f32 %v6793_v58, %v6786_v18  ;;  %v2061_v20 = vcombine.high %v6936_v43, %v6936_v43 }
 0x53b   : > { %2552 = vadd.xlane.f32.xlu1 %v2551_v6  ;;  %v2333_v48 = vmul.f32 %v6793_v58, %v2301_v54  ;;  %v2581_v62 = vsel %vm1174_vm4, %v2491_v33, 0.0  ;;  %v2566_v46 = vsel %vm1174_vm4, %v2486_v15, 0.0  ;;  %v2484_v26 = vmul.f32 %v6821_v8, %v2452_v17 }
 0x53c   : > { %2579 = vadd.xlane.f32.xlu0 %v2578_v29  ;;  %v2487_v60 = vmul.f32 %v6821_v8, %v2455_v31  ;;  %v2361_v30 = vadd.f32 %v2329_v53, %v2059_v63  ;;  %v2424_v14 = vmul.f32 0.2, %v2360_v49  ;;  %v2453_v11 = vsel %vm2389_vm3, %v2357_v3, %v2421_v28 }
 0x53d   : > { %v2460_v13 = vsel %vm2396_vm5, %v2364_v52, %v2428_v22  ;;  %vm2392_vm6 = vcmp.ge.f32.partialorder %v2360_v49, 0.0  ;;  %v2560_v18 = vsel %vm1174_vm4, %v2484_v26, 0.0  ;;  %v2485_v58 = vmul.f32 %v6821_v8, %v2453_v11 }
 0x53e   : > { %v2569_v43 = vsel %vm1174_vm4, %v2487_v60, 0.0  ;;  %v2492_v2 = vmul.f32 %v6821_v8, %v2460_v13  ;;  %v2425_v32 = vmul.f32 0.2, %v2361_v30  ;;  %v2365_v38 = vadd.f32 %v2333_v48, %v2061_v20 }
 0x53f   : > { %2567 = vadd.xlane.f32.xlu1 %v2566_v46  ;;  %v2456_v55 = vsel %vm2392_vm6, %v2360_v49, %v2424_v14  ;;  %vm2393_vm7 = vcmp.ge.f32.partialorder %v2361_v30, 0.0  ;;  %v2563_v36 = vsel %vm1174_vm4, %v2485_v58, 0.0  ;;  %vm8015_vm0 = vcmask 31744  }
 0x540   : > { %2582 = vadd.xlane.f32.xlu0 %v2581_v62  ;;  %v2584_v21 = vsel %vm1174_vm4, %v2492_v2, 0.0  ;;  %v2488_v50 = vmul.f32 %v6821_v8, %v2456_v55  ;;  %v2429_v7 = vmul.f32 0.2, %v2365_v38  ;;  %v2457_v56 = vsel %vm2393_vm7, %v2361_v30, %v2425_v32  ;;  %vm8016_vm1 = vmmov %vm8015_vm0 }
 0x541   : > { %vm2397_vm8 = vcmp.ge.f32.partialorder %v2365_v38, 0.0  ;;  %v2489_v52 = vmul.f32 %v6821_v8, %v2457_v56  ;;  %vm8017_vm2 = vmmov %vm8015_vm0 }
 0x542   : > { %v2572_v3 = vsel %vm1174_vm4, %v2488_v50, 0.0  ;;  %v2461_v0 = vsel %vm2397_vm8, %v2365_v38, %v2429_v7  ;;  %vm8018_vm3 = vmmov %vm8015_vm0 }
 0x543   : > { %2561 = vadd.xlane.f32.xlu1 %v2560_v18  ;;  %v2575_v61 = vsel %vm1174_vm4, %v2489_v52, 0.0  ;;  %v2493_v51 = vmul.f32 %v6821_v8, %v2461_v0  ;;  %vm8019_vm5 = vmmov %vm8015_vm0 }
 0x544   : > { %2570 = vadd.xlane.f32.xlu0 %v2569_v43  ;;  %vm8020_vm6 = vmmov %vm8015_vm0 }
 0x545   : > { %v2587_v16 = vsel %vm1174_vm4, %v2493_v51, 0.0  ;;  %vm8021_vm7 = vmmov %vm8015_vm0 }
 0x546   : > { %vm8022_vm8 = vmmov %vm8015_vm0 }
 0x547   : > { %2564 = vadd.xlane.f32.xlu1 %v2563_v36 }
 0x548   : > { %2585 = vadd.xlane.f32.xlu0 %v2584_v21 }
 0x54c   : > { %2573 = vadd.xlane.f32.xlu0 %v2572_v3 }
 0x550   : > { %2576 = vadd.xlane.f32.xlu0 %v2575_v61 }
 0x554   : > { %2588 = vadd.xlane.f32.xlu0 %v2587_v16 }
 0x598   : > { %v6974_v12 = vpop.xlane.xlu1 %2507 }
 0x599   : > { %v2641_v20 = vrot.slane %v6974_v12, %v6247_v45 }
 0x59c   : > { %v6976_v42 = vpop.xlane.xlu1 %2495  ;;  %v6978_v19 = vpop.xlane.xlu0 %2498 }
 0x59d   : > { %v2625_v33 = vrot.slane %v6976_v42, %v6247_v45  ;;  %v2629_v15 = vrot.slane %v6978_v19, %v6247_v45 }
 0x59f   : > { %v2750_v28 = vsel %vm1241_vm9, %v2629_v15, %v2625_v33 }
 0x5a0   : > { %v6980_v41 = vpop.xlane.xlu1 %2510 }
 0x5a1   : > { %v6982_v57 = vpop.xlane.xlu0 %2531  ;;  %v2645_v62 = vrot.slane %v6980_v41, %v6247_v45 }
 0x5a2   : > { %v2673_v3 = vrot.slane %v6982_v57, %v6247_v45 }
 0x5a4   : > { %v6984_v63 = vpop.xlane.xlu1 %2513 }
 0x5a5   : > { %v6986_v49 = vpop.xlane.xlu0 %2519  ;;  %v2649_v26 = vrot.slane %v6984_v63, %v6247_v45 }
 0x5a6   : > { %v2657_v36 = vrot.slane %v6986_v49, %v6247_v45 }
 0x5a8   : > { %v6988_v54 = vpop.xlane.xlu1 %2501 }
 0x5a9   : > { %v6990_v8 = vpop.xlane.xlu0 %2534  ;;  %v2633_v22 = vrot.slane %v6988_v54, %v6247_v45 }
 0x5aa   : > { %v2677_v0 = vrot.slane %v6990_v8, %v6247_v45 }
 0x5ab   : > { %v2751_v48 = vsel %vm1243_vm10, %v2633_v22, %v2750_v28 }
 0x5ac   : > { %v6992_v6 = vpop.xlane.xlu1 %2516 }
 0x5ad   : > { %v6994_v29 = vpop.xlane.xlu0 %2522  ;;  %v2653_v11 = vrot.slane %v6992_v6, %v6247_v45 }
 0x5ae   : > { %v2661_v38 = vrot.slane %v6994_v29, %v6247_v45 }
 0x5b0   : > { %v7002_v17 = vpop.xlane.xlu1 %2504  ;;  %v2757_v7 = vsel %vm1241_vm9, %v2661_v38, %v2657_v36 }
 0x5b1   : > { %v7004_v31 = vpop.xlane.xlu0 %2537  ;;  %v2637_v53 = vrot.slane %v7002_v17, %v6247_v45 }
 0x5b2   : > { %v2681_v51 = vrot.slane %v7004_v31, %v6247_v45 }
 0x5b3   : > { %v2752_v46 = vsel %vm1245_vm11, %v2637_v53, %v2751_v48 }
 0x5b4   : > { %v7019_v30 = vpop.xlane.xlu1 %2555  ;;  %v2753_v14 = vsel %vm1247_vm12, %v2641_v20, %v2752_v46 }
 0x5b5   : > { %v7017_v60 = vpop.xlane.xlu0 %2525  ;;  %v2754_v13 = vsel %vm1249_vm13, %v2645_v62, %v2753_v14  ;;  %v2705_v36 = vrot.slane %v7019_v30, %v6247_v45 }
 0x5b6   : > { %v2755_v18 = vsel %vm1251_vm14, %v2649_v26, %v2754_v13  ;;  %v2665_v55 = vrot.slane %v7017_v60, %v6247_v45 }
 0x5b7   : > { %v2756_v43 = vsel %vm1253_vm15, %v2653_v11, %v2755_v18 }
 0x5b8   : > { %v7029_v2 = vpop.xlane.xlu1 %2543  ;;  %v2782_v32 = vsel %vm8015_vm0, %v2756_v43, -inf  ;;  %v2758_v52 = vsel %vm1243_vm10, %v2665_v55, %v2757_v7  ;;  %vm8024_vm0 = vmmov 0  }
 0x5b9   : > { %v7027_v58 = vpop.xlane.xlu0 %2540  ;;  %2783 = vmax.xlane.f32.xlu1 %v2782_v32  ;;  %v2689_v14 = vrot.slane %v7029_v2, %v6247_v45 }
 0x5ba   : > { %v2685_v22 = vrot.slane %v7027_v58, %v6247_v45 }
 0x5bc   : > { %v7040_v50 = vpop.xlane.xlu1 %2558 }
 0x5bd   : > { %v7038_v21 = vpop.xlane.xlu0 %2528 }
 0x5be   : > { %v2669_v56 = vrot.slane %v7038_v21, %v6247_v45 }
 0x5c0   : > { %v2759_v61 = vsel %vm1245_vm11, %v2669_v56, %v2758_v52  ;;  %v7055_v33 = vpop.xlane.xlu1 %2549 }
 0x5c1   : > { %v7053_v16 = vpop.xlane.xlu0 %2546  ;;  %v2760_v15 = vsel %vm1247_vm12, %v2673_v3, %v2759_v61  ;;  %v2697_v11 = vrot.slane %v7055_v33, %v6247_v45 }
 0x5c2   : > { %v2761_v28 = vsel %vm1249_vm13, %v2677_v0, %v2760_v15  ;;  %v2693_v20 = vrot.slane %v7053_v16, %v6247_v45  ;;  %v2709_v0 = vrot.slane %v7040_v50, %v6247_v45 }
 0x5c3   : > { %v2762_v53 = vsel %vm1251_vm14, %v2681_v51, %v2761_v28 }
 0x5c4   : > { %v2763_v48 = vsel %vm1253_vm15, %v2685_v22, %v2762_v53  ;;  %v7065_v62 = vpop.xlane.xlu1 %2552  ;;  %v2764_v13 = vsel %vm1241_vm9, %v2693_v20, %v2689_v14 }
 0x5c5   : > { %v7067_v46 = vpop.xlane.xlu0 %2579  ;;  %v2785_v26 = vsel %vm8016_vm1, %v2763_v48, -inf  ;;  %v2701_v18 = vrot.slane %v7065_v62, %v6247_v45  ;;  %v2765_v38 = vsel %vm1243_vm10, %v2697_v11, %v2764_v13 }
 0x5c6   : > { %2786 = vmax.xlane.f32.xlu0 %v2785_v26 }
 0x5c7   : > { %v2766_v55 = vsel %vm1245_vm11, %v2701_v18, %v2765_v38 }
 0x5c8   : > { %v7079_v32 = vpop.xlane.xlu1 %2567  ;;  %v2767_v52 = vsel %vm1247_vm12, %v2705_v36, %v2766_v55  ;;  %v2737_v55 = vrot.slane %v7067_v46, %v6247_v45 }
 0x5c9   : > { %v7077_v43 = vpop.xlane.xlu0 %2582  ;;  %v2768_v22 = vsel %vm1249_vm13, %v2709_v0, %v2767_v52  ;;  %v2721_v11 = vrot.slane %v7079_v32, %v6247_v45 }
 0x5cc   : > { %v7085_v7 = vpop.xlane.xlu1 %2561 }
 0x5cd   : > { %v7087_v56 = vpop.xlane.xlu0 %2570  ;;  %v2713_v3 = vrot.slane %v7085_v7, %v6247_v45 }
 0x5ce   : > { %v2725_v26 = vrot.slane %v7087_v56, %v6247_v45 }
 0x5cf   : > { %v2769_v28 = vsel %vm1251_vm14, %v2713_v3, %v2768_v22  ;;  %v2741_v3 = vrot.slane %v7077_v43, %v6247_v45 }
 0x5d0   : > { %v7094_v61 = vpop.xlane.xlu1 %2564  ;;  %v2771_v18 = vsel %vm1241_vm9, %v2725_v26, %v2721_v11 }
 0x5d1   : > { %v7096_v51 = vpop.xlane.xlu0 %2585  ;;  %v2717_v15 = vrot.slane %v7094_v61, %v6247_v45 }
 0x5d2   : > { %v2745_v0 = vrot.slane %v7096_v51, %v6247_v45 }
 0x5d3   : > { %v2770_v53 = vsel %vm1253_vm15, %v2717_v15, %v2769_v28 }
 0x5d4   : > { %v2788_v48 = vsel %vm8017_vm2, %v2770_v53, -inf }
 0x5d5   : > { %v7103_v20 = vpop.xlane.xlu0 %2573  ;;  %2789 = vmax.xlane.f32.xlu1 %v2788_v48 }
 0x5d6   : > { %v2729_v14 = vrot.slane %v7103_v20, %v6247_v45 }
 0x5d8   : > { %v2772_v36 = vsel %vm1243_vm10, %v2729_v14, %v2771_v18 }
 0x5d9   : > { %v7112_v13 = vpop.xlane.xlu0 %2576 }
 0x5da   : > { %v2733_v38 = vrot.slane %v7112_v13, %v6247_v45 }
 0x5dc   : > { %v2773_v52 = vsel %vm1245_vm11, %v2733_v38, %v2772_v36 }
 0x5dd   : > { %v7125_v15 = vpop.xlane.xlu0 %2588  ;;  %v2774_v22 = vsel %vm1247_vm12, %v2737_v55, %v2773_v52 }
 0x5de   : > { %v2749_v28 = vrot.slane %v7125_v15, %v6247_v45  ;;  %v2775_v53 = vsel %vm1249_vm13, %v2741_v3, %v2774_v22 }
 0x5df   : > { %v2776_v48 = vsel %vm1251_vm14, %v2745_v0, %v2775_v53 }
 0x5e0   : > { %v2777_v26 = vsel %vm1253_vm15, %v2749_v28, %v2776_v48 }
 0x5e1   : > { %v2791_v14 = vsel %vm8018_vm3, %v2777_v26, -inf }
 0x5e2   : > { %2792 = vmax.xlane.f32.xlu0 %v2791_v14 }
 0x642   : > { %v2784_v11 = vpop.xlane.xlu1 %2783 }
 0x643   : > { %v2801_v18 = vrot.slane %v2784_v11, %v6110_v5  ;;  %v2805_v38 = vrot.slane %v2784_v11, %v6126_v10  ;;  %v2809_v36 = vrot.slane %v2784_v11, %v6123_v9  ;;  %v2813_v55 = vrot.slane %v2784_v11, %v6151_v23 }
 0x644   : > { %v2817_v53 = vrot.slane %v2784_v11, %v6154_v24  ;;  %v2821_v14 = vrot.slane %v2784_v11, %v6157_v25 }
 0x645   : > { %v2958_v52 = vsub.f32 %v6976_v42, %v2801_v18  ;;  %v2959_v3 = vsub.f32 %v6978_v19, %v2805_v38  ;;  %v2960_v0 = vsub.f32 %v6988_v54, %v2809_v36  ;;  %v2961_v48 = vsub.f32 %v7002_v17, %v2813_v55 }
 0x646   : > { %v2962_v47 = vsub.f32 %v6974_v12, %v2817_v53  ;;  %v2825_v18 = vrot.slane %v2784_v11, %v6177_v37  ;;  %v2963_v38 = vsub.f32 %v6980_v41, %v2821_v14 }
 0x647   : > { %v2990_v22 = vmul.f32 1.442695, %v2958_v52  ;;  %v2992_v28 = vmul.f32 1.442695, %v2959_v3  ;;  %v2994_v26 = vmul.f32 1.442695, %v2960_v0  ;;  %v2829_v3 = vrot.slane %v2784_v11, %v6181_v40 }
 0x648   : > { %v2996_v44 = vmul.f32 1.442695, %v2961_v48  ;;  %v2998_v17 = vmul.f32 1.442695, %v2962_v47  ;;  %v2964_v0 = vsub.f32 %v6984_v63, %v2825_v18 }
 0x649   : > { %5761 = vpow2.f32 %v2990_v22  ;;  %v3000_v22 = vmul.f32 1.442695, %v2963_v38 }
 0x64a   : > { %5763 = vpow2.f32 %v2992_v28  ;;  %v3002_v63 = vmul.f32 1.442695, %v2964_v0 }
 0x64b   : > { %5765 = vpow2.f32 %v2994_v26 }
 0x64c   : > { %5767 = vpow2.f32 %v2996_v44 }
 0x64d   : > { %5769 = vpow2.f32 %v2998_v17 }
 0x64f   : > { %v2787_v42 = vpop.xlane.xlu0 %2786 }
 0x650   : > { %v2841_v19 = vrot.slane %v2787_v42, %v6123_v9  ;;  %v2845_v54 = vrot.slane %v2787_v42, %v6151_v23  ;;  %v2849_v55 = vrot.slane %v2787_v42, %v6154_v24  ;;  %v2853_v44 = vrot.slane %v2787_v42, %v6157_v25 }
 0x651   : > { %v2857_v48 = vrot.slane %v2787_v42, %v6177_v37  ;;  %v2861_v38 = vrot.slane %v2787_v42, %v6181_v40 }
 0x652   : > { %v2968_v36 = vsub.f32 %v7017_v60, %v2841_v19  ;;  %v2969_v52 = vsub.f32 %v7038_v21, %v2845_v54  ;;  %v2970_v47 = vsub.f32 %v6982_v57, %v2849_v55  ;;  %v2965_v60 = vsub.f32 %v6992_v6, %v2829_v3 }
 0x653   : > { %v2833_v21 = vrot.slane %v2787_v42, %v6110_v5  ;;  %v2971_v26 = vsub.f32 %v6990_v8, %v2853_v44  ;;  %v2837_v19 = vrot.slane %v2787_v42, %v6126_v10  ;;  %v2972_v17 = vsub.f32 %v7004_v31, %v2857_v48 }
 0x654   : > { %v3010_v12 = vmul.f32 1.442695, %v2968_v36  ;;  %v3012_v41 = vmul.f32 1.442695, %v2969_v52  ;;  %v3014_v57 = vmul.f32 1.442695, %v2970_v47 }
 0x655   : > { %v3004_v14 = vmul.f32 1.442695, %v2965_v60  ;;  %v2966_v6 = vsub.f32 %v6986_v49, %v2833_v21  ;;  %v3016_v8 = vmul.f32 1.442695, %v2971_v26  ;;  %v2967_v36 = vsub.f32 %v6994_v29, %v2837_v19 }
 0x656   : > { %v7154_v28 = vpop.eup %5761  ;;  %5771 = vpow2.f32 %v3010_v12  ;;  %v2973_v12 = vsub.f32 %v7027_v58, %v2861_v38  ;;  %v3018_v3 = vmul.f32 1.442695, %v2972_v17 }
 0x657   : > { %v7156_v53 = vpop.eup %5763  ;;  %3087 = vperm.xlu1 %5689, %v7154_v28   ;;  %5773 = vpow2.f32 %v3000_v22  ;;  %v3006_v55 = vmul.f32 1.442695, %v2966_v6  ;;  %v3008_v0 = vmul.f32 1.442695, %v2967_v36 }
 0x658   : > { %3090 = vperm.xlu0 %5688, %v7156_v53   ;;  %v7164_v11 = vpop.eup %5765  ;;  %5775 = vpow2.f32 %v3012_v41  ;;  %v3020_v58 = vmul.f32 1.442695, %v2973_v12 }
 0x659   : > { %5777 = vpow2.f32 %v3002_v63  ;;  %v7171_v54 = vpop.eup %5767 }
 0x65a   : > { %5779 = vpow2.f32 %v3014_v57  ;;  %v7181_v49 = vpop.eup %5769 }
 0x65b   : > { %3093 = vperm.xlu1 %5689, %v7164_v11   ;;  %5781 = vpow2.f32 %v3004_v14 }
 0x65c   : > { %5783 = vpow2.f32 %v3016_v8 }
 0x65d   : > { %5785 = vpow2.f32 %v3006_v55 }
 0x65e   : > { %v7173_v18 = vpop.xlane.xlu1 %2789  ;;  %5787 = vpow2.f32 %v3018_v3 }
 0x65f   : > { %3096 = vperm.xlu1 %5689, %v7171_v54   ;;  %v2865_v52 = vrot.slane %v7173_v18, %v6110_v5  ;;  %v2869_v31 = vrot.slane %v7173_v18, %v6126_v10  ;;  %v2873_v29 = vrot.slane %v7173_v18, %v6123_v9  ;;  %5789 = vpow2.f32 %v3008_v0 }
 0x660   : > { %v2877_v60 = vrot.slane %v7173_v18, %v6151_v23  ;;  %5791 = vpow2.f32 %v3020_v58 }
 0x661   : > { %v2974_v22 = vsub.f32 %v7029_v2, %v2865_v52  ;;  %v2975_v47 = vsub.f32 %v7053_v16, %v2869_v31  ;;  %v2976_v63 = vsub.f32 %v7055_v33, %v2873_v29  ;;  %v2881_v33 = vrot.slane %v7173_v18, %v6154_v24 }
 0x662   : > { %v2977_v19 = vsub.f32 %v7065_v62, %v2877_v60  ;;  %v2885_v62 = vrot.slane %v7173_v18, %v6157_v25 }
 0x663   : > { %3099 = vperm.xlu1 %5689, %v7181_v49   ;;  %v7187_v42 = vpop.eup %5771  ;;  %v3022_v21 = vmul.f32 1.442695, %v2974_v22  ;;  %v3024_v26 = vmul.f32 1.442695, %v2975_v47  ;;  %v3026_v6 = vmul.f32 1.442695, %v2976_v63 }
 0x664   : > { %3117 = vperm.xlu0 %5688, %v7187_v42   ;;  %v7193_v44 = vpop.eup %5773  ;;  %v3028_v12 = vmul.f32 1.442695, %v2977_v19  ;;  %v2979_v22 = vsub.f32 %v7040_v50, %v2885_v62  ;;  %v2889_v50 = vrot.slane %v7173_v18, %v6177_v37 }
 0x665   : > { %v7197_v41 = vpop.eup %5775  ;;  %5793 = vpow2.f32 %v3022_v21 }
 0x666   : > { %v7203_v2 = vpop.eup %5777  ;;  %5795 = vpow2.f32 %v3024_v26  ;;  %v3032_v26 = vmul.f32 1.442695, %v2979_v22 }
 0x667   : > { %3102 = vperm.xlu1 %5689, %v7193_v44   ;;  %v7212_v14 = vpop.eup %5779  ;;  %5797 = vpow2.f32 %v3026_v6 }
 0x668   : > { %3120 = vperm.xlu0 %5688, %v7197_v41   ;;  %v7219_v17 = vpop.eup %5781 }
 0x669   : > { %v7225_v52 = vpop.eup %5783 }
 0x66a   : > { %v7231_v3 = vpop.eup %5785 }
 0x66b   : > { %v7205_v48 = vpop.xlane.xlu0 %2792  ;;  %3105 = vperm.xlu1 %5689, %v7203_v2   ;;  %v7237_v29 = vpop.eup %5787 }
 0x66c   : > { %v2901_v16 = vrot.slane %v7205_v48, %v6126_v10  ;;  %v2905_v57 = vrot.slane %v7205_v48, %v6123_v9  ;;  %3123 = vperm.xlu0 %5688, %v7212_v14   ;;  %v2909_v8 = vrot.slane %v7205_v48, %v6151_v23  ;;  %v2897_v58 = vrot.slane %v7205_v48, %v6110_v5  ;;  %v7243_v47 = vpop.eup %5789 }
 0x66d   : > { %v2917_v60 = vrot.slane %v7205_v48, %v6157_v25  ;;  %v7249_v21 = vpop.eup %5791 }
 0x66e   : > { %v2983_v38 = vsub.f32 %v7087_v56, %v2901_v16  ;;  %v2984_v36 = vsub.f32 %v7103_v20, %v2905_v57  ;;  %v2978_v56 = vsub.f32 %v7019_v30, %v2881_v33  ;;  %v2913_v20 = vrot.slane %v7205_v48, %v6154_v24 }
 0x66f   : > { %3108 = vperm.xlu1 %5689, %v7219_v17   ;;  %v2985_v31 = vsub.f32 %v7112_v13, %v2909_v8  ;;  %v2982_v16 = vsub.f32 %v7079_v32, %v2897_v58  ;;  %v2987_v33 = vsub.f32 %v7077_v43, %v2917_v60  ;;  %v2980_v32 = vsub.f32 %v7085_v7, %v2889_v50 }
 0x670   : > { %v3040_v55 = vmul.f32 1.442695, %v2983_v38  ;;  %3126 = vperm.xlu0 %5688, %v7225_v52   ;;  %v3042_v0 = vmul.f32 1.442695, %v2984_v36  ;;  %v3030_v30 = vmul.f32 1.442695, %v2978_v56  ;;  %v2986_v13 = vsub.f32 %v7067_v46, %v2913_v20 }
 0x671   : > { %v3044_v63 = vmul.f32 1.442695, %v2985_v31  ;;  %v2921_v46 = vrot.slane %v7205_v48, %v6177_v37  ;;  %v2893_v38 = vrot.slane %v7173_v18, %v6181_v40  ;;  %v3038_v8 = vmul.f32 1.442695, %v2982_v16 }
 0x672   : > { %5799 = vpow2.f32 %v3040_v55  ;;  %v7255_v57 = vpop.eup %5793  ;;  %v3046_v19 = vmul.f32 1.442695, %v2986_v13  ;;  %v2925_v43 = vrot.slane %v7205_v48, %v6181_v40  ;;  %v3048_v56 = vmul.f32 1.442695, %v2987_v33 }
 0x673   : > { %3111 = vperm.xlu1 %5689, %v7231_v3   ;;  %5801 = vpow2.f32 %v3028_v12  ;;  %v7261_v6 = vpop.eup %5795  ;;  %v2988_v62 = vsub.f32 %v7096_v51, %v2921_v46  ;;  %v2981_v18 = vsub.f32 %v7094_v61, %v2893_v38  ;;  %v3034_v7 = vmul.f32 1.442695, %v2980_v32 }
 0x674   : > { %3129 = vperm.xlu0 %5688, %v7237_v29   ;;  %5803 = vpow2.f32 %v3042_v0  ;;  %v7267_v36 = vpop.eup %5797  ;;  %v2989_v20 = vsub.f32 %v7125_v15, %v2925_v43 }
 0x675   : > { %5805 = vpow2.f32 %v3030_v30  ;;  %v3050_v31 = vmul.f32 1.442695, %v2988_v62  ;;  %v3036_v51 = vmul.f32 1.442695, %v2981_v18 }
 0x676   : > { %5807 = vpow2.f32 %v3044_v63  ;;  %v3052_v61 = vmul.f32 1.442695, %v2989_v20 }
 0x677   : > { %3114 = vperm.xlu1 %5689, %v7243_v47   ;;  %5809 = vpow2.f32 %v3032_v26 }
 0x678   : > { %3132 = vperm.xlu0 %5688, %v7249_v21   ;;  %5811 = vpow2.f32 %v3046_v19 }
 0x679   : > { %5813 = vpow2.f32 %v3038_v8 }
 0x67a   : > { %5815 = vpow2.f32 %v3048_v56 }
 0x67b   : > { %3135 = vperm.xlu1 %5689, %v7255_v57   ;;  %5817 = vpow2.f32 %v3034_v7 }
 0x67c   : > { %3138 = vperm.xlu0 %5688, %v7261_v6   ;;  %5819 = vpow2.f32 %v3050_v31 }
 0x67d   : > { %5821 = vpow2.f32 %v3036_v51 }
 0x67e   : > { %5823 = vpow2.f32 %v3052_v61 }
 0x67f   : > { %v7269_v55 = vpop.eup %5799  ;;  %3141 = vperm.xlu1 %5689, %v7267_v36  }
 0x680   : > { %3162 = vperm.xlu0 %5688, %v7269_v55   ;;  %v7277_v12 = vpop.eup %5801 }
 0x681   : > { %v7281_v48 = vpop.eup %5803 }
 0x682   : > { %v7284_v0 = vpop.eup %5805 }
 0x683   : > { %3144 = vperm.xlu1 %5689, %v7277_v12   ;;  %v7287_v22 = vpop.eup %5807 }
 0x684   : > { %3165 = vperm.xlu0 %5688, %v7281_v48   ;;  %v7290_v15 = vpop.eup %5809 }
 0x685   : > { %v7293_v30 = vpop.eup %5811 }
 0x686   : > { %v7296_v58 = vpop.eup %5813 }
 0x687   : > { %3147 = vperm.xlu1 %5689, %v7284_v0   ;;  %v7299_v60 = vpop.eup %5815 }
 0x688   : > { %3168 = vperm.xlu0 %5688, %v7287_v22   ;;  %v7302_v13 = vpop.eup %5817 }
 0x689   : > { %v7305_v63 = vpop.eup %5819 }
 0x68a   : > { %v7308_v50 = vpop.eup %5821 }
 0x68b   : > { %3150 = vperm.xlu1 %5689, %v7290_v15   ;;  %v7311_v26 = vpop.eup %5823 }
 0x68c   : > { %3171 = vperm.xlu0 %5688, %v7293_v30  }
 0x68f   : > { %3159 = vperm.xlu1 %5689, %v7296_v58  }
 0x690   : > { %3174 = vperm.xlu0 %5688, %v7299_v60  }
 0x693   : > { %3153 = vperm.xlu1 %5689, %v7302_v13  }
 0x694   : > { %3177 = vperm.xlu0 %5688, %v7305_v63  }
 0x697   : > { %3156 = vperm.xlu1 %5689, %v7308_v50  }
 0x698   : > { %3180 = vperm.xlu0 %5688, %v7311_v26  }
 0x6d2   : > { %v3088_v16 = vpop.permute.xlu1 %3087 }
 0x6d3   : > { %v3091_v19 = vpop.permute.xlu0 %3090  ;;  %v3185_v43 = vrot.slane %v3088_v16, %v6247_v45 }
 0x6d4   : > { %v3189_v62 = vrot.slane %v3091_v19, %v6247_v45 }
 0x6d6   : > { %v3094_v46 = vpop.permute.xlu1 %3093  ;;  %v3310_v51 = vsel %vm1241_vm9, %v3189_v62, %v3185_v43 }
 0x6d7   : > { %v3193_v56 = vrot.slane %v3094_v46, %v6247_v45 }
 0x6d9   : > { %v3311_v39 = vsel %vm1243_vm10, %v3193_v56, %v3310_v51 }
 0x6da   : > { %v3097_v33 = vpop.permute.xlu1 %3096 }
 0x6db   : > { %v3197_v7 = vrot.slane %v3097_v33, %v6247_v45 }
 0x6dd   : > { %v3312_v16 = vsel %vm1245_vm11, %v3197_v7, %v3311_v39 }
 0x6de   : > { %v3100_v38 = vpop.permute.xlu1 %3099 }
 0x6df   : > { %v3118_v32 = vpop.permute.xlu0 %3117  ;;  %v3201_v20 = vrot.slane %v3100_v38, %v6247_v45 }
 0x6e1   : > { %v3313_v19 = vsel %vm1247_vm12, %v3201_v20, %v3312_v16  ;;  %v3225_v20 = vrot.slane %v3118_v32, %v6247_v45 }
 0x6e2   : > { %v3103_v8 = vpop.permute.xlu1 %3102 }
 0x6e3   : > { %v3121_v18 = vpop.permute.xlu0 %3120  ;;  %v3205_v61 = vrot.slane %v3103_v8, %v6247_v45 }
 0x6e5   : > { %v3314_v34 = vsel %vm1249_vm13, %v3205_v61, %v3313_v19  ;;  %v3229_v61 = vrot.slane %v3121_v18, %v6247_v45 }
 0x6e6   : > { %v3106_v31 = vpop.permute.xlu1 %3105 }
 0x6e7   : > { %v3209_v27 = vrot.slane %v3106_v31, %v6247_v45  ;;  %v3124_v1 = vpop.permute.xlu0 %3123 }
 0x6e9   : > { %v3315_v59 = vsel %vm1251_vm14, %v3209_v27, %v3314_v34  ;;  %v3233_v34 = vrot.slane %v3124_v1, %v6247_v45 }
 0x6ea   : > { %v3109_v46 = vpop.permute.xlu1 %3108 }
 0x6eb   : > { %v3213_v33 = vrot.slane %v3109_v46, %v6247_v45  ;;  %v3127_v38 = vpop.permute.xlu0 %3126 }
 0x6ec   : > { %v3237_v19 = vrot.slane %v3127_v38, %v6247_v45 }
 0x6ed   : > { %v3316_v43 = vsel %vm1253_vm15, %v3213_v33, %v3315_v59 }
 0x6ee   : > { %v3112_v8 = vpop.permute.xlu1 %3111  ;;  %v3342_v62 = vsel %vm8019_vm5, %v3316_v43, 0.0 }
 0x6ef   : > { %3343 = vadd.xlane.f32.xlu1 %v3342_v62  ;;  %v3130_v56 = vpop.permute.xlu0 %3129  ;;  %v3217_v39 = vrot.slane %v3112_v8, %v6247_v45 }
 0x6f0   : > { %v3241_v33 = vrot.slane %v3130_v56, %v6247_v45 }
 0x6f2   : > { %v3115_v31 = vpop.permute.xlu1 %3114 }
 0x6f3   : > { %v3221_v7 = vrot.slane %v3115_v31, %v6247_v45  ;;  %v3133_v51 = vpop.permute.xlu0 %3132 }
 0x6f4   : > { %v3245_v32 = vrot.slane %v3133_v51, %v6247_v45 }
 0x6f5   : > { %v3317_v16 = vsel %vm1241_vm9, %v3221_v7, %v3217_v39 }
 0x6f6   : > { %v3318_v59 = vsel %vm1243_vm10, %v3225_v20, %v3317_v16  ;;  %v3136_v27 = vpop.permute.xlu1 %3135 }
 0x6f7   : > { %v3319_v46 = vsel %vm1245_vm11, %v3229_v61, %v3318_v59  ;;  %v3139_v43 = vpop.permute.xlu0 %3138  ;;  %v3249_v51 = vrot.slane %v3136_v27, %v6247_v45 }
 0x6f8   : > { %v3320_v8 = vsel %vm1247_vm12, %v3233_v34, %v3319_v46 }
 0x6f9   : > { %v3321_v18 = vsel %vm1249_vm13, %v3237_v19, %v3320_v8  ;;  %v3253_v19 = vrot.slane %v3139_v43, %v6247_v45 }
 0x6fa   : > { %v3142_v62 = vpop.permute.xlu1 %3141  ;;  %v3322_v31 = vsel %vm1251_vm14, %v3241_v33, %v3321_v18 }
 0x6fb   : > { %v3323_v1 = vsel %vm1253_vm15, %v3245_v32, %v3322_v31  ;;  %v3163_v39 = vpop.permute.xlu0 %3162  ;;  %v3257_v8 = vrot.slane %v3142_v62, %v6247_v45 }
 0x6fc   : > { %v3345_v7 = vsel %vm8020_vm6, %v3323_v1, 0.0  ;;  %v3285_v46 = vrot.slane %v3163_v39, %v6247_v45 }
 0x6fd   : > { %3346 = vadd.xlane.f32.xlu0 %v3345_v7 }
 0x6fe   : > { %v3145_v38 = vpop.permute.xlu1 %3144 }
 0x6ff   : > { %v3166_v20 = vpop.permute.xlu0 %3165  ;;  %v3261_v31 = vrot.slane %v3145_v38, %v6247_v45 }
 0x700   : > { %v3289_v32 = vrot.slane %v3166_v20, %v6247_v45 }
 0x702   : > { %v3148_v61 = vpop.permute.xlu1 %3147 }
 0x703   : > { %v3169_v56 = vpop.permute.xlu0 %3168  ;;  %v3265_v4 = vrot.slane %v3148_v61, %v6247_v45 }
 0x704   : > { %v3293_v1 = vrot.slane %v3169_v56, %v6247_v45 }
 0x706   : > { %v3151_v16 = vpop.permute.xlu1 %3150 }
 0x707   : > { %v3172_v59 = vpop.permute.xlu0 %3171  ;;  %v3269_v62 = vrot.slane %v3151_v16, %v6247_v45 }
 0x708   : > { %v3297_v27 = vrot.slane %v3172_v59, %v6247_v45 }
 0x70a   : > { %v3160_v34 = vpop.permute.xlu1 %3159 }
 0x70b   : > { %v3281_v33 = vrot.slane %v3160_v34, %v6247_v45  ;;  %v3175_v18 = vpop.permute.xlu0 %3174  ;;  %v3324_v34 = vsel %vm1241_vm9, %v3253_v19, %v3249_v51 }
 0x70c   : > { %v3325_v35 = vsel %vm1243_vm10, %v3257_v8, %v3324_v34  ;;  %v3301_v59 = vrot.slane %v3175_v18, %v6247_v45 }
 0x70d   : > { %v3331_v7 = vsel %vm1241_vm9, %v3285_v46, %v3281_v33  ;;  %v3326_v61 = vsel %vm1245_vm11, %v3261_v31, %v3325_v35 }
 0x70e   : > { %v3332_v43 = vsel %vm1243_vm10, %v3289_v32, %v3331_v7  ;;  %v3154_v39 = vpop.permute.xlu1 %3153  ;;  %v3327_v33 = vsel %vm1247_vm12, %v3265_v4, %v3326_v61 }
 0x70f   : > { %v3333_v20 = vsel %vm1245_vm11, %v3293_v1, %v3332_v43  ;;  %v3273_v56 = vrot.slane %v3154_v39, %v6247_v45  ;;  %v3178_v46 = vpop.permute.xlu0 %3177  ;;  %v3328_v16 = vsel %vm1249_vm13, %v3269_v62, %v3327_v33 }
 0x710   : > { %v3334_v38 = vsel %vm1247_vm12, %v3297_v27, %v3333_v20  ;;  %v3305_v32 = vrot.slane %v3178_v46, %v6247_v45 }
 0x711   : > { %v3335_v19 = vsel %vm1249_vm13, %v3301_v59, %v3334_v38  ;;  %v3329_v7 = vsel %vm1251_vm14, %v3273_v56, %v3328_v16 }
 0x712   : > { %v3157_v51 = vpop.permute.xlu1 %3156  ;;  %v3336_v4 = vsel %vm1251_vm14, %v3305_v32, %v3335_v19 }
 0x713   : > { %v3277_v8 = vrot.slane %v3157_v51, %v6247_v45  ;;  %v3181_v1 = vpop.permute.xlu0 %3180 }
 0x714   : > { %v3309_v27 = vrot.slane %v3181_v1, %v6247_v45 }
 0x715   : > { %v3330_v35 = vsel %vm1253_vm15, %v3277_v8, %v3329_v7 }
 0x716   : > { %v3348_v18 = vsel %vm8021_vm7, %v3330_v35, 0.0  ;;  %v3337_v31 = vsel %vm1253_vm15, %v3309_v27, %v3336_v4 }
 0x717   : > { %3349 = vadd.xlane.f32.xlu0 %v3348_v18  ;;  %v3351_v43 = vsel %vm8022_vm8, %v3337_v31, 0.0 }
 0x71b   : > { %3352 = vadd.xlane.f32.xlu0 %v3351_v43 }
 0x778   : > { %v3344_v39 = vpop.xlane.xlu1 %3343 }
 0x779   : > { %5825 = vrcp.f32 %v3344_v39 }
 0x786   : > { %v5826_v34 = vpop.eup %5825  ;;  %v3347_v62 = vpop.xlane.xlu0 %3346 }
 0x787   : > { %5827 = vrcp.f32 %v3347_v62  ;;  %v3365_v20 = vrot.slane %v5826_v34, %v6110_v5  ;;  %v3369_v38 = vrot.slane %v5826_v34, %v6126_v10  ;;  %v3373_v61 = vrot.slane %v5826_v34, %v6123_v9 }
 0x788   : > { %v3377_v33 = vrot.slane %v5826_v34, %v6151_v23  ;;  %v3381_v51 = vrot.slane %v5826_v34, %v6154_v24  ;;  %v3393_v35 = vrot.slane %v5826_v34, %v6181_v40 }
 0x789   : > { %v3522_v56 = vmul.f32 %v7154_v28, %v3365_v20  ;;  %v3523_v46 = vmul.f32 %v7156_v53, %v3369_v38  ;;  %v3524_v59 = vmul.f32 %v7164_v11, %v3373_v61  ;;  %v3385_v53 = vrot.slane %v5826_v34, %v6157_v25 }
 0x78a   : > { %v3525_v32 = vmul.f32 %v7171_v54, %v3377_v33  ;;  %v3526_v19 = vmul.f32 %v7181_v49, %v3381_v51  ;;  %v3389_v54 = vrot.slane %v5826_v34, %v6177_v37 }
 0x78b   : > { %3556 = vperm.xlu1 %5689, %v3522_v56   ;;  %3561 = vperm.xlu0 %5688, %v3523_v46   ;;  %v3527_v1 = vmul.f32 %v7193_v44, %v3385_v53  ;;  %v3529_v44 = vmul.f32 %v7219_v17, %v3393_v35  ;;  %v8023_v35 = vmov 0.0  }
 0x78c   : > { %v3528_v49 = vmul.f32 %v7203_v2, %v3389_v54 }
 0x78f   : > { %3566 = vperm.xlu1 %5689, %v3524_v59  }
 0x793   : > { %3571 = vperm.xlu1 %5689, %v3525_v32  }
 0x794   : > { %v5828_v16 = vpop.eup %5827 }
 0x795   : > { %v3405_v28 = vrot.slane %v5828_v16, %v6123_v9  ;;  %v3409_v11 = vrot.slane %v5828_v16, %v6151_v23  ;;  %v3413_v27 = vrot.slane %v5828_v16, %v6154_v24  ;;  %v3417_v18 = vrot.slane %v5828_v16, %v6157_v25 }
 0x796   : > { %v3397_v31 = vrot.slane %v5828_v16, %v6110_v5  ;;  %v3421_v43 = vrot.slane %v5828_v16, %v6177_v37  ;;  %v3425_v62 = vrot.slane %v5828_v16, %v6181_v40 }
 0x797   : > { %3576 = vperm.xlu1 %5689, %v3526_v19   ;;  %v3532_v8 = vmul.f32 %v7187_v42, %v3405_v28  ;;  %v3533_v7 = vmul.f32 %v7197_v41, %v3409_v11  ;;  %v3534_v42 = vmul.f32 %v7212_v14, %v3413_v27  ;;  %v3535_v41 = vmul.f32 %v7225_v52, %v3417_v18  ;;  %v5865_v27 = vld [vmem:[%s6103_s29] sm:$0xff]   ;;  %v8026_v18 = vld [vmem:[#allocation22_spill] sm:$0xff] }
 0x798   : > { %v3530_v39 = vmul.f32 %v7231_v3, %v3397_v31  ;;  %v3401_v14 = vrot.slane %v5828_v16, %v6126_v10  ;;  %v3536_v34 = vmul.f32 %v7237_v29, %v3421_v43  ;;  %v3537_v52 = vmul.f32 %v7249_v21, %v3425_v62  ;;  %5575 = vmatprep.mubr.bf16.mxu0 %v5865_v27 }
 0x799   : > { %3606 = vperm.xlu0 %5688, %v3532_v8  }
 0x79a   : > { %v3531_v17 = vmul.f32 %v7243_v47, %v3401_v14 }
 0x79b   : > { %3581 = vperm.xlu1 %5689, %v3527_v1  }
 0x79d   : > { %3611 = vperm.xlu0 %5688, %v3533_v7  }
 0x79f   : > { %3586 = vperm.xlu1 %5689, %v3528_v49   ;;  %v5866_v49 = vld [vmem:[%s6103_s29 + $0x8] sm:$0xff]  }
 0x7a0   : > { %v3350_v4 = vpop.xlane.xlu0 %3349  ;;  %5576 = vmatmul.mubr.bf16.vlgmr.msra.gmra.mxu0 %v5866_v49  ;;  %v8032_v49 = vld [vmem:[#allocation31_spill] sm:$0xff] }
 0x7a1   : > { %5829 = vrcp.f32 %v3350_v4  ;;  %3616 = vperm.xlu0 %5688, %v3534_v42   ;;  %5615 = vmatprep.mubr.msk.bf16.mxu0 %vm8024_vm0, %v8023_v35  ;;  %v8025_v42 = vld [vmem:[#allocation20_spill] sm:$0xff] }
 0x7a3   : > { %3591 = vperm.xlu1 %5689, %v3529_v44  }
 0x7a4   : > { %v3353_v2 = vpop.xlane.xlu0 %3352 }
 0x7a5   : > { %5831 = vrcp.f32 %v3353_v2  ;;  %3621 = vperm.xlu0 %5688, %v3535_v41  }
 0x7a7   : > { %3596 = vperm.xlu1 %5689, %v3530_v39   ;;  %v8027_v39 = vld [vmem:[#allocation21_spill] sm:$0xff] }
 0x7a9   : > { %3626 = vperm.xlu0 %5688, %v3536_v34  }
 0x7ab   : > { %3601 = vperm.xlu1 %5689, %v3531_v17  }
 0x7ad   : > { %3631 = vperm.xlu0 %5688, %v3537_v52  }
 0x7ae   : > { %v5830_v20 = vpop.eup %5829 }
 0x7af   : > { %v3433_v38 = vrot.slane %v5830_v20, %v6126_v10  ;;  %v3429_v56 = vrot.slane %v5830_v20, %v6110_v5  ;;  %v3437_v29 = vrot.slane %v5830_v20, %v6123_v9  ;;  %v3441_v33 = vrot.slane %v5830_v20, %v6151_v23 }
 0x7b0   : > { %v3445_v51 = vrot.slane %v5830_v20, %v6154_v24  ;;  %v3449_v19 = vrot.slane %v5830_v20, %v6157_v25  ;;  %v3453_v1 = vrot.slane %v5830_v20, %v6177_v37  ;;  %v3457_v7 = vrot.slane %v5830_v20, %v6181_v40 }
 0x7b1   : > { %v3539_v3 = vmul.f32 %v7261_v6, %v3433_v38  ;;  %v3538_v46 = vmul.f32 %v7255_v57, %v3429_v56  ;;  %v3540_v59 = vmul.f32 %v7267_v36, %v3437_v29  ;;  %v3541_v6 = vmul.f32 %v7277_v12, %v3441_v33 }
 0x7b2   : > { %v5832_v61 = vpop.eup %5831  ;;  %v3542_v36 = vmul.f32 %v7284_v0, %v3445_v51  ;;  %v3543_v12 = vmul.f32 %v7290_v15, %v3449_v19 }
 0x7b3   : > { %3641 = vperm.xlu0 %5688, %v3539_v3   ;;  %3636 = vperm.xlu1 %5689, %v3538_v46   ;;  %v3465_v47 = vrot.slane %v5832_v61, %v6126_v10  ;;  %v3469_v32 = vrot.slane %v5832_v61, %v6123_v9  ;;  %v3473_v16 = vrot.slane %v5832_v61, %v6151_v23  ;;  %v8028_v3 = vld [vmem:[#allocation23_spill] sm:$0xff] }
 0x7b4   : > { %v3477_v28 = vrot.slane %v5832_v61, %v6154_v24  ;;  %v3481_v53 = vrot.slane %v5832_v61, %v6157_v25  ;;  %v3461_v8 = vrot.slane %v5832_v61, %v6110_v5  ;;  %v3485_v11 = vrot.slane %v5832_v61, %v6177_v37 }
 0x7b5   : > { %v3547_v21 = vmul.f32 %v7269_v55, %v3465_v47  ;;  %v3548_v57 = vmul.f32 %v7281_v48, %v3469_v32  ;;  %v3549_v55 = vmul.f32 %v7287_v22, %v3473_v16  ;;  %v3489_v54 = vrot.slane %v5832_v61, %v6181_v40 }
 0x7b6   : > { %v3550_v48 = vmul.f32 %v7293_v30, %v3477_v28  ;;  %v3551_v0 = vmul.f32 %v7299_v60, %v3481_v53  ;;  %v3546_v22 = vmul.f32 %v7296_v58, %v3461_v8  ;;  %v3552_v15 = vmul.f32 %v7305_v63, %v3485_v11  ;;  %v8030_v28 = vld [vmem:[#allocation27_spill] sm:$0xff] }
 0x7b7   : > { %3646 = vperm.xlu1 %5689, %v3540_v59   ;;  %3681 = vperm.xlu0 %5688, %v3547_v21   ;;  %v3544_v30 = vmul.f32 %v7302_v13, %v3453_v1  ;;  %v3553_v60 = vmul.f32 %v7311_v26, %v3489_v54  ;;  %v3545_v58 = vmul.f32 %v7308_v50, %v3457_v7  ;;  %v7449_v13 = vld [vmem:[%s7897_s13 + $0x38] sm:$0xff]  }
 0x7b8   : > { %5579 = vmatprep.subr.bf16.mxu1 %v7449_v13  ;;  %v8031_v1 = vld [vmem:[#allocation28_spill] sm:$0xff] }
 0x7bb   : > { %3651 = vperm.xlu1 %5689, %v3541_v6   ;;  %3686 = vperm.xlu0 %5688, %v3548_v57   ;;  %v8029_v6 = vld [vmem:[#allocation24_spill] sm:$0xff] }
 0x7bf   : > { %3656 = vperm.xlu1 %5689, %v3542_v36   ;;  %3691 = vperm.xlu0 %5688, %v3549_v55  }
 0x7c3   : > { %3661 = vperm.xlu1 %5689, %v3543_v12   ;;  %3696 = vperm.xlu0 %5688, %v3550_v48  }
 0x7c7   : > { %3701 = vperm.xlu0 %5688, %v3551_v0   ;;  %3676 = vperm.xlu1 %5689, %v3546_v22  }
 0x7cb   : > { %3706 = vperm.xlu0 %5688, %v3552_v15   ;;  %3666 = vperm.xlu1 %5689, %v3544_v30  }
 0x7cf   : > { %3711 = vperm.xlu0 %5688, %v3553_v60   ;;  %3671 = vperm.xlu1 %5689, %v3545_v58  }
 0x806   : > { %v3557_v63 = vpop.permute.xlu1 %3556  ;;  %v3562_v26 = vpop.permute.xlu0 %3561 }
 0x807   : > { %v3714_v50 = vmul.f32 %v8025_v42, %v3557_v63  ;;  %v3715_v4 = vmul.f32 %v3562_v26, %v8026_v18 }
 0x809   : > { %v3746_v44 = vsel %vm1174_vm4, %v3714_v50, 0.0  ;;  %v3753_v31 = vsel %vm1174_vm4, %v3715_v4, 0.0 }
 0x80a   : > { %v3747_v41 = vrot.slane %v3746_v44, 4  ;;  %v3754_v43 = vrot.slane %v3753_v31, 4  ;;  %v3567_v2 = vpop.permute.xlu1 %3566 }
 0x80b   : > { %v3716_v14 = vmul.f32 %v8027_v39, %v3567_v2 }
 0x80c   : > { %v3748_v34 = vadd.f32 %v3747_v41, %v3746_v44  ;;  %v3755_v62 = vadd.f32 %v3754_v43, %v3753_v31  ;;  %v8033_v43 = vld [vmem:[#allocation25_spill] sm:$0xff] }
 0x80d   : > { %v3760_v17 = vsel %vm1174_vm4, %v3716_v14, 0.0 }
 0x80e   : > { %v3749_v52 = vrot.slane %v3748_v34, 2  ;;  %v3756_v20 = vrot.slane %v3755_v62, 2  ;;  %v3761_v38 = vrot.slane %v3760_v17, 4  ;;  %v3572_v56 = vpop.permute.xlu1 %3571 }
 0x80f   : > { %v3717_v46 = vmul.f32 %v3572_v56, %v8028_v3 }
 0x810   : > { %v3750_v29 = vadd.f32 %v3749_v52, %v3748_v34  ;;  %v3762_v61 = vadd.f32 %v3761_v38, %v3760_v17  ;;  %v3757_v59 = vadd.f32 %v3756_v20, %v3755_v62  ;;  %v8034_v52 = vld [vmem:[#allocation32_spill] sm:$0xff] }
 0x811   : > { %v3767_v47 = vsel %vm1174_vm4, %v3717_v46, 0.0 }
 0x812   : > { %v3763_v21 = vrot.slane %v3762_v61, 2  ;;  %v3768_v33 = vrot.slane %v3767_v47, 4  ;;  %v3577_v32 = vpop.permute.xlu1 %3576  ;;  %v3751_v51 = vrot.slane %v3750_v29, 1  ;;  %v3758_v48 = vrot.slane %v3757_v59, 1 }
 0x813   : > { %v3718_v57 = vmul.f32 %v8029_v6, %v3577_v32 }
 0x814   : > { %v3764_v16 = vadd.f32 %v3763_v21, %v3762_v61  ;;  %v3769_v36 = vadd.f32 %v3768_v33, %v3767_v47  ;;  %v3607_v55 = vpop.permute.xlu0 %3606  ;;  %v3752_v30 = vadd.f32 %v3751_v51, %v3750_v29  ;;  %v3759_v26 = vadd.f32 %v3758_v48, %v3757_v59 }
 0x815   : > { %v3774_v19 = vsel %vm1174_vm4, %v3718_v57, 0.0  ;;  %v3724_v12 = vmul.f32 %v8030_v28, %v3607_v55 }
 0x816   : > { %v3765_v53 = vrot.slane %v3764_v16, 1  ;;  %v3770_v8 = vrot.slane %v3769_v36, 2  ;;  %v3582_v0 = vpop.permute.xlu1 %3581  ;;  %v3775_v22 = vrot.slane %v3774_v19, 4  ;;  %v3972_v38 = vpack.c.bf16 %v3752_v30, %v3752_v30 }
 0x817   : > { %v3816_v11 = vsel %vm1174_vm4, %v3724_v12, 0.0  ;;  %v3719_v15 = vmul.f32 %v3582_v0, %v8031_v1  ;;  %v3973_v56 = vpack.c.bf16 %v3759_v26, %v3759_v26 }
 0x818   : > { %v3771_v54 = vadd.f32 %v3770_v8, %v3769_v36  ;;  %v3612_v7 = vpop.permute.xlu0 %3611  ;;  %v3776_v60 = vadd.f32 %v3775_v22, %v3774_v19  ;;  %v3817_v58 = vrot.slane %v3816_v11, 4  ;;  %v3766_v42 = vadd.f32 %v3765_v53, %v3764_v16  ;;  %v8035_v16 = vld [vmem:[#allocation29_spill] sm:$0xff] }
 0x819   : > { %v3781_v27 = vsel %vm1174_vm4, %v3719_v15, 0.0  ;;  %v3725_v63 = vmul.f32 %v3612_v7, %v8032_v49  ;;  %v4036_v55 = vunpack.c.l.b16 %v3972_v38  ;;  %v4037_v19 = vunpack.c.l.b16 %v3973_v56  ;;  %v8036_v7 = vld [vmem:[#allocation36_spill] sm:$0xff] }
 0x81a   : > { %v3772_v50 = vrot.slane %v3771_v54, 1  ;;  %v3782_v18 = vrot.slane %v3781_v27, 4  ;;  %v3587_v4 = vpop.permute.xlu1 %3586  ;;  %v3777_v44 = vrot.slane %v3776_v60, 2  ;;  %v3818_v31 = vadd.f32 %v3817_v58, %v3816_v11 }
 0x81b   : > { %v3823_v41 = vsel %vm1174_vm4, %v3725_v63, 0.0  ;;  %v3720_v2 = vmul.f32 %v8033_v43, %v3587_v4  ;;  %v3974_v61 = vpack.c.bf16 %v3766_v42, %v3766_v42  ;;  %v4068_v58 = vsel %vm1241_vm9, %v4037_v19, %v4036_v55 }
 0x81c   : > { %v3773_v39 = vadd.f32 %v3772_v50, %v3771_v54  ;;  %v3824_v14 = vrot.slane %v3823_v41, 4  ;;  %v3617_v34 = vpop.permute.xlu0 %3616  ;;  %v3783_v62 = vadd.f32 %v3782_v18, %v3781_v27  ;;  %v3778_v3 = vadd.f32 %v3777_v44, %v3776_v60  ;;  %v8037_v18 = vld [vmem:[#allocation26_spill] sm:$0xff] }
 0x81d   : > { %v3788_v17 = vsel %vm1174_vm4, %v3720_v2, 0.0  ;;  %v3726_v20 = vmul.f32 %v8034_v52, %v3617_v34  ;;  %v3819_v46 = vrot.slane %v3818_v31, 2  ;;  %v4038_v53 = vunpack.c.l.b16 %v3974_v61  ;;  %v8038_v34 = vld [vmem:[#allocation33_spill] sm:$0xff]  ;;  %v8039_v61 = vld [vmem:[#allocation30_spill] sm:$0xff] }
 0x81e   : > { %v3592_v29 = vpop.permute.xlu1 %3591  ;;  %v3825_v47 = vadd.f32 %v3824_v14, %v3823_v41  ;;  %v3789_v59 = vrot.slane %v3788_v17, 4  ;;  %v3975_v33 = vpack.c.bf16 %v3773_v39, %v3773_v39  ;;  %v3784_v57 = vrot.slane %v3783_v62, 2 }
 0x81f   : > { %v3830_v21 = vsel %vm1174_vm4, %v3726_v20, 0.0  ;;  %v3721_v36 = vmul.f32 %v3592_v29, %v8035_v16  ;;  %v3779_v28 = vrot.slane %v3778_v3, 1  ;;  %v3820_v12 = vadd.f32 %v3819_v46, %v3818_v31  ;;  %v8040_v16 = vld [vmem:[#allocation37_spill] sm:$0xff] }
 0x820   : > { %v3831_v32 = vrot.slane %v3830_v21, 4  ;;  %v3622_v6 = vpop.permute.xlu0 %3621  ;;  %v3790_v51 = vadd.f32 %v3789_v59, %v3788_v17  ;;  %v3826_v8 = vrot.slane %v3825_v47, 2  ;;  %v4039_v22 = vunpack.c.l.b16 %v3975_v33 }
 0x821   : > { %v3795_v0 = vsel %vm1174_vm4, %v3721_v36, 0.0  ;;  %v3785_v54 = vadd.f32 %v3784_v57, %v3783_v62  ;;  %v3727_v60 = vmul.f32 %v3622_v6, %v8036_v7  ;;  %v3780_v27 = vadd.f32 %v3779_v28, %v3778_v3 }
 0x822   : > { %v3597_v48 = vpop.permute.xlu1 %3596  ;;  %v3791_v11 = vrot.slane %v3790_v51, 2  ;;  %v3832_v1 = vadd.f32 %v3831_v32, %v3830_v21  ;;  %v3796_v15 = vrot.slane %v3795_v0, 4  ;;  %v3821_v49 = vrot.slane %v3820_v12, 1 }
 0x823   : > { %v4069_v26 = vsel %vm1243_vm10, %v4038_v53, %v4068_v58  ;;  %v3827_v42 = vadd.f32 %v3826_v8, %v3825_v47  ;;  %v3837_v50 = vsel %vm1174_vm4, %v3727_v60, 0.0  ;;  %v3722_v4 = vmul.f32 %v8037_v18, %v3597_v48 }
 0x824   : > { %v3627_v30 = vpop.permute.xlu0 %3626  ;;  %v3797_v63 = vadd.f32 %v3796_v15, %v3795_v0  ;;  %v7480_v44 = vsel %vm1245_vm11, %v4039_v22, %v4069_v26  ;;  %v3792_v31 = vadd.f32 %v3791_v11, %v3790_v51  ;;  %v3833_v41 = vrot.slane %v3832_v1, 2  ;;  %v8041_v11 = vld [vmem:[#allocation34_spill] sm:$0xff] }
 0x825   : > { %v3786_v2 = vrot.slane %v3785_v54, 1  ;;  %v3838_v39 = vrot.slane %v3837_v50, 4  ;;  %v3802_v14 = vsel %vm1174_vm4, %v3722_v4, 0.0  ;;  %v3728_v62 = vmul.f32 %v8038_v34, %v3627_v30 }
 0x826   : > { %v3602_v43 = vpop.permute.xlu1 %3601  ;;  %v3976_v17 = vpack.c.bf16 %v3780_v27, %v3780_v27  ;;  %v3822_v52 = vadd.f32 %v3821_v49, %v3820_v12  ;;  %v3798_v20 = vrot.slane %v3797_v63, 2  ;;  %v3803_v38 = vrot.slane %v3802_v14, 4  ;;  %v8042_v49 = vld [vmem:[#allocation38_spill] sm:$0xff] }
 0x827   : > { %v3828_v3 = vrot.slane %v3827_v42, 1  ;;  %v3839_v46 = vadd.f32 %v3838_v39, %v3837_v50  ;;  %v3844_v29 = vsel %vm1174_vm4, %v3728_v62, 0.0  ;;  %v3723_v47 = vmul.f32 %v3602_v43, %v8039_v61 }
 0x828   : > { %v3632_v56 = vpop.permute.xlu0 %3631  ;;  %v3793_v59 = vrot.slane %v3792_v31, 1  ;;  %v3834_v21 = vadd.f32 %v3833_v41, %v3832_v1  ;;  %v3804_v33 = vadd.f32 %v3803_v38, %v3802_v14  ;;  %v3845_v32 = vrot.slane %v3844_v29, 4 }
 0x829   : > { %v3787_v6 = vadd.f32 %v3786_v2, %v3785_v54  ;;  %v3840_v57 = vrot.slane %v3839_v46, 2  ;;  %v3809_v51 = vsel %vm1174_vm4, %v3723_v47, 0.0  ;;  %v3729_v36 = vmul.f32 %v3632_v56, %v8040_v16 }
 0x82a   : > { %v7488_v55 = vunpack.c.l.b16 %v3976_v17  ;;  %v3799_v19 = vadd.f32 %v3798_v20, %v3797_v63  ;;  %v3805_v28 = vrot.slane %v3804_v33, 2  ;;  %v3846_v12 = vadd.f32 %v3845_v32, %v3844_v29 }
 0x82b   : > { %v3841_v8 = vadd.f32 %v3840_v57, %v3839_v46  ;;  %v3810_v0 = vrot.slane %v3809_v51, 4  ;;  %v3851_v22 = vsel %vm1174_vm4, %v3729_v36, 0.0  ;;  %v3829_v15 = vadd.f32 %v3828_v3, %v3827_v42  ;;  %v8043_v3 = vld [vmem:[#allocation35_spill] sm:$0xff] }
 0x82c   : > { %v3794_v30 = vadd.f32 %v3793_v59, %v3792_v31  ;;  %v3835_v54 = vrot.slane %v3834_v21, 1  ;;  %v3852_v7 = vrot.slane %v3851_v22, 4  ;;  %v3806_v60 = vadd.f32 %v3805_v28, %v3804_v33 }
 0x82d   : > { %v3811_v58 = vadd.f32 %v3810_v0, %v3809_v51  ;;  %v3982_v26 = vpack.c.bf16 %v3822_v52, %v3822_v52  ;;  %v3800_v50 = vrot.slane %v3799_v19, 1  ;;  %v3842_v18 = vrot.slane %v3841_v8, 1 }
 0x82e   : > { %v3637_v48 = vpop.permute.xlu1 %3636  ;;  %v3642_v53 = vpop.permute.xlu0 %3641  ;;  %v3847_v4 = vrot.slane %v3846_v12, 2  ;;  %v3977_v2 = vpack.c.bf16 %v3787_v6, %v3787_v6  ;;  %v3983_v31 = vpack.c.bf16 %v3829_v15, %v3829_v15  ;;  %v3836_v34 = vadd.f32 %v3835_v54, %v3834_v21 }
 0x82f   : > { %v3730_v1 = vmul.f32 %v8041_v11, %v3637_v48  ;;  %v3731_v63 = vmul.f32 %v3642_v53, %v8042_v49  ;;  %v3812_v39 = vrot.slane %v3811_v58, 2  ;;  %v3853_v62 = vadd.f32 %v3852_v7, %v3851_v22 }
 0x830   : > { %v3978_v20 = vpack.c.bf16 %v3794_v30, %v3794_v30  ;;  %v3807_v38 = vrot.slane %v3806_v60, 1  ;;  %v7496_v52 = vunpack.c.l.b16 %v3982_v26  ;;  %v3801_v29 = vadd.f32 %v3800_v50, %v3799_v19  ;;  %v8044_v19 = vld [vmem:[#allocation46_spill] sm:$0xff] }
 0x831   : > { %v3858_v27 = vsel %vm1174_vm4, %v3730_v1, 0.0  ;;  %v3865_v42 = vsel %vm1174_vm4, %v3731_v63, 0.0  ;;  %v3813_v56 = vadd.f32 %v3812_v39, %v3811_v58  ;;  %v3843_v61 = vadd.f32 %v3842_v18, %v3841_v8  ;;  %v8045_v1 = vld [vmem:[#allocation39_spill] sm:$0xff] }
 0x832   : > { %v3647_v41 = vpop.permute.xlu1 %3646  ;;  %v3682_v43 = vpop.permute.xlu0 %3681  ;;  %v3859_v14 = vrot.slane %v3858_v27, 4  ;;  %v3866_v17 = vrot.slane %v3865_v42, 4  ;;  %v3848_v47 = vadd.f32 %v3847_v4, %v3846_v12  ;;  %v7498_v33 = vunpack.c.l.b16 %v3977_v2 }
 0x833   : > { %v3732_v46 = vmul.f32 %v8043_v3, %v3647_v41  ;;  %v7501_v51 = vunpack.c.l.b16 %v3983_v31  ;;  %v3984_v16 = vpack.c.bf16 %v3836_v34, %v3836_v34  ;;  %v3814_v36 = vrot.slane %v3813_v56, 1 }
 0x834   : > { %v3860_v32 = vadd.f32 %v3859_v14, %v3858_v27  ;;  %v3867_v6 = vadd.f32 %v3866_v17, %v3865_v42  ;;  %v3854_v28 = vrot.slane %v3853_v62, 2  ;;  %v7503_v48 = vunpack.c.l.b16 %v3978_v20  ;;  %v8046_v42 = vld [vmem:[#allocation43_spill] sm:$0xff] }
 0x835   : > { %v3872_v57 = vsel %vm1174_vm4, %v3732_v46, 0.0  ;;  %v3808_v53 = vadd.f32 %v3807_v38, %v3806_v60  ;;  %v3739_v8 = vmul.f32 %v3682_v43, %v8044_v19  ;;  %v3979_v12 = vpack.c.bf16 %v3801_v29, %v3801_v29 }
 0x836   : > { %v3652_v59 = vpop.permute.xlu1 %3651  ;;  %v3687_v21 = vpop.permute.xlu0 %3686  ;;  %v3873_v0 = vrot.slane %v3872_v57, 4  ;;  %v3985_v22 = vpack.c.bf16 %v3843_v61, %v3843_v61  ;;  %v3849_v11 = vrot.slane %v3848_v47, 1  ;;  %v3861_v54 = vrot.slane %v3860_v32, 2 }
 0x837   : > { %v3733_v15 = vmul.f32 %v3652_v59, %v8045_v1  ;;  %v3868_v7 = vrot.slane %v3867_v6, 2  ;;  %v3921_v27 = vsel %vm1174_vm4, %v3739_v8, 0.0  ;;  %v3815_v49 = vadd.f32 %v3814_v36, %v3813_v56  ;;  %v8049_v8 = vld [vmem:[#allocation44_spill] sm:$0xff] }
 0x838   : > { %v3874_v58 = vadd.f32 %v3873_v0, %v3872_v57  ;;  %v3855_v63 = vadd.f32 %v3854_v28, %v3853_v62  ;;  %v3922_v26 = vrot.slane %v3921_v27, 4  ;;  %v7509_v60 = vunpack.c.l.b16 %v3984_v16  ;;  %v8047_v28 = vld [vmem:[#allocation40_spill] sm:$0xff] }
 0x839   : > { %v3879_v50 = vsel %vm1174_vm4, %v3733_v15, 0.0  ;;  %v3980_v18 = vpack.c.bf16 %v3808_v53, %v3808_v53  ;;  %v7511_v2 = vunpack.c.l.b16 %v3979_v12  ;;  %v3850_v39 = vadd.f32 %v3849_v11, %v3848_v47 }
 0x83a   : > { %v3657_v30 = vpop.permute.xlu1 %3656  ;;  %v3875_v4 = vrot.slane %v3874_v58, 2  ;;  %v3880_v41 = vrot.slane %v3879_v50, 4  ;;  %v3692_v43 = vpop.permute.xlu0 %3691  ;;  %v3923_v14 = vadd.f32 %v3922_v26, %v3921_v27  ;;  %v3740_v31 = vmul.f32 %v8046_v42, %v3687_v21  ;;  %v8048_v21 = vld [vmem:[#allocation47_spill] sm:$0xff] }
 0x83b   : > { %v7514_v34 = vunpack.c.l.b16 %v3985_v22  ;;  %v3862_v17 = vadd.f32 %v3861_v54, %v3860_v32  ;;  %v3869_v20 = vadd.f32 %v3868_v7, %v3867_v6  ;;  %v3981_v38 = vpack.c.bf16 %v3815_v49, %v3815_v49 }
 0x83c   : > { %v3881_v62 = vadd.f32 %v3880_v41, %v3879_v50  ;;  %v3856_v56 = vrot.slane %v3855_v63, 1  ;;  %v3924_v3 = vrot.slane %v3923_v14, 2  ;;  %v3928_v46 = vsel %vm1174_vm4, %v3740_v31, 0.0 }
 0x83d   : > { %v4044_v61 = vunpack.c.l.b16 %v3980_v18  ;;  %v3876_v59 = vadd.f32 %v3875_v4, %v3874_v58  ;;  %v3929_v16 = vrot.slane %v3928_v46, 4  ;;  %v3986_v36 = vpack.c.bf16 %v3850_v39, %v3850_v39  ;;  %v8050_v18 = vld [vmem:[#allocation48_spill] sm:$0xff] }
 0x83e   : > { %v3662_v29 = vpop.permute.xlu1 %3661  ;;  %v3882_v57 = vrot.slane %v3881_v62, 2  ;;  %v3925_v47 = vadd.f32 %v3924_v3, %v3923_v14  ;;  %v3734_v53 = vmul.f32 %v8047_v28, %v3657_v30  ;;  %v3741_v0 = vmul.f32 %v3692_v43, %v8048_v21  ;;  %v3697_v22 = vpop.permute.xlu0 %3696 }
 0x83f   : > { %v3863_v19 = vrot.slane %v3862_v17, 1  ;;  %v3870_v32 = vrot.slane %v3869_v20, 1  ;;  %v3930_v6 = vadd.f32 %v3929_v16, %v3928_v46  ;;  %v3735_v12 = vmul.f32 %v3662_v29, %v8049_v8 }
 0x840   : > { %v4045_v11 = vunpack.c.l.b16 %v3981_v38  ;;  %v3857_v1 = vadd.f32 %v3856_v56, %v3855_v63  ;;  %v3886_v15 = vsel %vm1174_vm4, %v3734_v53, 0.0  ;;  %v3935_v54 = vsel %vm1174_vm4, %v3741_v0, 0.0 }
 0x841   : > { %v3877_v7 = vrot.slane %v3876_v59, 1  ;;  %v3883_v58 = vadd.f32 %v3882_v57, %v3881_v62  ;;  %v3931_v27 = vrot.slane %v3930_v6, 2  ;;  %v3887_v49 = vrot.slane %v3886_v15, 4 }
 0x842   : > { %v3926_v26 = vrot.slane %v3925_v47, 1  ;;  %v3936_v30 = vrot.slane %v3935_v54, 4  ;;  %v3893_v50 = vsel %vm1174_vm4, %v3735_v12, 0.0  ;;  %v3742_v4 = vmul.f32 %v8050_v18, %v3697_v22  ;;  %v3677_v56 = vpop.permute.xlu1 %3676  ;;  %v3702_v57 = vpop.permute.xlu0 %3701  ;;  %v8052_v12 = vld [vmem:[#allocation50_spill] sm:$0xff] }
 0x843   : > { %v3864_v41 = vadd.f32 %v3863_v19, %v3862_v17  ;;  %v3871_v43 = vadd.f32 %v3870_v32, %v3869_v20  ;;  %v3932_v39 = vadd.f32 %v3931_v27, %v3930_v6  ;;  %v3888_v14 = vadd.f32 %v3887_v49, %v3886_v15 }
 0x844   : > { %v7524_v42 = vunpack.c.l.b16 %v3986_v36  ;;  %v3937_v63 = vadd.f32 %v3936_v30, %v3935_v54  ;;  %v3894_v31 = vrot.slane %v3893_v50, 4  ;;  %v3942_v38 = vsel %vm1174_vm4, %v3742_v4, 0.0  ;;  %v8051_v36 = vld [vmem:[#allocation42_spill] sm:$0xff] }
 0x845   : > { %v4075_v62 = vsel %vm1241_vm9, %v4045_v11, %v4044_v61  ;;  %v3987_v3 = vpack.c.bf16 %v3857_v1, %v3857_v1  ;;  %v3878_v46 = vadd.f32 %v3877_v7, %v3876_v59  ;;  %v3889_v29 = vrot.slane %v3888_v14, 2 }
 0x846   : > { %v3927_v16 = vadd.f32 %v3926_v26, %v3925_v47  ;;  %v3884_v28 = vrot.slane %v3883_v58, 1  ;;  %v3938_v53 = vrot.slane %v3937_v63, 2  ;;  %v3943_v17 = vrot.slane %v3942_v38, 4 }
 0x847   : > { %v3988_v20 = vpack.c.bf16 %v3864_v41, %v3864_v41  ;;  %v3989_v21 = vpack.c.bf16 %v3871_v43, %v3871_v43  ;;  %v3933_v0 = vrot.slane %v3932_v39, 1  ;;  %v3738_v19 = vmul.f32 %v8051_v36, %v3677_v56  ;;  %v3707_v43 = vpop.permute.xlu0 %3706 }
 0x848   : > { %v3890_v32 = vadd.f32 %v3889_v29, %v3888_v14  ;;  %v3895_v6 = vadd.f32 %v3894_v31, %v3893_v50  ;;  %v3944_v8 = vadd.f32 %v3943_v17, %v3942_v38  ;;  %v3743_v22 = vmul.f32 %v3702_v57, %v8052_v12  ;;  %v3667_v50 = vpop.permute.xlu1 %3666 }
 0x849   : > { %v4076_v61 = vsel %vm1243_vm10, %v7496_v52, %v4075_v62  ;;  %v3990_v59 = vpack.c.bf16 %v3878_v46, %v3878_v46  ;;  %v3939_v11 = vadd.f32 %v3938_v53, %v3937_v63  ;;  %v3914_v47 = vsel %vm1174_vm4, %v3738_v19, 0.0 }
 0x84a   : > { %v3997_v1 = vpack.c.bf16 %v3927_v16, %v3927_v16  ;;  %v7533_v15 = vadd.f32 %v3884_v28, %v3883_v58  ;;  %v3945_v54 = vrot.slane %v3944_v8, 2  ;;  %v3915_v7 = vrot.slane %v3914_v47, 4 }
 0x84b   : > { %v4051_v27 = vunpack.c.l.b16 %v3987_v3  ;;  %v7535_v49 = vunpack.c.l.b16 %v3988_v20  ;;  %v3934_v26 = vadd.f32 %v3933_v0, %v3932_v39  ;;  %v3949_v30 = vsel %vm1174_vm4, %v3743_v22, 0.0  ;;  %v8054_v22 = vld [vmem:[#allocation49_spill] sm:$0xff] }
 0x84c   : > { %v7538_v18 = vunpack.c.l.b16 %v3989_v21  ;;  %v3891_v4 = vrot.slane %v3890_v32, 1  ;;  %v3896_v52 = vrot.slane %v3895_v6, 2  ;;  %v3916_v41 = vadd.f32 %v3915_v7, %v3914_v47  ;;  %v3672_v36 = vpop.permute.xlu1 %3671 }
 0x84d   : > { %v7540_v14 = vunpack.c.l.b16 %v3990_v59  ;;  %v3940_v63 = vrot.slane %v3939_v11, 1  ;;  %v3950_v58 = vrot.slane %v3949_v30, 4  ;;  %v4077_v31 = vsel %vm1245_vm11, %v7501_v51, %v4076_v61 }
 0x84e   : > { %v4061_v38 = vunpack.c.l.b16 %v3997_v1  ;;  %v3991_v39 = vpack.c.bf16 %v7533_v15, %v7533_v15  ;;  %v3946_v56 = vadd.f32 %v3945_v54, %v3944_v8  ;;  %v3917_v62 = vrot.slane %v3916_v41, 2  ;;  %v8053_v8 = vld [vmem:[#allocation41_spill] sm:$0xff]  ;;  %v8056_v54 = vld [vmem:[#allocation51_spill] sm:$0xff] }
 0x84f   : > { %v3998_v3 = vpack.c.bf16 %v3934_v26, %v3934_v26  ;;  %v3951_v46 = vadd.f32 %v3950_v58, %v3949_v30  ;;  %v4071_v29 = vsel %vm1247_vm12, %v7488_v55, %v7480_v44  ;;  %v4078_v57 = vsel %vm1247_vm12, %v7509_v60, %v4077_v31 }
 0x850   : > { %v7551_v16 = vadd.f32 %v3891_v4, %v3890_v32  ;;  %v3897_v28 = vadd.f32 %v3896_v52, %v3895_v6  ;;  %v3918_v53 = vadd.f32 %v3917_v62, %v3916_v41  ;;  %v4072_v51 = vsel %vm1249_vm13, %v7498_v33, %v4071_v29  ;;  %v3712_v32 = vpop.permute.xlu0 %3711 }
 0x851   : > { %v3941_v17 = vadd.f32 %v3940_v63, %v3939_v11  ;;  %v3952_v20 = vrot.slane %v3951_v46, 2  ;;  %v4073_v21 = vsel %vm1251_vm14, %v7503_v48, %v4072_v51  ;;  %v4079_v0 = vsel %vm1249_vm13, %v7514_v34, %v4078_v57  ;;  %v8055_v11 = vld [vmem:[#allocation45_spill] sm:$0xff] }
 0x852   : > { %v3947_v44 = vrot.slane %v3946_v56, 1  ;;  %v3919_v55 = vrot.slane %v3918_v53, 1  ;;  %v4074_v60 = vsel %vm1253_vm15, %v7511_v2, %v4073_v21  ;;  %v4080_v19 = vsel %vm1251_vm14, %v7524_v42, %v4079_v0 }
 0x853   : > { %v3953_v6 = vadd.f32 %v3952_v20, %v3951_v46  ;;  %v4081_v33 = vsel %vm1253_vm15, %v4051_v27, %v4080_v19  ;;  %v3736_v12 = vmul.f32 %v8053_v8, %v3667_v50  ;;  %v3744_v48 = vmul.f32 %v8054_v22, %v3707_v43 }
 0x854   : > { %v3898_v61 = vrot.slane %v3897_v28, 1  ;;  %v3920_v59 = vadd.f32 %v3919_v55, %v3918_v53  ;;  %v4096_v34 = vpack.c.b16 %v4081_v33, %v4074_v60  ;;  %v3737_v47 = vmul.f32 %v3672_v36, %v8055_v11 }
 0x855   : > { %v3954_v1 = vrot.slane %v3953_v6, 1  ;;  %v3900_v15 = vsel %vm1174_vm4, %v3736_v12, 0.0  ;;  %v3956_v2 = vsel %vm1174_vm4, %v3744_v48, 0.0  ;;  %v3745_v42 = vmul.f32 %v3712_v32, %v8056_v54 }
 0x856   : > { %v3996_v7 = vpack.c.bf16 %v3920_v59, %v3920_v59  ;;  %5555 = vmatprep.mubr.bf16.mxu1 %v4096_v34  ;;  %v3901_v26 = vrot.slane %v3900_v15, 4  ;;  %v3957_v27 = vrot.slane %v3956_v2, 4  ;;  %v3907_v30 = vsel %vm1174_vm4, %v3737_v47, 0.0 }
 0x857   : > { %v3999_v50 = vpack.c.bf16 %v3941_v17, %v3941_v17  ;;  %v3948_v4 = vadd.f32 %v3947_v44, %v3946_v56  ;;  %v3908_v52 = vrot.slane %v3907_v30, 4  ;;  %v3963_v41 = vsel %vm1174_vm4, %v3745_v42, 0.0 }
 0x858   : > { %v4060_v43 = vunpack.c.l.b16 %v3996_v7  ;;  %v3902_v63 = vadd.f32 %v3901_v26, %v3900_v15  ;;  %v3958_v58 = vadd.f32 %v3957_v27, %v3956_v2  ;;  %v3964_v31 = vrot.slane %v3963_v41, 4 }
 0x859   : > { %v4062_v62 = vunpack.c.l.b16 %v3998_v3  ;;  %v3899_v46 = vadd.f32 %v3898_v61, %v3897_v28  ;;  %v3955_v29 = vadd.f32 %v3954_v1, %v3953_v6  ;;  %v3909_v57 = vadd.f32 %v3908_v52, %v3907_v30 }
 0x85a   : > { %v4089_v53 = vsel %vm1241_vm9, %v4061_v38, %v4060_v43  ;;  %v3903_v51 = vrot.slane %v3902_v63, 2  ;;  %v3959_v20 = vrot.slane %v3958_v58, 2  ;;  %v3965_v21 = vadd.f32 %v3964_v31, %v3963_v41 }
 0x85b   : > { %v3992_v17 = vpack.c.bf16 %v7551_v16, %v7551_v16  ;;  %v4000_v56 = vpack.c.bf16 %v3948_v4, %v3948_v4  ;;  %v4090_v0 = vsel %vm1243_vm10, %v4062_v62, %v4089_v53  ;;  %v3910_v36 = vrot.slane %v3909_v57, 2  ;;  %v5721_v53 = vld [vmem:[%s7897_s13 + $0x18] sm:$0xff]  }
 0x85c   : > { %v4063_v44 = vunpack.c.l.b16 %v3999_v50  ;;  %v3904_v55 = vadd.f32 %v3903_v51, %v3902_v63  ;;  %v3960_v60 = vadd.f32 %v3959_v20, %v3958_v58  ;;  %v3966_v19 = vrot.slane %v3965_v21, 2  ;;  %v5723_v51 = vld [vmem:[%s7897_s13 + $0x8] sm:$0xff]   ;;  %v5724_v20 = vld [vmem:[%s7897_s13] sm:$0xff]  }
 0x85d   : > { %v4055_v3 = vunpack.c.l.b16 %v3991_v39  ;;  %v3993_v28 = vpack.c.bf16 %v3899_v46, %v3899_v46  ;;  %v4001_v32 = vpack.c.bf16 %v3955_v29, %v3955_v29  ;;  %v3911_v6 = vadd.f32 %v3910_v36, %v3909_v57  ;;  %v5718_v46 = vld [vmem:[%s7897_s13 + $0x30] sm:$0xff]   ;;  %v5719_v29 = vld [vmem:[%s7897_s13 + $0x28] sm:$0xff]   ;;  %v5720_v57 = vld [vmem:[%s7897_s13 + $0x20] sm:$0xff]  }
 0x85e   : > { %v3905_v33 = vrot.slane %v3904_v55, 1  ;;  %v3961_v38 = vrot.slane %v3960_v60, 1  ;;  %v3967_v8 = vadd.f32 %v3966_v19, %v3965_v21  ;;  %v4091_v12 = vsel %vm1245_vm11, %v4063_v44, %v4090_v0 }
 0x85f   : > { %v4082_v16 = vsel %vm1241_vm9, %v7538_v18, %v7535_v49  ;;  %v4056_v22 = vunpack.c.l.b16 %v3992_v17  ;;  %v4064_v48 = vunpack.c.l.b16 %v4000_v56  ;;  %v3912_v61 = vrot.slane %v3911_v6, 1 }
 0x860   : > { %v4083_v59 = vsel %vm1243_vm10, %v7540_v14, %v4082_v16  ;;  %v3906_v34 = vadd.f32 %v3905_v33, %v3904_v55  ;;  %v3962_v39 = vadd.f32 %v3961_v38, %v3960_v60  ;;  %v3968_v11 = vrot.slane %v3967_v8, 1  ;;  %v5577_v21 = vpop.f32.mrf.mxu0 }
 0x861   : > { %v4084_v47 = vsel %vm1245_vm11, %v4055_v3, %v4083_v59  ;;  %v4057_v1 = vunpack.c.l.b16 %v3993_v28  ;;  %v3913_v15 = vadd.f32 %v3912_v61, %v3911_v6  ;;  %v4092_v2 = vsel %vm1247_vm12, %v4064_v48, %v4091_v12  ;;  %v8057_v48 = vld [vmem:[#allocation11_spill] sm:$0xff] }
 0x862   : > { %v4065_v54 = vunpack.c.l.b16 %v4001_v32  ;;  %v3994_v42 = vpack.c.bf16 %v3906_v34, %v3906_v34  ;;  %v4002_v7 = vpack.c.bf16 %v3962_v39, %v3962_v39  ;;  %v3969_v26 = vadd.f32 %v3968_v11, %v3967_v8  ;;  %v4183_v17 = vpop.f32.mrf.mxu0 }
 0x863   : > { %v4085_v49 = vsel %vm1247_vm12, %v4056_v22, %v4084_v47  ;;  %v3995_v18 = vpack.c.bf16 %v3913_v15, %v3913_v15 }
 0x864   : > { %v4058_v27 = vunpack.c.l.b16 %v3994_v42  ;;  %v4066_v30 = vunpack.c.l.b16 %v4002_v7  ;;  %v4003_v50 = vpack.c.bf16 %v3969_v26, %v3969_v26  ;;  %v4093_v14 = vsel %vm1249_vm13, %v4065_v54, %v4092_v2  ;;  %v5578_v44 = vpop.f32.mrf.mxu0 }
 0x865   : > { %v4059_v4 = vunpack.c.l.b16 %v3995_v18  ;;  %v4086_v52 = vsel %vm1249_vm13, %v4057_v1, %v4085_v49  ;;  %v5725_v18 = vld [vmem:[%s7900_s16 + $0x38] sm:$0xff]  }
 0x866   : > { %v4067_v41 = vunpack.c.l.b16 %v4003_v50  ;;  %v4087_v43 = vsel %vm1251_vm14, %v4058_v27, %v4086_v52  ;;  %v4094_v58 = vsel %vm1251_vm14, %v4066_v30, %v4093_v14  ;;  %v4186_v6 = vpop.f32.mrf.mxu0  ;;  %v5726_v30 = vld [vmem:[%s7900_s16 + $0x30] sm:$0xff]   ;;  %v5727_v50 = vld [vmem:[%s7900_s16 + $0x28] sm:$0xff]   ;;  %v5728_v14 = vld [vmem:[%s7900_s16 + $0x20] sm:$0xff]  }
 0x867   : > { %v4088_v63 = vsel %vm1253_vm15, %v4059_v4, %v4087_v43  ;;  %v5729_v4 = vld [vmem:[%s7900_s16 + $0x18] sm:$0xff]   ;;  %v5730_v52 = vld [vmem:[%s7900_s16 + $0x10] sm:$0xff]   ;;  %v8058_v43 = vld [vmem:[#allocation54_spill] sm:$0xff] }
 0x868   : > { %v4095_v31 = vsel %vm1253_vm15, %v4067_v41, %v4094_v58  ;;  %v5731_v41 = vld [vmem:[%s7900_s16 + $0x8] sm:$0xff]  }
 0x869   : > { %v4097_v62 = vpack.c.b16 %v4095_v31, %v4088_v63  ;;  %v8059_v63 = vld [vmem:[#allocation52_spill] sm:$0xff]  ;;  %v5732_v31 = vld [vmem:[%s7900_s16] sm:$0xff]  }
 0x86a   : > { %v1759_v58 = vadd.f32 %v8059_v63, %v8058_v43 }
 0x86b   : > { %5556 = vmatmul.mubr.bf16.vlgmr.msra.gmra.mxu1 %v4097_v62 }
 0x86c   : > { %5580 = vmatpush3.bf16.msra.mxu1 %v7449_v13  ;;  %v5722_v13 = vld [vmem:[%s7897_s13 + $0x10] sm:$0xff]   ;;  %v1764_v62 = vmax.f32 %v1759_v58, 0.0 }
 0x86d   : > { %5581 = vmatprep.subr.bf16.mxu1 %v5718_v46 }
 0x870   : > { %5582 = vmatpush3.bf16.msra.mxu1 %v5718_v46  ;;  %v4828_v46 = vpack.c.bf16 %v1764_v62, %v1764_v62 }
 0x871   : > { %5583 = vmatprep.subr.bf16.mxu1 %v5719_v29 }
 0x874   : > { %5584 = vmatpush3.bf16.msra.mxu1 %v5719_v29  ;;  %v5279_v29 = vld [vmem:[%s7898_s14] ss:$0 sm:$0xff] }
 0x875   : > { %5585 = vmatprep.subr.bf16.mxu1 %v5720_v57 }
 0x878   : > { %5586 = vmatpush3.bf16.msra.mxu1 %v5720_v57  ;;  %v8060_v57 = vld [vmem:[#allocation16_spill] sm:$0xff] }
 0x879   : > { %5587 = vmatprep.subr.bf16.mxu1 %v5721_v53 }
 0x87c   : > { %5588 = vmatpush3.bf16.msra.mxu1 %v5721_v53  ;;  %v4409_v53 = vmul.f32 %v5279_v29, %v8060_v57 }
 0x87d   : > { %5589 = vmatprep.subr.bf16.mxu1 %v5722_v13 }
 0x880   : > { %5590 = vmatpush3.bf16.msra.mxu1 %v5722_v13 }
 0x881   : > { %5591 = vmatprep.subr.bf16.mxu1 %v5723_v51 }
 0x884   : > { %5592 = vmatpush3.bf16.msra.mxu1 %v5723_v51  ;;  %v8061_v51 = vld [vmem:[#allocation17_spill] sm:$0xff] }
 0x885   : > { %5593 = vmatprep.subr.bf16.mxu1 %v5724_v20 }
 0x888   : > { %5594 = vmatpush3.bf16.msra.mxu1 %v5724_v20  ;;  %v4410_v20 = vmul.f32 %v5279_v29, %v8061_v51 }
 0x889   : > { %5619 = vmatprep.subr.bf16.mxu1 %v8023_v35 }
 0x92b   : > { %v5557_v56 = vpop.f32.mrf.mxu1 }
 0x92c   : > { %v4192_v0 = vadd.f32 %v5577_v21, %v5557_v56  ;;  %v8062_v56 = vld [vmem:[#allocation12_spill] sm:$0xff] }
 0x92d   : > { %v4134_v36 = vpop.f32.mrf.mxu1 }
 0x92e   : > { %v4184_v55 = vadd.f32 %v4183_v17, %v4134_v36  ;;  %v7614_v19 = vmax.f32 %v4192_v0, 0.0  ;;  %v4405_v0 = vmul.f32 %v5279_v29, %v8062_v56  ;;  %v8063_v36 = vld [vmem:[#allocation14_spill] sm:$0xff] }
 0x92f   : > { %v5558_v60 = vpop.f32.mrf.mxu1 }
 0x930   : > { %v7616_v3 = vmax.f32 %v4184_v55, 0.0  ;;  %v4195_v28 = vadd.f32 %v5578_v44, %v5558_v60  ;;  %v7626_v12 = vcombine.high %v7614_v19, %v7614_v19  ;;  %v4268_v2 = vmul.f32 %v7614_v19, %v8057_v48  ;;  %v8064_v60 = vld [vmem:[#allocation18_spill] sm:$0xff] }
 0x931   : > { %v4137_v32 = vpop.f32.mrf.mxu1  ;;  %v4406_v44 = vmul.f32 %v5279_v29, %v8063_v36 }
 0x932   : > { %v7618_v33 = vmax.f32 %v4195_v28, 0.0  ;;  %v7622_v38 = vcombine.high %v7616_v3, %v7616_v3  ;;  %v4187_v8 = vadd.f32 %v4186_v6, %v4137_v32  ;;  %v4269_v39 = vmul.f32 %v7626_v12, %v8057_v48 }
 0x933   : > { %v4264_v47 = vmul.f32 %v7616_v3, %v8057_v48  ;;  %v4411_v28 = vmul.f32 %v5279_v29, %v8064_v60 }
 0x934   : > { %v7630_v16 = vcombine.high %v7618_v33, %v7618_v33  ;;  %v7632_v22 = vmax.f32 %v4187_v8, 0.0  ;;  %v4265_v59 = vmul.f32 %v7622_v38, %v8057_v48  ;;  %v4270_v11 = vmul.f32 %v7618_v33, %v8057_v48 }
 0x935   : > { %v4282_v26 = vcombine.low %v4268_v2, %v4269_v39  ;;  %v8066_v2 = vld [vmem:[#allocation15_spill] sm:$0xff] }
 0x936   : > { %v4271_v61 = vmul.f32 %v7630_v16, %v8057_v48  ;;  %v7640_v34 = vcombine.high %v7632_v22, %v7632_v22  ;;  %v4266_v1 = vmul.f32 %v7632_v22, %v8057_v48  ;;  %v4280_v42 = vcombine.low %v4264_v47, %v4265_v59 }
 0x938   : > { %v4267_v15 = vmul.f32 %v7640_v34, %v8057_v48  ;;  %v4283_v54 = vcombine.low %v4270_v11, %v4271_v61  ;;  %v8065_v48 = vld [vmem:[#allocation13_spill] sm:$0xff] }
 0x939   : > { %v4407_v61 = vmul.f32 %v5279_v29, %v8065_v48 }
 0x93a   : > { %v4281_v7 = vcombine.low %v4266_v1, %v4267_v15  ;;  %v4289_v27 = vpack.c.bf16 %v4283_v54, %v4282_v26  ;;  %v4408_v54 = vmul.f32 %v5279_v29, %v8066_v2  ;;  %v8067_v26 = vld [vmem:[#allocation19_spill] sm:$0xff] }
 0x93c   : > { %v4288_v49 = vpack.c.bf16 %v4281_v7, %v4280_v42 }
 0x93e   : > { %5595 = vmatprep.mubr.bf16.mxu1 %v4288_v49  ;;  %v4412_v49 = vmul.f32 %v5279_v29, %v8067_v26 }
 0x93f   : > { %5596 = vmatmul.mubr.bf16.vlgmr.msra.gmra.mxu1 %v4289_v27 }
 0x940   : > { %5620 = vmatpush3.bf16.msra.mxu1 %v5725_v18  ;;  %5635 = vmatprep.mubr.msk.bf16.mxu1 %vm8024_vm0, %v8023_v35 }
 0x941   : > { %5621 = vmatprep.subr.bf16.mxu1 %v8023_v35 }
 0x944   : > { %5622 = vmatpush3.bf16.msra.mxu1 %v5726_v30 }
 0x945   : > { %5623 = vmatprep.subr.bf16.mxu1 %v8023_v35 }
 0x948   : > { %5624 = vmatpush3.bf16.msra.mxu1 %v5727_v50 }
 0x949   : > { %5625 = vmatprep.subr.bf16.mxu1 %v8023_v35 }
 0x94c   : > { %5626 = vmatpush3.bf16.msra.mxu1 %v5728_v14 }
 0x94d   : > { %5627 = vmatprep.subr.bf16.mxu1 %v8023_v35 }
 0x950   : > { %5628 = vmatpush3.bf16.msra.mxu1 %v5729_v4  ;;  %v5280_v4 = vld [vmem:[%s7899_s15] ss:$0 sm:$0xff] }
 0x951   : > { %5629 = vmatprep.subr.bf16.mxu1 %v8023_v35 }
 0x954   : > { %5630 = vmatpush3.bf16.msra.mxu1 %v5730_v52 }
 0x955   : > { %5631 = vmatprep.subr.bf16.mxu1 %v8023_v35 }
 0x958   : > { %5632 = vmatpush3.bf16.msra.mxu1 %v5731_v41 }
 0x959   : > { %5633 = vmatprep.subr.bf16.mxu1 %v8023_v35 }
 0x95c   : > { %5634 = vmatpush3.bf16.msra.mxu1 %v5732_v31 }
 0x95f   : > { %5636 = vmatmul.mubr.bf16.vlgmr.msra.gmra.mxu1 %v4828_v46 }
 0x9ff   : > { %v5597_v13 = vpop.f32.mrf.mxu1 }
 0xa00   : > { %v4393_v21 = vcombine.high %v5597_v13, %v5597_v13  ;;  %v4417_v17 = vadd.f32 %v5597_v13, %v4409_v53 }
 0xa01   : > { %v4372_v55 = vpop.f32.mrf.mxu1 }
 0xa02   : > { %v4418_v32 = vadd.f32 %v4410_v20, %v4393_v21  ;;  %v4433_v6 = vmul.f32 0.2, %v4417_v17  ;;  %v4391_v8 = vcombine.high %v4372_v55, %v4372_v55  ;;  %vm4425_vm1 = vcmp.ge.f32.partialorder %v4417_v17, 0.0 }
 0xa03   : > { %v4413_v59 = vadd.f32 %v4405_v0, %v4372_v55  ;;  %v5598_v39 = vpop.f32.mrf.mxu1 }
 0xa04   : > { %v4434_v11 = vmul.f32 0.2, %v4418_v32  ;;  %v4414_v47 = vadd.f32 %v4406_v44, %v4391_v8  ;;  %v4394_v1 = vcombine.high %v5598_v39, %v5598_v39  ;;  %v4419_v15 = vadd.f32 %v5598_v39, %v4411_v28 }
 0xa05   : > { %vm4421_vm2 = vcmp.ge.f32.partialorder %v4413_v59, 0.0  ;;  %v4429_v42 = vmul.f32 0.2, %v4413_v59  ;;  %v4375_v7 = vpop.f32.mrf.mxu1  ;;  %vm4426_vm3 = vcmp.ge.f32.partialorder %v4418_v32, 0.0  ;;  %v4441_v30 = vsel %vm4425_vm1, %v4417_v17, %v4433_v6 }
 0xa06   : > { %v4430_v18 = vmul.f32 0.2, %v4414_v47  ;;  %v4435_v27 = vmul.f32 0.2, %v4419_v15  ;;  %v4392_v50 = vcombine.high %v4375_v7, %v4375_v7  ;;  %v4415_v14 = vadd.f32 %v4407_v61, %v4375_v7 }
 0xa07   : > { %v4442_v52 = vsel %vm4426_vm3, %v4418_v32, %v4434_v11  ;;  %v4437_v41 = vsel %vm4421_vm2, %v4413_v59, %v4429_v42  ;;  %v4420_v43 = vadd.f32 %v4412_v49, %v4394_v1  ;;  %vm4427_vm5 = vcmp.ge.f32.partialorder %v4419_v15, 0.0 }
 0xa08   : > { %v4456_v63 = vmul.f32 %v5280_v4, %v4442_v52  ;;  %v4451_v58 = vmul.f32 %v5280_v4, %v4437_v41  ;;  %v4416_v31 = vadd.f32 %v4408_v54, %v4392_v50  ;;  %vm4423_vm6 = vcmp.ge.f32.partialorder %v4415_v14, 0.0 }
 0xa09   : > { %v4431_v62 = vmul.f32 0.2, %v4415_v14  ;;  %vm4422_vm7 = vcmp.ge.f32.partialorder %v4414_v47, 0.0  ;;  %v4455_v57 = vmul.f32 %v5280_v4, %v4441_v30  ;;  %v4443_v20 = vsel %vm4427_vm5, %v4419_v15, %v4435_v27 }
 0xa0a   : > { %v4474_v46 = vsel %vm1174_vm4, %v4456_v63, 0.0  ;;  %v4459_v29 = vsel %vm1174_vm4, %v4451_v58, 0.0  ;;  %v4438_v53 = vsel %vm4422_vm7, %v4414_v47, %v4430_v18  ;;  %v4432_v13 = vmul.f32 0.2, %v4416_v31 }
 0xa0b   : > { %4475 = vadd.xlane.f32.xlu0 %v4474_v46  ;;  %4460 = vadd.xlane.f32.xlu1 %v4459_v29  ;;  %v4452_v51 = vmul.f32 %v5280_v4, %v4438_v53  ;;  %v4439_v21 = vsel %vm4423_vm6, %v4415_v14, %v4431_v62  ;;  %vm4424_vm8 = vcmp.ge.f32.partialorder %v4416_v31, 0.0  ;;  %v4471_v17 = vsel %vm1174_vm4, %v4455_v57, 0.0 }
 0xa0c   : > { %v4457_v0 = vmul.f32 %v5280_v4, %v4443_v20  ;;  %v4453_v36 = vmul.f32 %v5280_v4, %v4439_v21  ;;  %v4436_v44 = vmul.f32 0.2, %v4420_v43  ;;  %v4440_v55 = vsel %vm4424_vm8, %v4416_v31, %v4432_v13 }
 0xa0d   : > { %v4462_v56 = vsel %vm1174_vm4, %v4452_v51, 0.0  ;;  %vm4428_vm1 = vcmp.ge.f32.partialorder %v4420_v43, 0.0  ;;  %v4454_v32 = vmul.f32 %v5280_v4, %v4440_v55  ;;  %vm8068_vm2 = vcmask 31744  }
 0xa0e   : > { %v4477_v60 = vsel %vm1174_vm4, %v4457_v0, 0.0  ;;  %v4465_v28 = vsel %vm1174_vm4, %v4453_v36, 0.0  ;;  %v4444_v6 = vsel %vm4428_vm1, %v4420_v43, %v4436_v44  ;;  %vm813_vm7 = vcmask 64512   ;;  %vm8070_vm8 = vmmov %vm8068_vm2 }
 0xa0f   : > { %4472 = vadd.xlane.f32.xlu1 %v4471_v17  ;;  %4463 = vadd.xlane.f32.xlu0 %v4462_v56  ;;  %v4468_v8 = vsel %vm1174_vm4, %v4454_v32, 0.0  ;;  %v4458_v48 = vmul.f32 %v5280_v4, %v4444_v6 }
 0xa11   : > { %v4480_v61 = vsel %vm1174_vm4, %v4458_v48, 0.0 }
 0xa13   : > { %4478 = vadd.xlane.f32.xlu1 %v4477_v60  ;;  %4466 = vadd.xlane.f32.xlu0 %v4465_v28 }
 0xa17   : > { %4469 = vadd.xlane.f32.xlu0 %v4468_v8 }
 0xa1b   : > { %4481 = vadd.xlane.f32.xlu0 %v4480_v61 }
 0xa1f   : > { %v7711_v59 = vpop.f32.mrf.mxu1 }
 0xa21   : > { %v5637_v39 = vpop.f32.mrf.mxu1 }
 0xa23   : > { %v5035_v11 = vpop.f32.mrf.mxu1 }
 0xa25   : > { %v5638_v47 = vpop.f32.mrf.mxu1 }
 0xa94   : > { %v4476_v1 = vpop.xlane.xlu0 %4475  ;;  %v4461_v15 = vpop.xlane.xlu1 %4460 }
 0xa95   : > { %v4494_v49 = vrot.slane %v4461_v15, %v6247_v45  ;;  %v4514_v52 = vrot.slane %v4476_v1, %v6247_v45 }
 0xa98   : > { %v4464_v2 = vpop.xlane.xlu0 %4463  ;;  %v4473_v54 = vpop.xlane.xlu1 %4472 }
 0xa99   : > { %v4498_v7 = vrot.slane %v4464_v2, %v6247_v45  ;;  %v4510_v14 = vrot.slane %v4473_v54, %v6247_v45 }
 0xa9b   : > { %v4523_v27 = vsel %vm1241_vm9, %v4498_v7, %v4494_v49 }
 0xa9c   : > { %v4467_v42 = vpop.xlane.xlu0 %4466  ;;  %v4479_v30 = vpop.xlane.xlu1 %4478 }
 0xa9d   : > { %v4502_v26 = vrot.slane %v4467_v42, %v6247_v45  ;;  %v4518_v43 = vrot.slane %v4479_v30, %v6247_v45 }
 0xa9f   : > { %v4524_v4 = vsel %vm1243_vm10, %v4502_v26, %v4523_v27 }
 0xaa0   : > { %v4470_v18 = vpop.xlane.xlu0 %4469 }
 0xaa1   : > { %v4506_v50 = vrot.slane %v4470_v18, %v6247_v45 }
 0xaa3   : > { %v4525_v41 = vsel %vm1245_vm11, %v4506_v50, %v4524_v4  ;;  %v8069_v4 = vld [vmem:[#allocation53_spill] sm:$0xff] }
 0xaa4   : > { %v4526_v63 = vsel %vm1247_vm12, %v4510_v14, %v4525_v41  ;;  %v4482_v58 = vpop.xlane.xlu0 %4481  ;;  %v5867_v14 = vld [vmem:[%s6761_s24] sm:$0xff]  ;;  %s7843_s24 = scalar_lea.hbm %s7902_s18, %s5299_s26 }
 0xaa5   : > { %v4522_v31 = vrot.slane %v4482_v58, %v6247_v45  ;;  %v4527_v62 = vsel %vm1249_vm13, %v4514_v52, %v4526_v63  ;;  %vm809_vm3 = vcmp.ge.s32.totalorder %v5867_v14, 1  ;;  %vm810_vm5 = vcmp.le.s32.totalorder %v5867_v14, 4 }
 0xaa6   : > { %v4528_v46 = vsel %vm1251_vm14, %v4518_v43, %v4527_v62  ;;  %vm811_vm6 = vmand %vm809_vm3, %vm810_vm5 }
 0xaa7   : > { %v4529_v29 = vsel %vm1253_vm15, %v4522_v31, %v4528_v46  ;;  %v812_v52 = vsel %vm811_vm6, %v8069_v4, -9e+15 }
 0xaa8   : > { %v4531_v57 = vsel %vm8068_vm2, %v4529_v29, -inf  ;;  %v814_v41 = vsel %vm813_vm7, %v812_v52, -inf }
 0xaa9   : > { %4532 = vmax.xlane.f32.xlu1 %v4531_v57 }
 0xb32   : > { %v4533_v53 = vpop.xlane.xlu1 %4532 }
 0xb33   : > { %v4538_v13 = vrot.slane %v4533_v53, %v6110_v5  ;;  %v4542_v51 = vrot.slane %v4533_v53, %v6126_v10  ;;  %v4546_v20 = vrot.slane %v4533_v53, %v6123_v9  ;;  %v4554_v21 = vrot.slane %v4533_v53, %v6154_v24 }
 0xb34   : > { %v4562_v17 = vrot.slane %v4533_v53, %v6177_v37  ;;  %v4550_v36 = vrot.slane %v4533_v53, %v6151_v23  ;;  %v4558_v8 = vrot.slane %v4533_v53, %v6157_v25  ;;  %v4566_v11 = vrot.slane %v4533_v53, %v6181_v40 }
 0xb35   : > { %v4575_v56 = vsub.f32 %v4461_v15, %v4538_v13  ;;  %v4576_v0 = vsub.f32 %v4464_v2, %v4542_v51  ;;  %v4577_v44 = vsub.f32 %v4467_v42, %v4546_v20  ;;  %v4579_v55 = vsub.f32 %v4473_v54, %v4554_v21 }
 0xb36   : > { %v4581_v32 = vsub.f32 %v4479_v30, %v4562_v17  ;;  %v4578_v48 = vsub.f32 %v4470_v18, %v4550_v36  ;;  %v4580_v47 = vsub.f32 %v4476_v1, %v4558_v8  ;;  %v4582_v2 = vsub.f32 %v4482_v58, %v4566_v11 }
 0xb37   : > { %v4583_v60 = vmul.f32 1.442695, %v4575_v56  ;;  %v4585_v28 = vmul.f32 1.442695, %v4576_v0  ;;  %v4591_v6 = vmul.f32 1.442695, %v4579_v55 }
 0xb38   : > { %v4587_v61 = vmul.f32 1.442695, %v4577_v44  ;;  %v4595_v39 = vmul.f32 1.442695, %v4581_v32  ;;  %v4589_v15 = vmul.f32 1.442695, %v4578_v48 }
 0xb39   : > { %5833 = vpow2.f32 %v4583_v60  ;;  %v4593_v54 = vmul.f32 1.442695, %v4580_v47  ;;  %v4597_v7 = vmul.f32 1.442695, %v4582_v2 }
 0xb3a   : > { %5835 = vpow2.f32 %v4585_v28 }
 0xb3b   : > { %5837 = vpow2.f32 %v4591_v6 }
 0xb3c   : > { %5839 = vpow2.f32 %v4587_v61 }
 0xb3d   : > { %5841 = vpow2.f32 %v4595_v39 }
 0xb3e   : > { %5843 = vpow2.f32 %v4589_v15 }
 0xb3f   : > { %5845 = vpow2.f32 %v4593_v54 }
 0xb40   : > { %5847 = vpow2.f32 %v4597_v7 }
 0xb46   : > { %v5834_v42 = vpop.eup %5833 }
 0xb47   : > { %v5836_v26 = vpop.eup %5835  ;;  %4608 = vperm.xlu0 %5688, %v5834_v42  }
 0xb48   : > { %4611 = vperm.xlu1 %5689, %v5836_v26   ;;  %v7737_v49 = vpop.eup %5837 }
 0xb49   : > { %v5840_v18 = vpop.eup %5839 }
 0xb4a   : > { %v7740_v1 = vpop.eup %5841 }
 0xb4b   : > { %4620 = vperm.xlu0 %5688, %v7737_v49   ;;  %v5844_v27 = vpop.eup %5843 }
 0xb4c   : > { %4614 = vperm.xlu1 %5689, %v5840_v18   ;;  %v5846_v30 = vpop.eup %5845 }
 0xb4d   : > { %v5848_v50 = vpop.eup %5847 }
 0xb4f   : > { %4626 = vperm.xlu0 %5688, %v7740_v1  }
 0xb50   : > { %4617 = vperm.xlu1 %5689, %v5844_v27  }
 0xb54   : > { %4623 = vperm.xlu1 %5689, %v5846_v30  }
 0xb58   : > { %4629 = vperm.xlu1 %5689, %v5848_v50  }
 0xb7c   : > { %815 = vmax.xlane.f32.xlu1 %v814_v41 }
 0xbc2   : > { %v4609_v63 = vpop.permute.xlu0 %4608 }
 0xbc3   : > { %v4612_v43 = vpop.permute.xlu1 %4611  ;;  %v4634_v62 = vrot.slane %v4609_v63, %v6247_v45 }
 0xbc4   : > { %v4638_v31 = vrot.slane %v4612_v43, %v6247_v45  ;;  %v5740_v43 = vld [vmem:[%s7901_s17] sm:$0xff]  }
 0xbc6   : > { %v4621_v29 = vpop.permute.xlu0 %4620  ;;  %v4663_v53 = vsel %vm1241_vm9, %v4638_v31, %v4634_v62 }
 0xbc7   : > { %v4615_v58 = vpop.permute.xlu1 %4614  ;;  %v4650_v21 = vrot.slane %v4621_v29, %v6247_v45 }
 0xbc8   : > { %v4642_v46 = vrot.slane %v4615_v58, %v6247_v45 }
 0xbca   : > { %v4664_v51 = vsel %vm1243_vm10, %v4642_v46, %v4663_v53  ;;  %v4627_v56 = vpop.permute.xlu0 %4626 }
 0xbcb   : > { %v4618_v57 = vpop.permute.xlu1 %4617  ;;  %v4658_v55 = vrot.slane %v4627_v56, %v6247_v45 }
 0xbcc   : > { %v4646_v13 = vrot.slane %v4618_v57, %v6247_v45 }
 0xbce   : > { %v4665_v20 = vsel %vm1245_vm11, %v4646_v13, %v4664_v51 }
 0xbcf   : > { %v4624_v17 = vpop.permute.xlu1 %4623  ;;  %v4666_v36 = vsel %vm1247_vm12, %v4650_v21, %v4665_v20 }
 0xbd0   : > { %v4654_v0 = vrot.slane %v4624_v17, %v6247_v45 }
 0xbd2   : > { %v4667_v44 = vsel %vm1249_vm13, %v4654_v0, %v4666_v36 }
 0xbd3   : > { %v4630_v60 = vpop.permute.xlu1 %4629  ;;  %v4668_v32 = vsel %vm1251_vm14, %v4658_v55, %v4667_v44 }
 0xbd4   : > { %v4662_v28 = vrot.slane %v4630_v60, %v6247_v45 }
 0xbd6   : > { %v4669_v6 = vsel %vm1253_vm15, %v4662_v28, %v4668_v32 }
 0xbd7   : > { %v4671_v8 = vsel %vm8070_vm8, %v4669_v6, 0.0 }
 0xbd8   : > { %4672 = vadd.xlane.f32.xlu0 %v4671_v8 }
 0xc61   : > { %v4673_v48 = vpop.xlane.xlu0 %4672 }
 0xc62   : > { %5849 = vrcp.f32 %v4673_v48 }
 0xc6f   : > { %v5850_v61 = vpop.eup %5849 }
 0xc70   : > { %v4679_v39 = vrot.slane %v5850_v61, %v6110_v5  ;;  %v4683_v11 = vrot.slane %v5850_v61, %v6126_v10  ;;  %v4687_v2 = vrot.slane %v5850_v61, %v6123_v9  ;;  %v4691_v45 = vrot.slane %v5850_v61, %v6151_v23 }
 0xc71   : > { %v4695_v14 = vrot.slane %v5850_v61, %v6154_v24  ;;  %v4699_v4 = vrot.slane %v5850_v61, %v6157_v25  ;;  %v4703_v10 = vrot.slane %v5850_v61, %v6177_v37  ;;  %v5733_v25 = vld [vmem:[%s7901_s17 + $0x38] sm:$0xff]   ;;  %v5734_v37 = vld [vmem:[%s7901_s17 + $0x30] sm:$0xff]  }
 0xc72   : > { %v4716_v47 = vmul.f32 %v5834_v42, %v4679_v39  ;;  %v4717_v15 = vmul.f32 %v5836_v26, %v4683_v11  ;;  %v4718_v54 = vmul.f32 %v5840_v18, %v4687_v2  ;;  %v4719_v7 = vmul.f32 %v5844_v27, %v4691_v45  ;;  %v816_v26 = vpop.xlane.xlu1 %815  ;;  %5600 = vmatpush3.bf16.msra.mxu0 %v5733_v25  ;;  %v5738_v27 = vld [vmem:[%s7901_s17 + $0x10] sm:$0xff]  }
 0xc73   : > { %v4720_v5 = vmul.f32 %v7737_v49, %v4695_v14  ;;  %v4721_v41 = vmul.f32 %v5846_v30, %v4699_v4  ;;  %v4707_v42 = vrot.slane %v5850_v61, %v6181_v40  ;;  %v4722_v9 = vmul.f32 %v7740_v1, %v4703_v10  ;;  %5601 = vmatprep.subr.bf16.mxu0 %v8023_v35  ;;  %v5735_v40 = vld [vmem:[%s7901_s17 + $0x28] sm:$0xff]   ;;  %v5736_v49 = vld [vmem:[%s7901_s17 + $0x20] sm:$0xff]   ;;  %v5737_v1 = vld [vmem:[%s7901_s17 + $0x18] sm:$0xff]  }
 0xc74   : > { %4726 = vperm.xlu0 %5688, %v4716_v47   ;;  %4731 = vperm.xlu1 %5689, %v4717_v15   ;;  %v817_v24 = vsub.f32 %v812_v52, %v816_v26  ;;  %v5739_v52 = vld [vmem:[%s7901_s17 + $0x8] sm:$0xff]  }
 0xc75   : > { %v4723_v23 = vmul.f32 %v5848_v50, %v4707_v42 }
 0xc76   : > { %v818_v18 = vmul.f32 1.442695, %v817_v24  ;;  %5602 = vmatpush3.bf16.msra.mxu0 %v5734_v37 }
 0xc77   : > { %5603 = vmatprep.subr.bf16.mxu0 %v8023_v35 }
 0xc78   : > { %4736 = vperm.xlu0 %5688, %v4718_v54   ;;  %4741 = vperm.xlu1 %5689, %v4719_v7   ;;  %5851 = vpow2.f32 %v818_v18 }
 0xc7a   : > { %5604 = vmatpush3.bf16.msra.mxu0 %v5735_v40 }
 0xc7b   : > { %5605 = vmatprep.subr.bf16.mxu0 %v8023_v35 }
 0xc7c   : > { %4746 = vperm.xlu0 %5688, %v4720_v5   ;;  %4751 = vperm.xlu1 %5689, %v4721_v41  }
 0xc7e   : > { %5606 = vmatpush3.bf16.msra.mxu0 %v5736_v49 }
 0xc7f   : > { %5607 = vmatprep.subr.bf16.mxu0 %v8023_v35 }
 0xc80   : > { %4756 = vperm.xlu0 %5688, %v4722_v9   ;;  %4761 = vperm.xlu1 %5689, %v4723_v23  }
 0xc82   : > { %5608 = vmatpush3.bf16.msra.mxu0 %v5737_v1 }
 0xc83   : > { %5609 = vmatprep.subr.bf16.mxu0 %v8023_v35 }
 0xc85   : > { %v7794_v30 = vpop.eup %5851 }
 0xc86   : > { %v820_v50 = vsel %vm813_vm7, %v7794_v30, 0.0  ;;  %5610 = vmatpush3.bf16.msra.mxu0 %v5738_v27 }
 0xc87   : > { %5611 = vmatprep.subr.bf16.mxu0 %v8023_v35 }
 0xc8a   : > { %5612 = vmatpush3.bf16.msra.mxu0 %v5739_v52 }
 0xc8b   : > { %5613 = vmatprep.subr.bf16.mxu0 %v8023_v35 }
 0xc8e   : > { %5614 = vmatpush3.bf16.msra.mxu0 %v5740_v43 }
 0xc8f   : > { %5639 = vmatprep.subr.bf16.mxu0 %v8023_v35 }
 0xc9f   : > { %821 = vadd.xlane.f32.xlu0 %v820_v50 }
 0xcef   : > { %v4727_v63 = vpop.permute.xlu0 %4726  ;;  %v4732_v58 = vpop.permute.xlu1 %4731 }
 0xcf0   : > { %v4764_v31 = vmul.f32 %v4727_v63, %v7616_v3  ;;  %v4765_v62 = vmul.f32 %v4732_v58, %v7622_v38 }
 0xcf2   : > { %v4772_v46 = vsel %vm1174_vm4, %v4764_v31, 0.0  ;;  %v4779_v29 = vsel %vm1174_vm4, %v4765_v62, 0.0 }
 0xcf3   : > { %v4773_v57 = vrot.slane %v4772_v46, 4  ;;  %v4780_v53 = vrot.slane %v4779_v29, 4  ;;  %v4737_v13 = vpop.permute.xlu0 %4736  ;;  %v4742_v51 = vpop.permute.xlu1 %4741 }
 0xcf4   : > { %v4766_v20 = vmul.f32 %v4737_v13, %v7632_v22  ;;  %v4767_v21 = vmul.f32 %v4742_v51, %v7640_v34 }
 0xcf5   : > { %v4774_v17 = vadd.f32 %v4773_v57, %v4772_v46  ;;  %v4781_v56 = vadd.f32 %v4780_v53, %v4779_v29 }
 0xcf6   : > { %v4786_v0 = vsel %vm1174_vm4, %v4766_v20, 0.0  ;;  %v4793_v3 = vsel %vm1174_vm4, %v4767_v21, 0.0 }
 0xcf7   : > { %v4775_v36 = vrot.slane %v4774_v17, 2  ;;  %v4782_v38 = vrot.slane %v4781_v56, 2  ;;  %v4787_v44 = vrot.slane %v4786_v0, 4  ;;  %v4794_v55 = vrot.slane %v4793_v3, 4  ;;  %v4747_v60 = vpop.permute.xlu0 %4746  ;;  %v4752_v28 = vpop.permute.xlu1 %4751 }
 0xcf8   : > { %v4768_v32 = vmul.f32 %v4747_v60, %v7614_v19  ;;  %v4769_v6 = vmul.f32 %v4752_v28, %v7626_v12 }
 0xcf9   : > { %v4776_v8 = vadd.f32 %v4775_v36, %v4774_v17  ;;  %v4783_v22 = vadd.f32 %v4782_v38, %v4781_v56  ;;  %v4788_v48 = vadd.f32 %v4787_v44, %v4786_v0  ;;  %v4795_v34 = vadd.f32 %v4794_v55, %v4793_v3 }
 0xcfa   : > { %v4800_v61 = vsel %vm1174_vm4, %v4768_v32, 0.0  ;;  %v4807_v39 = vsel %vm1174_vm4, %v4769_v6, 0.0 }
 0xcfb   : > { %v4777_v11 = vrot.slane %v4776_v8, 1  ;;  %v4784_v47 = vrot.slane %v4783_v22, 1  ;;  %v4789_v15 = vrot.slane %v4788_v48, 2  ;;  %v4796_v2 = vrot.slane %v4795_v34, 2  ;;  %v4757_v45 = vpop.permute.xlu0 %4756  ;;  %v4762_v54 = vpop.permute.xlu1 %4761 }
 0xcfc   : > { %v4801_v7 = vrot.slane %v4800_v61, 4  ;;  %v4808_v14 = vrot.slane %v4807_v39, 4  ;;  %v4770_v19 = vmul.f32 %v4757_v45, %v7618_v33  ;;  %v4771_v12 = vmul.f32 %v4762_v54, %v7630_v16  ;;  %v5868_v54 = vld [vmem:[%s6317_s25] sm:$0xf]  ;;  %s646_s25 = sand.u32 1, %s5921_s28  }
 0xcfd   : > { %v4778_v4 = vadd.f32 %v4777_v11, %v4776_v8  ;;  %v4785_v5 = vadd.f32 %v4784_v47, %v4783_v22  ;;  %v4790_v41 = vadd.f32 %v4789_v15, %v4788_v48  ;;  %v4797_v10 = vadd.f32 %v4796_v2, %v4795_v34  ;;  %s5232_s27 = sshll.u32 %s646_s25, 3  ;;  %s5087_s30 = scalar_lea.sflag [#allocation3], %s646_s25 }
 0xcfe   : > { %v4802_v42 = vadd.f32 %v4801_v7, %v4800_v61  ;;  %v4809_v9 = vadd.f32 %v4808_v14, %v4807_v39  ;;  %v4814_v23 = vsel %vm1174_vm4, %v4770_v19, 0.0  ;;  %v4821_v26 = vsel %vm1174_vm4, %v4771_v12, 0.0  ;;  %s648_s29 = scalar_lea.vmem [#allocation2], %s5232_s27 }
 0xcff   : > { %v4829_v24 = vpack.c.bf16 %v4778_v4, %v4778_v4  ;;  %v4830_v25 = vpack.c.bf16 %v4785_v5, %v4785_v5  ;;  %v4791_v18 = vrot.slane %v4790_v41, 1  ;;  %v4798_v37 = vrot.slane %v4797_v10, 1  ;;  %s5100_s19 = sshll.u32 %s648_s29, 4  ;;  %s7845_s19 = int_to_ptr.vmem [resolvable:$true] %s5100_s19 }
 0xd00   : > { %v4803_v40 = vrot.slane %v4802_v42, 2  ;;  %v4810_v49 = vrot.slane %v4809_v9, 2  ;;  %v4815_v1 = vrot.slane %v4814_v23, 4  ;;  %v4822_v33 = vrot.slane %v4821_v26, 4  ;;  %s5869_s0 = scalar_lea.vmem %s7845_s19, 128  ;;  %p5876_p0 = scmp.lt.s32.totalorder %s7845_s19, %s5874_s22 }
 0xd01   : > { %v4792_v27 = vadd.f32 %v4791_v18, %v4790_v41  ;;  %v4799_v16 = vadd.f32 %v4798_v37, %v4797_v10  ;;  %v4845_v58 = vunpack.c.l.b16 %v4829_v24  ;;  %v4846_v31 = vunpack.c.l.b16 %v4830_v25  ;;  %p5870_p11 = scmp.ne.s32.totalorder %s7845_s19, %s5869_s0  ;;  %p5877_p1 = scmp.lt.s32.totalorder %s5875_s1, %s5869_s0 }
 0xd02   : > { %v4804_v50 = vadd.f32 %v4803_v40, %v4802_v42  ;;  %v4811_v52 = vadd.f32 %v4810_v49, %v4809_v9  ;;  %v4816_v43 = vadd.f32 %v4815_v1, %v4814_v23  ;;  %v4823_v63 = vadd.f32 %v4822_v33, %v4821_v26 }
 0xd03   : > { %v4831_v62 = vpack.c.bf16 %v4792_v27, %v4792_v27  ;;  %v4832_v46 = vpack.c.bf16 %v4799_v16, %v4799_v16  ;;  %v4853_v0 = vsel %vm1241_vm9, %v4846_v31, %v4845_v58  ;;  %v5043_v7 = vsel %vm1174_vm4, %v5868_v54, 0  ;;  %p5871_p12 = pnand %p5870_p11, %p6069_p5  ;;  %p5878_p2 = por %p5877_p1, %p5876_p0 }
 0xd04   : > { %v4805_v29 = vrot.slane %v4804_v50, 1  ;;  %v4812_v57 = vrot.slane %v4811_v52, 1  ;;  %v4817_v53 = vrot.slane %v4816_v43, 2  ;;  %v4824_v13 = vrot.slane %v4823_v63, 2 }
 0xd05   : > { %v4847_v51 = vunpack.c.l.b16 %v4831_v62  ;;  %v4848_v3 = vunpack.c.l.b16 %v4832_v46  ;;  %p5872_p13 = pneg %p5871_p12 }
 0xd06   : > { %v4806_v20 = vadd.f32 %v4805_v29, %v4804_v50  ;;  %v4813_v21 = vadd.f32 %v4812_v57, %v4811_v52  ;;  %v4818_v17 = vadd.f32 %v4817_v53, %v4816_v43  ;;  %v4825_v56 = vadd.f32 %v4824_v13, %v4823_v63 }
 0xd07   : > { %v4854_v36 = vsel %vm1243_vm10, %v4847_v51, %v4853_v0  ;;  %p5879_p3 = pnand %p5878_p2, %p5872_p13 }
 0xd08   : > { %v4833_v38 = vpack.c.bf16 %v4806_v20, %v4806_v20  ;;  %v4834_v44 = vpack.c.bf16 %v4813_v21, %v4813_v21  ;;  %v4819_v55 = vrot.slane %v4818_v17, 1  ;;  %v4826_v60 = vrot.slane %v4825_v56, 1 }
 0xd09   : > { %v4855_v6 = vsel %vm1245_vm11, %v4848_v3, %v4854_v36 }
 0xd0a   : > { %v4849_v28 = vunpack.c.l.b16 %v4833_v38  ;;  %v4820_v32 = vadd.f32 %v4819_v55, %v4818_v17  ;;  %v4850_v8 = vunpack.c.l.b16 %v4834_v44  ;;  %v4827_v22 = vadd.f32 %v4826_v60, %v4825_v56 }
 0xd0c   : > { %v4856_v48 = vsel %vm1247_vm12, %v4849_v28, %v4855_v6  ;;  %v4835_v34 = vpack.c.bf16 %v4820_v32, %v4820_v32  ;;  %v4836_v61 = vpack.c.bf16 %v4827_v22, %v4827_v22 }
 0xd0d   : > { %v4857_v47 = vsel %vm1249_vm13, %v4850_v8, %v4856_v48 }
 0xd0e   : > { %v4851_v39 = vunpack.c.l.b16 %v4835_v34  ;;  %v4852_v11 = vunpack.c.l.b16 %v4836_v61 }
 0xd10   : > { %v4858_v15 = vsel %vm1251_vm14, %v4851_v39, %v4857_v47 }
 0xd11   : > { %v4859_v2 = vsel %vm1253_vm15, %v4852_v11, %v4858_v15 }
 0xd12   : > { %v4860_v45 = vpack.c.b16 %v4859_v2, %v4859_v2 }
 0xd14   : > { %5616 = vmatmul.mubr.bf16.vlgmr.msra.gmra.mxu0 %v4860_v45 }
 0xd15   : > { %5640 = vmatpush3.bf16.msra.mxu0 %v5043_v7  ;;  %5641 = vmatprep.mubr.msk.bf16.mxu0 %vm8024_vm0, %v8023_v35 }
 0xd28   : > { %v822_v14 = vpop.xlane.xlu0 %821 }
 0xd29   : > { %5853 = vrcp.f32 %v822_v14 }
 0xd36   : > { %v5854_v19 = vpop.eup %5853 }
 0xd37   : > { %v824_v12 = vmul.f32 %v5854_v19, %v7794_v30 }
 0xd39   : > { %v825_v4 = vpack.c.bf16 %v824_v12, %v824_v12 }
 0xd3b   : > { %5642 = vmatmul.mubr.msk.bf16.vlgmr.msra.gmra.mxu0 %vm813_vm7, %v825_v4 }
 0xdd4   : > { %v4944_v5 = vpop.f32.mrf.mxu0 }
 0xdd5   : > { %v5033_v9 = vadd.f32 %v7711_v59, %v4944_v5 }
 0xdd6   : > { %v5617_v41 = vpop.f32.mrf.mxu0 }
 0xdd7   : > { %v5038_v35 = vmax.f32 %v5033_v9, 0.0 }
 0xdd8   : > { %v4947_v10 = vpop.f32.mrf.mxu0 }
 0xdda   : > { %v5618_v42 = vpop.f32.mrf.mxu0 }
 0xdfb   : > { %v5079_v23 = vpop.f32.mrf.mxu0 }
 0xdfc   : > { %v5080_v26 = vadd.f32 %v5079_v23, %v5038_v35 }
 0xdfd   : > { %v5643_v30 = vpop.f32.mrf.mxu0 }
 0xdfe   : > { %5085 = vst [vmem:[%s648_s29] sm:$0xff] %v5080_v26 }
 0xdff   : > { %v5082_v24 = vpop.f32.mrf.mxu0 }
 0xe00   : > { %5882 = shalt.err (!%p5879_p3)
}
 0xe01   : > { %s5883_s27 = scalar_lea.hbm %s7843_s24, 128  ;;  %s5887_s29 = scalar_lea.hbm %s7902_s18, 256 }
 0xe02   : > { %p5884_p4 = scmp.ne.s32.totalorder %s7843_s24, %s5883_s27  ;;  %p5888_p9 = scmp.lt.s32.totalorder %s7843_s24, %s7902_s18 }
 0xe03   : > { %p5889_p10 = scmp.lt.s32.totalorder %s5887_s29, %s5883_s27 }
 0xe04   : > { %p5885_p7 = pnand %p5884_p4, %p6069_p5 }
 0xe05   : > { %p5890_p11 = por %p5889_p10, %p5888_p9 }
 0xe06   : > { %p5886_p8 = pneg %p5885_p7 }
 0xe08   : > { %p5891_p12 = pnand %p5890_p11, %p5886_p8 }
 0xe0a   : > { %5894 = shalt.err (!%p5891_p12)
}
 0xe0b   : > { %5645 = dma.vmem_to_hbm [thread:$0]  (%p6069_p5), %s7845_s19, 128, %s7843_s24, %s5087_s30   ;;  %v5644_v59 = vpop.f32.mrf.mxu0 }
 0xe0c PF: > { %s8071_s0 = sld [smem:[#allocation7_spill]] }
 0xe0d   : > { %s8072_s20 = sld [smem:[#allocation5_spill]] }
 0xe12   : > { %p5651_p13 = scmp.ge.s32.totalorder %s8071_s0, 2 }
 0xe13   : > { %s5112_s1 = sand.u32 1, %s8072_s20  }
 0xe14   : > { %p5648_p0 = pnand %p5651_p13, %p6073_p6  ;;  %s5113_s25 = scalar_lea.sflag [#allocation3], %s5112_s1 }
 0xe16   : > { %p5649_p1 = pneg %p5648_p0 }
 0xe18   : > { %5912 = dma.done.wait (%p5649_p1), %s5113_s25, 128  }
 0xe19   : > { %5914 = vsyncadd (%p5649_p1), %s5113_s25, 4294967168  ;;  %s8074_s30 = sld [smem:[#allocation8_spill]]  ;;  %s8077_s27 = smov %s5921_s28 }
 0xe1a   : > { %s8075_s26 = sld [smem:[#allocation6_spill]] }
 0xe1b   : > { %s8076_s29 = sld [smem:[#allocation9_spill]] }
 0xe1f   : > { %p28_p2 = scmp.ge.s32.totalorder %s8074_s30, 4  }
 0xe20   : > { %s8078_s28 = smov %s8075_s26 }
 0xe21   :  { %30 = sbr.rel (!%p28_p2) target bundleno = 7 (0x7), region = 145 }
 0xe26   :  { %5118 = vsyncpa [#allocation3], 1 }
 0xe27   :  { %5120 = vsyncpa [#allocation3 + $0x1], 1 }

</bundles_post_ra>
